<compile_context>
chip_gen: v7x
topology: tpu7x:2x2x1
jax: 0.10.0
libtpu: 0.0.40
codegen_flags: <defaults>
</compile_context>

<pallas_src>
import functools

import jax
import jax.numpy as jnp
import numpy as np
from jax import lax
from jax.experimental import pallas as pl
from jax.experimental.pallas import tpu as pltpu

BN_EPS = 1e-3


def _round_up(x, m):
    return (x + m - 1) // m * m


# ----------------------------------------------------------------------------
# Pallas kernel: fused Conv2d + folded-BN + ReLU (tap-reduction over kh*kw)
# ----------------------------------------------------------------------------
def _conv_bn_relu_kernel(x_ref, w_ref, b_ref, o_ref, *, kh, kw, stride, oh, ow):
    """One batch element, one OC tile.

    x_ref: (s, s, 1, Hu, Wu, C)  bf16 phase-decomposed zero-padded input
    w_ref: (kh*kw, C, TN)        bf16 BN-folded conv weights (tap-major)
    b_ref: (1, TN)               f32  BN-folded bias
    o_ref: (1, oh*ow, TN)        output tile (lane-dense, TN % 128 == 0)
    """
    s = stride
    tn = o_ref.shape[-1]
    acc = jnp.zeros((oh * ow, tn), jnp.float32)
    for i in range(kh):                      # static tap loop, unrolled
        for j in range(kw):
            pi, di = i % s, i // s
            pj, dj = j % s, j // s
            # Unit-stride shifted window of one stride-phase plane: (oh, ow, C).
            win = x_ref[pi, pj, 0, di:di + oh, dj:dj + ow, :]
            acc = acc + jnp.dot(win.reshape(oh * ow, win.shape[-1]),
                                w_ref[i * kw + j],
                                preferred_element_type=jnp.float32)
    y = jnp.maximum(acc + b_ref[...], 0.0)   # folded-BN bias + ReLU, f32
    o_ref[0] = y.astype(o_ref.dtype)


# ----------------------------------------------------------------------------
# One-time preprocessing: BN folding + weight repack + lane padding + bf16 cast
# ----------------------------------------------------------------------------
def prepare_basic_conv2d(w, gamma, beta, mean, var, eps=BN_EPS):
    """w: (OC, C, KH, KW) PyTorch layout. Returns packed operands for the kernel:
    w: (KH*KW, C, OCp) bf16 (OCp = round_up(OC, 128)), b: (1, OCp) f32."""
    oc, cin, kh, kw = w.shape
    scale = gamma / jnp.sqrt(var + eps)
    bias = beta - mean * scale
    wf = w * scale[:, None, None, None]                       # fold BN scale
    wt = jnp.transpose(wf, (2, 3, 1, 0)).reshape(kh * kw, cin, oc)
    ocp = _round_up(oc, 128)
    wt = jnp.pad(wt, ((0, 0), (0, 0), (0, ocp - oc))).astype(jnp.bfloat16)
    b = jnp.pad(bias, (0, ocp - oc)).reshape(1, ocp).astype(jnp.float32)
    return {"w": wt, "b": b}


# ----------------------------------------------------------------------------
# Forward wrapper (matches BasicConv2d.forward: NCHW in -> NCHW out)
# ----------------------------------------------------------------------------
def basic_conv2d(x_nchw, w_packed, b_packed, *, kh, kw, oc, stride=1, padding=0,
                 out_dtype=jnp.float32):
    B, C, H, W = x_nchw.shape
    s, p = stride, padding
    taps, cin, ocp = w_packed.shape
    assert taps == kh * kw and cin == C
    OH = (H + 2 * p - kh) // s + 1
    OW = (W + 2 * p - kw) // s + 1
    Hreq = (OH - 1) * s + kh
    Wreq = (OW - 1) * s + kw

    # NCHW -> NHWC, bf16; zero-pad and crop to the exact window extent.
    x = jnp.transpose(x_nchw, (0, 2, 3, 1)).astype(jnp.bfloat16)
    x = jnp.pad(x, ((0, 0), (p, p), (p, p), (0, 0)))[:, :Hreq, :Wreq, :]

    # Space-to-batch phase split: stride-s windows become unit-stride slices of one
    # phase plane (1x relayout in XLA, no im2col amplification).
    Hu, Wu = -(-Hreq // s), -(-Wreq // s)
    x = jnp.pad(x, ((0, 0), (0, Hu * s - Hreq), (0, Wu * s - Wreq), (0, 0)))
    x = x.reshape(B, Hu, s, Wu, s, C).transpose(2, 4, 0, 1, 3, 5)  # (s, s, B, Hu, Wu, C)

    # OC tiling: one fat lane-dense tile unless OCp is very wide.
    if ocp <= 512:
        tn = ocp
    elif ocp % 256 == 0:
        tn = 256
    else:
        tn = 128
    M = OH * OW

    kernel = functools.partial(_conv_bn_relu_kernel,
                               kh=kh, kw=kw, stride=s, oh=OH, ow=OW)
    out = pl.pallas_call(
        kernel,
        out_shape=jax.ShapeDtypeStruct((B, M, ocp), out_dtype),
        grid=(B, ocp // tn),
        in_specs=[
            pl.BlockSpec((s, s, 1, Hu, Wu, C), lambda bi, ni: (0, 0, bi, 0, 0, 0)),
            pl.BlockSpec((kh * kw, C, tn), lambda bi, ni: (0, 0, ni)),
            pl.BlockSpec((1, tn), lambda bi, ni: (0, ni)),
        ],
        out_specs=pl.BlockSpec((1, M, tn), lambda bi, ni: (bi, 0, ni)),
        compiler_params=pltpu.CompilerParams(
            dimension_semantics=("parallel", "parallel")),
    )(x, w_packed, b_packed)

    # Standalone module: return PyTorch layout. When chaining layers, keep the
    # NHWC, 128-padded-channel form to stay lane-dense (skip the slice/transpose).
    out = out.reshape(B, OH, OW, ocp)[..., :oc]
    return jnp.transpose(out, (0, 3, 1, 2))


# ----------------------------------------------------------------------------
# Pure-JAX reference (same bf16-quantized folded operands as the kernel)
# ----------------------------------------------------------------------------
def _reference(x_nchw, w_packed, b_packed, *, kh, kw, oc, stride, padding):
    cin = w_packed.shape[1]
    w = w_packed.astype(jnp.float32)[:, :, :oc].reshape(kh, kw, cin, oc)
    w = jnp.transpose(w, (3, 2, 0, 1))                        # OIHW
    xq = x_nchw.astype(jnp.bfloat16).astype(jnp.float32)
    y = lax.conv_general_dilated(
        xq, w, window_strides=(stride, stride),
        padding=((padding, padding), (padding, padding)),
        dimension_numbers=("NCHW", "OIHW", "NCHW"),
        preferred_element_type=jnp.float32)
    y = y + b_packed[0, :oc][None, :, None, None]
    return jnp.maximum(y, 0.0)


if __name__ == "__main__":
    key = jax.random.PRNGKey(0)

    def make_raw(k, cin, cout, ksz):
        kw_, kg, kb, km, kv = jax.random.split(k, 5)
        return dict(
            w=jax.random.normal(kw_, (cout, cin, ksz, ksz), jnp.float32)
              / np.sqrt(cin * ksz * ksz),
            gamma=jax.random.uniform(kg, (cout,), jnp.float32, 0.5, 1.5),
            beta=0.1 * jax.random.normal(kb, (cout,), jnp.float32),
            mean=0.1 * jax.random.normal(km, (cout,), jnp.float32),
            var=jax.random.uniform(kv, (cout,), jnp.float32, 0.5, 1.5),
        )

    configs = [
        # BasicConv2d(4, 128, kernel_size=3, stride=1, padding=1)
        dict(cin=4, cout=128, k=3, stride=1, padding=1, xshape=(2, 4, 16, 16)),
        # BasicConv2d(1, 64, kernel_size=7, stride=2, padding=3)  (GoogLeNet conv1 config)
        dict(cin=1, cout=64, k=7, stride=2, padding=3, xshape=(2, 1, 32, 32)),
    ]

    for cfg in configs:
        key, kp, kx = jax.random.split(key, 3)
        raw = make_raw(kp, cfg["cin"], cfg["cout"], cfg["k"])
        packed = prepare_basic_conv2d(raw["w"], raw["gamma"], raw["beta"],
                                      raw["mean"], raw["var"])
        x = jax.random.normal(kx, cfg["xshape"], jnp.float32)

        fwd = jax.jit(functools.partial(
            basic_conv2d, kh=cfg["k"], kw=cfg["k"], oc=cfg["cout"],
            stride=cfg["stride"], padding=cfg["padding"]))
        y = jax.block_until_ready(fwd(x, packed["w"], packed["b"]))

        B, _, H, W = cfg["xshape"]
        OH = (H + 2 * cfg["padding"] - cfg["k"]) // cfg["stride"] + 1
        OW = (W + 2 * cfg["padding"] - cfg["k"]) // cfg["stride"] + 1
        assert y.shape == (B, cfg["cout"], OH, OW), y.shape
        assert bool(jnp.all(jnp.isfinite(y)))

        y_ref = _reference(x, packed["w"], packed["b"], kh=cfg["k"], kw=cfg["k"],
                           oc=cfg["cout"], stride=cfg["stride"],
                           padding=cfg["padding"])
        np.testing.assert_allclose(np.asarray(y), np.asarray(y_ref),
                                   rtol=1e-3, atol=1e-3)

    print("KERNEL_OK")
</pallas_src>

<mosaic_0001>
module attributes {stable_mosaic.version = 11 : i64} {
  func.func @_conv_bn_relu_kernel(%arg0: i32, %arg1: i32, %arg2: memref<1x1x1x18x18x4xbf16, #tpu.memory_space<vmem>>, %arg3: memref<9x4x128xbf16, #tpu.memory_space<vmem>>, %arg4: memref<1x128xf32, #tpu.memory_space<vmem>>, %arg5: memref<1x256x128xf32, #tpu.memory_space<vmem>>) attributes {dimension_semantics = [#tpu.dimension_semantics<parallel>, #tpu.dimension_semantics<parallel>], iteration_bounds = array<i64: 2, 1>, scalar_prefetch = 0 : i64, scratch_operands = 0 : i64, tpu.core_type = #tpu.core_type<tc>, window_params = [{transform_indices = @transform_0, window_bounds = array<i64: 1, 1, 1, 18, 18, 4>}, {transform_indices = @transform_1, window_bounds = array<i64: 9, 4, 128>}, {transform_indices = @transform_2, window_bounds = array<i64: 1, 128>}, {transform_indices = @transform_3, window_bounds = array<i64: 1, 256, 128>}]} {
    %cst = arith.constant 0.000000e+00 : f32
    %0 = vector.broadcast %cst : f32 to vector<256x128xf32>
    %c0 = arith.constant 0 : index
    %c0_0 = arith.constant 0 : index
    %c0_1 = arith.constant 0 : index
    %c0_2 = arith.constant 0 : index
    %c0_3 = arith.constant 0 : index
    %c0_4 = arith.constant 0 : index
    %1 = vector.load %arg2[%c0, %c0_0, %c0_1, %c0_2, %c0_3, %c0_4] : memref<1x1x1x18x18x4xbf16, #tpu.memory_space<vmem>>, vector<1x1x1x16x16x4xbf16>
    %2 = vector.shape_cast %1 : vector<1x1x1x16x16x4xbf16> to vector<16x16x4xbf16>
    %3 = vector.shape_cast %2 : vector<16x16x4xbf16> to vector<256x4xbf16>
    %c0_5 = arith.constant 0 : index
    %c0_6 = arith.constant 0 : index
    %c0_7 = arith.constant 0 : index
    %4 = vector.load %arg3[%c0_5, %c0_6, %c0_7] : memref<9x4x128xbf16, #tpu.memory_space<vmem>>, vector<1x4x128xbf16>
    %5 = vector.shape_cast %4 : vector<1x4x128xbf16> to vector<4x128xbf16>
    %cst_8 = arith.constant dense<0.000000e+00> : vector<256x128xf32>
    %6 = tpu.matmul %3, %5, %cst_8 {dimension_numbers = #tpu.dot_dimension_numbers<[1], [0], [0], [1], [0, 0, 1, 1], [], []>} : vector<256x4xbf16>, vector<4x128xbf16>, vector<256x128xf32> -> vector<256x128xf32>
    %7 = arith.addf %0, %6 : vector<256x128xf32>
    %c0_9 = arith.constant 0 : index
    %c0_10 = arith.constant 0 : index
    %c0_11 = arith.constant 0 : index
    %c0_12 = arith.constant 0 : index
    %c1 = arith.constant 1 : index
    %c0_13 = arith.constant 0 : index
    %8 = vector.load %arg2[%c0_9, %c0_10, %c0_11, %c0_12, %c1, %c0_13] : memref<1x1x1x18x18x4xbf16, #tpu.memory_space<vmem>>, vector<1x1x1x16x16x4xbf16>
    %9 = vector.shape_cast %8 : vector<1x1x1x16x16x4xbf16> to vector<16x16x4xbf16>
    %10 = vector.shape_cast %9 : vector<16x16x4xbf16> to vector<256x4xbf16>
    %c1_14 = arith.constant 1 : index
    %c0_15 = arith.constant 0 : index
    %c0_16 = arith.constant 0 : index
    %11 = vector.load %arg3[%c1_14, %c0_15, %c0_16] : memref<9x4x128xbf16, #tpu.memory_space<vmem>>, vector<1x4x128xbf16>
    %12 = vector.shape_cast %11 : vector<1x4x128xbf16> to vector<4x128xbf16>
    %cst_17 = arith.constant dense<0.000000e+00> : vector<256x128xf32>
    %13 = tpu.matmul %10, %12, %cst_17 {dimension_numbers = #tpu.dot_dimension_numbers<[1], [0], [0], [1], [0, 0, 1, 1], [], []>} : vector<256x4xbf16>, vector<4x128xbf16>, vector<256x128xf32> -> vector<256x128xf32>
    %14 = arith.addf %7, %13 : vector<256x128xf32>
    %c0_18 = arith.constant 0 : index
    %c0_19 = arith.constant 0 : index
    %c0_20 = arith.constant 0 : index
    %c0_21 = arith.constant 0 : index
    %c2 = arith.constant 2 : index
    %c0_22 = arith.constant 0 : index
    %15 = vector.load %arg2[%c0_18, %c0_19, %c0_20, %c0_21, %c2, %c0_22] : memref<1x1x1x18x18x4xbf16, #tpu.memory_space<vmem>>, vector<1x1x1x16x16x4xbf16>
    %16 = vector.shape_cast %15 : vector<1x1x1x16x16x4xbf16> to vector<16x16x4xbf16>
    %17 = vector.shape_cast %16 : vector<16x16x4xbf16> to vector<256x4xbf16>
    %c2_23 = arith.constant 2 : index
    %c0_24 = arith.constant 0 : index
    %c0_25 = arith.constant 0 : index
    %18 = vector.load %arg3[%c2_23, %c0_24, %c0_25] : memref<9x4x128xbf16, #tpu.memory_space<vmem>>, vector<1x4x128xbf16>
    %19 = vector.shape_cast %18 : vector<1x4x128xbf16> to vector<4x128xbf16>
    %cst_26 = arith.constant dense<0.000000e+00> : vector<256x128xf32>
    %20 = tpu.matmul %17, %19, %cst_26 {dimension_numbers = #tpu.dot_dimension_numbers<[1], [0], [0], [1], [0, 0, 1, 1], [], []>} : vector<256x4xbf16>, vector<4x128xbf16>, vector<256x128xf32> -> vector<256x128xf32>
    %21 = arith.addf %14, %20 : vector<256x128xf32>
    %c0_27 = arith.constant 0 : index
    %c0_28 = arith.constant 0 : index
    %c0_29 = arith.constant 0 : index
    %c1_30 = arith.constant 1 : index
    %c0_31 = arith.constant 0 : index
    %c0_32 = arith.constant 0 : index
    %22 = vector.load %arg2[%c0_27, %c0_28, %c0_29, %c1_30, %c0_31, %c0_32] : memref<1x1x1x18x18x4xbf16, #tpu.memory_space<vmem>>, vector<1x1x1x16x16x4xbf16>
    %23 = vector.shape_cast %22 : vector<1x1x1x16x16x4xbf16> to vector<16x16x4xbf16>
    %24 = vector.shape_cast %23 : vector<16x16x4xbf16> to vector<256x4xbf16>
    %c3 = arith.constant 3 : index
    %c0_33 = arith.constant 0 : index
    %c0_34 = arith.constant 0 : index
    %25 = vector.load %arg3[%c3, %c0_33, %c0_34] : memref<9x4x128xbf16, #tpu.memory_space<vmem>>, vector<1x4x128xbf16>
    %26 = vector.shape_cast %25 : vector<1x4x128xbf16> to vector<4x128xbf16>
    %cst_35 = arith.constant dense<0.000000e+00> : vector<256x128xf32>
    %27 = tpu.matmul %24, %26, %cst_35 {dimension_numbers = #tpu.dot_dimension_numbers<[1], [0], [0], [1], [0, 0, 1, 1], [], []>} : vector<256x4xbf16>, vector<4x128xbf16>, vector<256x128xf32> -> vector<256x128xf32>
    %28 = arith.addf %21, %27 : vector<256x128xf32>
    %c0_36 = arith.constant 0 : index
    %c0_37 = arith.constant 0 : index
    %c0_38 = arith.constant 0 : index
    %c1_39 = arith.constant 1 : index
    %c1_40 = arith.constant 1 : index
    %c0_41 = arith.constant 0 : index
    %29 = vector.load %arg2[%c0_36, %c0_37, %c0_38, %c1_39, %c1_40, %c0_41] : memref<1x1x1x18x18x4xbf16, #tpu.memory_space<vmem>>, vector<1x1x1x16x16x4xbf16>
    %30 = vector.shape_cast %29 : vector<1x1x1x16x16x4xbf16> to vector<16x16x4xbf16>
    %31 = vector.shape_cast %30 : vector<16x16x4xbf16> to vector<256x4xbf16>
    %c4 = arith.constant 4 : index
    %c0_42 = arith.constant 0 : index
    %c0_43 = arith.constant 0 : index
    %32 = vector.load %arg3[%c4, %c0_42, %c0_43] : memref<9x4x128xbf16, #tpu.memory_space<vmem>>, vector<1x4x128xbf16>
    %33 = vector.shape_cast %32 : vector<1x4x128xbf16> to vector<4x128xbf16>
    %cst_44 = arith.constant dense<0.000000e+00> : vector<256x128xf32>
    %34 = tpu.matmul %31, %33, %cst_44 {dimension_numbers = #tpu.dot_dimension_numbers<[1], [0], [0], [1], [0, 0, 1, 1], [], []>} : vector<256x4xbf16>, vector<4x128xbf16>, vector<256x128xf32> -> vector<256x128xf32>
    %35 = arith.addf %28, %34 : vector<256x128xf32>
    %c0_45 = arith.constant 0 : index
    %c0_46 = arith.constant 0 : index
    %c0_47 = arith.constant 0 : index
    %c1_48 = arith.constant 1 : index
    %c2_49 = arith.constant 2 : index
    %c0_50 = arith.constant 0 : index
    %36 = vector.load %arg2[%c0_45, %c0_46, %c0_47, %c1_48, %c2_49, %c0_50] : memref<1x1x1x18x18x4xbf16, #tpu.memory_space<vmem>>, vector<1x1x1x16x16x4xbf16>
    %37 = vector.shape_cast %36 : vector<1x1x1x16x16x4xbf16> to vector<16x16x4xbf16>
    %38 = vector.shape_cast %37 : vector<16x16x4xbf16> to vector<256x4xbf16>
    %c5 = arith.constant 5 : index
    %c0_51 = arith.constant 0 : index
    %c0_52 = arith.constant 0 : index
    %39 = vector.load %arg3[%c5, %c0_51, %c0_52] : memref<9x4x128xbf16, #tpu.memory_space<vmem>>, vector<1x4x128xbf16>
    %40 = vector.shape_cast %39 : vector<1x4x128xbf16> to vector<4x128xbf16>
    %cst_53 = arith.constant dense<0.000000e+00> : vector<256x128xf32>
    %41 = tpu.matmul %38, %40, %cst_53 {dimension_numbers = #tpu.dot_dimension_numbers<[1], [0], [0], [1], [0, 0, 1, 1], [], []>} : vector<256x4xbf16>, vector<4x128xbf16>, vector<256x128xf32> -> vector<256x128xf32>
    %42 = arith.addf %35, %41 : vector<256x128xf32>
    %c0_54 = arith.constant 0 : index
    %c0_55 = arith.constant 0 : index
    %c0_56 = arith.constant 0 : index
    %c2_57 = arith.constant 2 : index
    %c0_58 = arith.constant 0 : index
    %c0_59 = arith.constant 0 : index
    %43 = vector.load %arg2[%c0_54, %c0_55, %c0_56, %c2_57, %c0_58, %c0_59] : memref<1x1x1x18x18x4xbf16, #tpu.memory_space<vmem>>, vector<1x1x1x16x16x4xbf16>
    %44 = vector.shape_cast %43 : vector<1x1x1x16x16x4xbf16> to vector<16x16x4xbf16>
    %45 = vector.shape_cast %44 : vector<16x16x4xbf16> to vector<256x4xbf16>
    %c6 = arith.constant 6 : index
    %c0_60 = arith.constant 0 : index
    %c0_61 = arith.constant 0 : index
    %46 = vector.load %arg3[%c6, %c0_60, %c0_61] : memref<9x4x128xbf16, #tpu.memory_space<vmem>>, vector<1x4x128xbf16>
    %47 = vector.shape_cast %46 : vector<1x4x128xbf16> to vector<4x128xbf16>
    %cst_62 = arith.constant dense<0.000000e+00> : vector<256x128xf32>
    %48 = tpu.matmul %45, %47, %cst_62 {dimension_numbers = #tpu.dot_dimension_numbers<[1], [0], [0], [1], [0, 0, 1, 1], [], []>} : vector<256x4xbf16>, vector<4x128xbf16>, vector<256x128xf32> -> vector<256x128xf32>
    %49 = arith.addf %42, %48 : vector<256x128xf32>
    %c0_63 = arith.constant 0 : index
    %c0_64 = arith.constant 0 : index
    %c0_65 = arith.constant 0 : index
    %c2_66 = arith.constant 2 : index
    %c1_67 = arith.constant 1 : index
    %c0_68 = arith.constant 0 : index
    %50 = vector.load %arg2[%c0_63, %c0_64, %c0_65, %c2_66, %c1_67, %c0_68] : memref<1x1x1x18x18x4xbf16, #tpu.memory_space<vmem>>, vector<1x1x1x16x16x4xbf16>
    %51 = vector.shape_cast %50 : vector<1x1x1x16x16x4xbf16> to vector<16x16x4xbf16>
    %52 = vector.shape_cast %51 : vector<16x16x4xbf16> to vector<256x4xbf16>
    %c7 = arith.constant 7 : index
    %c0_69 = arith.constant 0 : index
    %c0_70 = arith.constant 0 : index
    %53 = vector.load %arg3[%c7, %c0_69, %c0_70] : memref<9x4x128xbf16, #tpu.memory_space<vmem>>, vector<1x4x128xbf16>
    %54 = vector.shape_cast %53 : vector<1x4x128xbf16> to vector<4x128xbf16>
    %cst_71 = arith.constant dense<0.000000e+00> : vector<256x128xf32>
    %55 = tpu.matmul %52, %54, %cst_71 {dimension_numbers = #tpu.dot_dimension_numbers<[1], [0], [0], [1], [0, 0, 1, 1], [], []>} : vector<256x4xbf16>, vector<4x128xbf16>, vector<256x128xf32> -> vector<256x128xf32>
    %56 = arith.addf %49, %55 : vector<256x128xf32>
    %c0_72 = arith.constant 0 : index
    %c0_73 = arith.constant 0 : index
    %c0_74 = arith.constant 0 : index
    %c2_75 = arith.constant 2 : index
    %c2_76 = arith.constant 2 : index
    %c0_77 = arith.constant 0 : index
    %57 = vector.load %arg2[%c0_72, %c0_73, %c0_74, %c2_75, %c2_76, %c0_77] : memref<1x1x1x18x18x4xbf16, #tpu.memory_space<vmem>>, vector<1x1x1x16x16x4xbf16>
    %58 = vector.shape_cast %57 : vector<1x1x1x16x16x4xbf16> to vector<16x16x4xbf16>
    %59 = vector.shape_cast %58 : vector<16x16x4xbf16> to vector<256x4xbf16>
    %c8 = arith.constant 8 : index
    %c0_78 = arith.constant 0 : index
    %c0_79 = arith.constant 0 : index
    %60 = vector.load %arg3[%c8, %c0_78, %c0_79] : memref<9x4x128xbf16, #tpu.memory_space<vmem>>, vector<1x4x128xbf16>
    %61 = vector.shape_cast %60 : vector<1x4x128xbf16> to vector<4x128xbf16>
    %cst_80 = arith.constant dense<0.000000e+00> : vector<256x128xf32>
    %62 = tpu.matmul %59, %61, %cst_80 {dimension_numbers = #tpu.dot_dimension_numbers<[1], [0], [0], [1], [0, 0, 1, 1], [], []>} : vector<256x4xbf16>, vector<4x128xbf16>, vector<256x128xf32> -> vector<256x128xf32>
    %63 = arith.addf %56, %62 : vector<256x128xf32>
    %c0_81 = arith.constant 0 : index
    %c0_82 = arith.constant 0 : index
    %64 = vector.load %arg4[%c0_81, %c0_82] : memref<1x128xf32, #tpu.memory_space<vmem>>, vector<1x128xf32>
    %65 = vector.broadcast %64 : vector<1x128xf32> to vector<256x128xf32>
    %66 = arith.addf %63, %65 : vector<256x128xf32>
    %cst_83 = arith.constant 0.000000e+00 : f32
    %67 = vector.broadcast %cst_83 : f32 to vector<256x128xf32>
    %68 = arith.maximumf %66, %67 : vector<256x128xf32>
    %c0_84 = arith.constant 0 : index
    %c0_85 = arith.constant 0 : index
    %c0_86 = arith.constant 0 : index
    %69 = vector.load %arg5[%c0_84, %c0_85, %c0_86] : memref<1x256x128xf32, #tpu.memory_space<vmem>>, vector<1x256x128xf32>
    %70 = vector.shape_cast %69 : vector<1x256x128xf32> to vector<256x128xf32>
    %71 = vector.shape_cast %68 : vector<256x128xf32> to vector<1x256x128xf32>
    tpu.vector_store %arg5[%c0_84, %c0_85, %c0_86], %71 {strides = array<i32>} : memref<1x256x128xf32, #tpu.memory_space<vmem>>, vector<1x256x128xf32>,
    return
  }
  func.func @transform_0(%arg0: i32, %arg1: i32) -> (i32, i32, i32, i32, i32, i32) {
    %c0_i32 = arith.constant 0 : i32
    %c0_i32_0 = arith.constant 0 : i32
    %c0_i32_1 = arith.constant 0 : i32
    %c0_i32_2 = arith.constant 0 : i32
    %c0_i32_3 = arith.constant 0 : i32
    %c0_i32_4 = arith.constant 0 : i32
    return %c0_i32, %c0_i32_0, %arg0, %c0_i32_1, %c0_i32_2, %c0_i32_3 : i32, i32, i32, i32, i32, i32
  }
  func.func @transform_1(%arg0: i32, %arg1: i32) -> (i32, i32, i32) {
    %c0_i32 = arith.constant 0 : i32
    %c0_i32_0 = arith.constant 0 : i32
    %c0_i32_1 = arith.constant 0 : i32
    return %c0_i32, %c0_i32_0, %arg1 : i32, i32, i32
  }
  func.func @transform_2(%arg0: i32, %arg1: i32) -> (i32, i32) {
    %c0_i32 = arith.constant 0 : i32
    %c0_i32_0 = arith.constant 0 : i32
    return %c0_i32, %arg1 : i32, i32
  }
  func.func @transform_3(%arg0: i32, %arg1: i32) -> (i32, i32, i32) {
    %c0_i32 = arith.constant 0 : i32
    %c0_i32_0 = arith.constant 0 : i32
    return %arg0, %c0_i32, %arg1 : i32, i32, i32
  }
}

</mosaic_0001>

<bundles_post_ra>
// kernel: basic_conv2d.1
= control target key start
LH: loop header
LB: loop body
LE: loop exit
PB: predicated region body
PF: predicated region fallthrough
CT: control target
= control target key end

     0   :  { %8 = vsyncpa [#allocation3], 0  ;;  %s8436_s0 = inlined_call_operand.vmem [shape: bf16[1,1,2,18,18,4], index: 0, kind: input, shape index: {}]   ;;  %s8437_s1 = inlined_call_operand.vmem [shape: bf16[9,4,128], index: 1, kind: input, shape index: {}]   ;;  %s8438_s2 = inlined_call_operand.vmem [shape: f32[1,128], index: 2, kind: input, shape index: {}]   ;;  %s8439_s3 = inlined_call_operand.hbm [shape: f32[2,256,128], index: 3, kind: output, shape index: {}]  }
   0x1   :  { %10 = vsyncpa [#allocation3 + $0x1], 0  ;;  %s6536_s12 = smov 0   ;;  %s6538_s13 = smov 0  }
   0x2   :  { %s6540_s14 = smov 0   ;;  %s6542_s15 = smov 0  }
   0x3   :  { %s6544_s16 = smov 0   ;;  %s6546_s17 = smov 0  }
   0x4 LB: > { %s4991_s18 = sadd.s32 4294967295, %s6511_s17   ;;  %s4992_s19 = sadd.s32 4294967294, %s6511_s17   ;;  %s6511_s17 = sphi %s6546_s17, %s16_s17   ;;  %s6507_s16 = sphi %s6544_s16, %s8513_s16   ;;  %s6503_s15 = sphi %s6542_s15, %s8512_s15   ;;  %s6499_s14 = sphi %s6540_s14, %s8511_s14   ;;  %s6495_s13 = sphi %s6538_s13, %s8510_s13   ;;  %s6491_s12 = sphi %s6536_s12, %s8509_s12  }
   0x5   : > { %s28_s20 = sadd.s32 1, %s6507_s16  ;;  %s115_s21 = sadd.s32 1, %s6499_s14 }
   0x6   : > { %p30_p0 = scmp.ge.s32.totalorder %s28_s20, 2  ;;  %p125_p1 = scmp.ne.s32.totalorder %s6499_s14, %s6495_s13 }
   0x7   : > { %p126_p2 = scmp.eq.s32.totalorder %s4991_s18, 1  ;;  %p131_p3 = scmp.ne.s32.totalorder %s6495_s13, %s6491_s12 }
   0x8   : > { %s8515_s20 = smov (%p30_p0, %s28_s20), 0  ;;  %p132_p5 = scmp.eq.s32.totalorder %s4992_s19, 1 }
   0x9   : > { %p6576_p4 = por %p126_p2, %p125_p1  ;;  %s110_s23 = ssub.s32 %s6507_s16, %s8515_s20 }
   0xa   : > { %p4997_p6 = scmp.ge.s32.totalorder %s6511_s17, 1  ;;  %p113_p7 = scmp.eq.s32.totalorder %s110_s23, 0 }
   0xb   : > { %p6583_p8 = por %p132_p5, %p131_p3  ;;  %p171_p9 = scmp.lt.s32.totalorder %s6511_s17, 3 }
   0xc   : > { %s6589_s25 = scalar_select %p113_p7, %s6499_s14, %s115_s21  }
   0xd   : > { %p172_p10 = pnand %p4997_p6, %p171_p9 }
   0xf   : > { %175 = sbr.rel (%p172_p10) target bundleno = 611 (0x263), region = 32 }
  0x16   : > { %v5000_v0 = vld [vmem:[%s8437_s1 + $0x2] sm:$0x3]  ;;  %vm750_vm0 = vcmask 1041408   ;;  %v5227_v1 = vld [vmem:[%s8437_s1 + $0x8] sm:$0x3]  ;;  %p202_p11 = scmp.lt.s32.totalorder %s6503_s15, 1 }
  0x17   : > { %6260 = vmatprep.subr.msk.bf16.mxu1 %vm750_vm0, %v5000_v0  ;;  %6264 = vmatprep.subr.msk.bf16.mxu0 %vm750_vm0, %v5227_v1  ;;  %v752_v2 = vsel %vm750_vm0, %v5000_v0, 0  ;;  %v6602_v3 = vsel %vm750_vm0, %v5227_v1, 0  ;;  %v247_v4 = vld [vmem:[%s8437_s1] sm:$0x3]  ;;  %v5292_v5 = vld [vmem:[%s8437_s1 + $0xa] sm:$0x3] }
  0x18   : > { %8455 = vst [vmem:[#allocation5_spill] sm:$0xff] %v6602_v3  ;;  %5697 = vmatpush3.bf16.msra.mxu1 %v752_v2  ;;  %5833 = vmatpush3.bf16.msra.mxu0 %v6602_v3  ;;  %s203_s30 = scalar_select %p202_p11, %s6503_s15, 1  ;;  %vm264_vm1 = vsmask.f32 3328  ;;  %vm265_vm2 = vsmask.f32 7440 }
  0x19   : > { %6261 = vmatprep.subr.msk.bf16.mxu1 %vm750_vm0, %v247_v4  ;;  %6266 = vmatprep.subr.msk.bf16.mxu0 %vm750_vm0, %v5292_v5  ;;  %vm701_vm3 = vcmask 31744   ;;  %v6630_v17 = vsel %vm750_vm0, %v247_v4, 0  ;;  %v6636_v26 = vld [vmem:[%s8437_s1 + $0xc] sm:$0x3]  ;;  %vm6643_vm4 = vmor %vm264_vm1, %vm265_vm2  ;;  %v6649_v37 = vsel %vm750_vm0, %v5292_v5, 0  ;;  %vm1255_vm5 = vcmask 1042432  }
  0x1a   : > { %s6270_s8 = smul.u32 216, %s203_s30  ;;  %v6653_v41 = vsel %vm750_vm0, %v6636_v26, 0  ;;  %vm1256_vm6 = vcmask 1046532   ;;  %s199_s9 = sand.u32 1, %s6495_s13  }
  0x1b   : > { %vm6869_vm7 = vmor %vm1255_vm5, %vm1256_vm6  ;;  %s4998_s18 = sshll.u32 %s199_s9, 8  ;;  %s5542_s21 = sshll.u32 %s6503_s15, 12 }
  0x1c   : > { %s6617_s11 = scalar_lea.vmem %s8436_s0, %s6270_s8  ;;  %s8313_s19 = scalar_lea.vmem [#allocation2], %s4998_s18 }
  0x1d   : > { %v215_v6 = vld [vmem:[%s6617_s11] sm:$0xf]  ;;  %v216_v7 = vld [vmem:[%s6617_s11 + $0x4] sm:$0xf]  ;;  %v248_v8 = vld [vmem:[%s6617_s11 + $0x8] sm:$0x1]  ;;  %s8381_s28 = scalar_lea.hbm %s8439_s3, %s5542_s21 }
  0x1e   : > { %v268_v9 = vshrl.u32 %v215_v6, 16  ;;  %v271_v10 = vshll.u32 %v215_v6, 16  ;;  %v277_v11 = vshll.u32 %v216_v7, 16  ;;  %v281_v12 = vshrl.u32 %v216_v7, 16  ;;  %v5179_v13 = vld [vmem:[%s6617_s11 + $0xc] sm:$0xf] }
  0x1f   : > { %v287_v14 = vshll.u32 %v248_v8, 16  ;;  %v6624_v15 = vld [vmem:[%s6617_s11 + $0x10] sm:$0xf]  ;;  %v6627_v16 = vld [vmem:[%s6617_s11 + $0x14] sm:$0x1]  ;;  %v2072_v23 = vshrl.u32 %v5179_v13, 16 }
  0x20   : > { %v270_v18 = vrot.slane %v268_v9, 4  ;;  %v273_v19 = vrot.slane %v271_v10, 5  ;;  %v279_v20 = vrot.slane %v277_v11, 5  ;;  %v283_v21 = vrot.slane %v281_v12, 4  ;;  %v217_v31 = vld [vmem:[%s6617_s11 + $0xc] sm:$0xf] }
  0x21   : > { %v289_v22 = vrot.slane %v287_v14, 5  ;;  %v2075_v24 = vshll.u32 %v5179_v13, 16  ;;  %v2081_v25 = vshll.u32 %v6624_v15, 16  ;;  %v2085_v29 = vshrl.u32 %v6624_v15, 16  ;;  %v218_v36 = vld [vmem:[%s6617_s11 + $0x10] sm:$0xf] }
  0x22   : > { %v274_v27 = vor.u32 %v273_v19, %v270_v18  ;;  %v284_v28 = vor.u32 %v283_v21, %v279_v20  ;;  %v2091_v30 = vshll.u32 %v6627_v16, 16  ;;  %v2074_v33 = vrot.slane %v2072_v23, 4  ;;  %v249_v44 = vld [vmem:[%s6617_s11 + $0x14] sm:$0x1]  ;;  %v5182_v55 = vld [vmem:[%s6617_s11 + $0x18] sm:$0xf] }
  0x23   : > { %v2077_v34 = vrot.slane %v2075_v24, 5  ;;  %v2083_v35 = vrot.slane %v2081_v25, 5  ;;  %v2087_v40 = vrot.slane %v2085_v29, 4  ;;  %v292_v45 = vshrl.u32 %v217_v31, 16  ;;  %v6662_v60 = vld [vmem:[%s6617_s11 + $0x1c] sm:$0xf] }
  0x24   : > { %v275_v38 = vrot.slane %v274_v27, 4  ;;  %v285_v39 = vrot.slane %v284_v28, 4  ;;  %v2093_v43 = vrot.slane %v2091_v30, 5  ;;  %v295_v46 = vshll.u32 %v217_v31, 16  ;;  %v6670_v1 = vld [vmem:[%s6617_s11 + $0x20] sm:$0x1] }
  0x25   : > { %v2078_v42 = vor.u32 %v2077_v34, %v2074_v33  ;;  %v2088_v49 = vor.u32 %v2087_v40, %v2083_v35  ;;  %v301_v50 = vshll.u32 %v218_v36, 16  ;;  %v294_v53 = vrot.slane %v292_v45, 4  ;;  %v219_v18 = vld [vmem:[%s6617_s11 + $0x18] sm:$0xf]  ;;  %v220_v23 = vld [vmem:[%s6617_s11 + $0x1c] sm:$0xf] }
  0x26   : > { %v280_v47 = vsel %vm6643_vm4, %v275_v38, %v279_v20  ;;  %v290_v48 = vsel %vm6643_vm4, %v285_v39, %v289_v22  ;;  %v297_v54 = vrot.slane %v295_v46, 5  ;;  %v305_v58 = vshrl.u32 %v218_v36, 16  ;;  %v250_v31 = vld [vmem:[%s6617_s11 + $0x20] sm:$0x1]  ;;  %v5185_v40 = vld [vmem:[%s6617_s11 + $0x24] sm:$0xf] }
  0x27   : > { %v5001_v51 = vcombine.low %v280_v47, %v290_v48  ;;  %v2079_v52 = vrot.slane %v2078_v42, 4  ;;  %v2089_v56 = vrot.slane %v2088_v49, 4  ;;  %v303_v57 = vrot.slane %v301_v50, 5  ;;  %v6693_v46 = vld [vmem:[%s6617_s11 + $0x28] sm:$0xf]  ;;  %s4892_s23 = sshll.u32 %s8313_s19, 4  ;;  %s8383_s23 = int_to_ptr.vmem [resolvable:$true] %s4892_s23 }
  0x28   : > { %v311_v59 = vshll.u32 %v249_v44, 16  ;;  %v2815_v62 = vrot.slane %v6624_v15, 5  ;;  %v2818_v63 = vrot.slane %v6627_v16, 5  ;;  %v298_v0 = vor.u32 %v297_v54, %v294_v53  ;;  %v6702_v54 = vld [vmem:[%s6617_s11 + $0x2c] sm:$0x1]  ;;  %s8390_s15 = scalar_lea.sflag [#allocation3], %s199_s9 }
  0x29   : > { %5698 = vmatprep.mubr.msk.bf16.mxu1 %vm701_vm3, %v5001_v51  ;;  %v2084_v61 = vsel %vm6643_vm4, %v2079_v52, %v2083_v35  ;;  %v2094_v2 = vsel %vm6643_vm4, %v2089_v56, %v2093_v43  ;;  %v307_v4 = vrot.slane %v305_v58, 4  ;;  %v2096_v6 = vshrl.u32 %v5182_v55, 16  ;;  %v5081_v51 = vld [vmem:[%s8437_s1 + $0x4] sm:$0x3]  ;;  %v6902_v16 = vld [vmem:[%s6617_s11 + $0x7c] sm:$0xf] }
  0x2a   : > { %v313_v5 = vrot.slane %v311_v59, 5  ;;  %v5228_v7 = vcombine.low %v2084_v61, %v2094_v2  ;;  %v299_v8 = vrot.slane %v298_v0, 4  ;;  %v2099_v9 = vshll.u32 %v5182_v55, 16  ;;  %v221_v0 = vld [vmem:[%s6617_s11 + $0x24] sm:$0xf]  ;;  %s6433_s29 = scalar_lea.vmem %s8383_s23, 4096 }
  0x2b   : > { %v2105_v10 = vshll.u32 %v6662_v60, 16  ;;  %v308_v11 = vor.u32 %v307_v4, %v303_v57  ;;  %v2098_v12 = vrot.slane %v2096_v6, 4  ;;  %v2109_v13 = vshrl.u32 %v6662_v60, 16  ;;  %p6434_p12 = scmp.ne.s32.totalorder %s8383_s23, %s6433_s29  ;;  %s6513_s30 = smov [#allocation2]  }
  0x2c   : > { %v2115_v14 = vshll.u32 %v6670_v1, 16  ;;  %5834 = vmatprep.mubr.msk.bf16.mxu0 %vm701_vm3, %v5228_v7  ;;  %v304_v19 = vsel %vm6643_vm4, %v299_v8, %v303_v57  ;;  %v2101_v20 = vrot.slane %v2099_v9, 5  ;;  %v2822_v22 = vrot.slane %v6662_v60, 5  ;;  %v222_v7 = vld [vmem:[%s6617_s11 + $0x28] sm:$0xf]  ;;  %s6437_s4 = sshll.u32 %s6513_s30, 4  ;;  %s6438_s4 = int_to_ptr.vmem [resolvable:$false] %s6437_s4 }
  0x2d   : > { %v2107_v21 = vrot.slane %v2105_v10, 5  ;;  %v309_v24 = vrot.slane %v308_v11, 4  ;;  %v2111_v25 = vrot.slane %v2109_v13, 4  ;;  %v2825_v28 = vrot.slane %v6670_v1, 5  ;;  %v251_v13 = vld [vmem:[%s6617_s11 + $0x2c] sm:$0x1]  ;;  %p6435_p13 = pnand %p6434_p12, %p6576_p4  ;;  %p6440_p1 = scmp.lt.s32.totalorder %s8383_s23, %s6438_s4 }
  0x2e   : > { %v2117_v27 = vrot.slane %v2115_v14, 5  ;;  %v2102_v29 = vor.u32 %v2101_v20, %v2098_v12  ;;  %v6686_v30 = vrot.slane %v2822_v22, 4  ;;  %v316_v33 = vshrl.u32 %v219_v18, 16  ;;  %s6439_s5 = scalar_lea.vmem %s6438_s4, 8192 }
  0x2f   : > { %v319_v34 = vshll.u32 %v219_v18, 16  ;;  %v314_v35 = vsel %vm6643_vm4, %v309_v24, %v313_v5  ;;  %v2112_v36 = vor.u32 %v2111_v25, %v2107_v21  ;;  %v325_v38 = vshll.u32 %v220_v23, 16  ;;  %v5188_v24 = vld [vmem:[%s6617_s11 + $0x30] sm:$0xf]  ;;  %p6436_p0 = pneg %p6435_p13  ;;  %p6441_p2 = scmp.lt.s32.totalorder %s6439_s5, %s6433_s29 }
  0x30   : > { %v329_v39 = vshrl.u32 %v220_v23, 16  ;;  %v5002_v42 = vcombine.low %v304_v19, %v314_v35  ;;  %v2103_v43 = vrot.slane %v2102_v29, 4  ;;  %v318_v44 = vrot.slane %v316_v33, 4  ;;  %v6722_v33 = vld [vmem:[%s6617_s11 + $0x34] sm:$0xf] }
  0x31   : > { %v321_v45 = vrot.slane %v319_v34, 5  ;;  %v2113_v47 = vrot.slane %v2112_v36, 4  ;;  %v327_v48 = vrot.slane %v325_v38, 5  ;;  %v335_v50 = vshll.u32 %v250_v31, 16  ;;  %p6442_p3 = por %p6441_p2, %p6440_p1 }
  0x32   : > { %v331_v49 = vrot.slane %v329_v39, 4  ;;  %5699 = vmatmul.mubr.msk.bf16.vlgmr.msra.gmra.mrb[0].mxu1 %vm701_vm3, %v5002_v42  ;;  %v2108_v52 = vsel %vm6643_vm4, %v2103_v43, %v2107_v21  ;;  %v2120_v55 = vshrl.u32 %v5185_v40, 16  ;;  %v2123_v56 = vshll.u32 %v5185_v40, 16  ;;  %v6730_v40 = vld [vmem:[%s6617_s11 + $0x38] sm:$0x1] }
  0x33   : > { %v322_v53 = vor.u32 %v321_v45, %v318_v44  ;;  %5731 = vmatpush3.bf16.msra.mxu1 %v6630_v17  ;;  %v2118_v57 = vsel %vm6643_vm4, %v2113_v47, %v2117_v27  ;;  %v337_v59 = vrot.slane %v335_v50, 5  ;;  %v2129_v61 = vshll.u32 %v6693_v46, 16  ;;  %p6443_p5 = pnand %p6442_p3, %p6436_p0 }
  0x34   : > { %v332_v58 = vor.u32 %v331_v49, %v327_v48  ;;  %v5229_v2 = vcombine.low %v2108_v52, %v2118_v57  ;;  %v2122_v5 = vrot.slane %v2120_v55, 4  ;;  %v2125_v6 = vrot.slane %v2123_v56, 5  ;;  %6262 = vmatprep.subr.msk.bf16.mxu1 %vm750_vm0, %v5081_v51  ;;  %v223_v52 = vld [vmem:[%s6617_s11 + $0x30] sm:$0xf] }
  0x35   : > { %v323_v4 = vrot.slane %v322_v53, 4  ;;  %v2131_v9 = vrot.slane %v2129_v61, 5  ;;  %v2133_v17 = vshrl.u32 %v6693_v46, 16  ;;  %v2139_v10 = vshll.u32 %v6702_v54, 16 }
  0x36   : > { %v333_v8 = vrot.slane %v332_v58, 4  ;;  %5835 = vmatmul.mubr.msk.bf16.vlgmr.msra.gmra.mrb[0].mxu0 %vm701_vm3, %v5229_v2  ;;  %v2126_v12 = vor.u32 %v2125_v6, %v2122_v5  ;;  %v340_v14 = vshrl.u32 %v221_v0, 16  ;;  %v343_v18 = vshll.u32 %v221_v0, 16  ;;  %v224_v58 = vld [vmem:[%s6617_s11 + $0x34] sm:$0xf] }
  0x37   : > { %v328_v11 = vsel %vm6643_vm4, %v323_v4, %v327_v48  ;;  %5867 = vmatpush3.bf16.msra.mxu0 %v6649_v37  ;;  %v2135_v20 = vrot.slane %v2133_v17, 4  ;;  %v2141_v21 = vrot.slane %v2139_v10, 5  ;;  %v349_v23 = vshll.u32 %v222_v7, 16  ;;  %v252_v4 = vld [vmem:[%s6617_s11 + $0x38] sm:$0x1] }
  0x38   : > { %v338_v19 = vsel %vm6643_vm4, %v333_v8, %v337_v59  ;;  %v2127_v27 = vrot.slane %v2126_v12, 4  ;;  %v342_v29 = vrot.slane %v340_v14, 4  ;;  %v345_v31 = vrot.slane %v343_v18, 5  ;;  %6267 = vmatprep.subr.msk.bf16.mxu0 %vm750_vm0, %v6636_v26  ;;  %v5191_v12 = vld [vmem:[%s6617_s11 + $0x3c] sm:$0xf] }
  0x39   : > { %v5003_v25 = vcombine.low %v328_v11, %v338_v19  ;;  %v2136_v34 = vor.u32 %v2135_v20, %v2131_v9  ;;  %v351_v35 = vrot.slane %v349_v23, 5  ;;  %v353_v37 = vshrl.u32 %v222_v7, 16  ;;  %v6747_v20 = vld [vmem:[%s6617_s11 + $0x40] sm:$0xf] }
  0x3a   : > { %v359_v36 = vshll.u32 %v251_v13, 16  ;;  %v2132_v38 = vsel %vm6643_vm4, %v2127_v27, %v2131_v9  ;;  %v346_v39 = vor.u32 %v345_v31, %v342_v29  ;;  %v2144_v42 = vshrl.u32 %v5188_v24, 16 }
  0x3b   : > { %5702 = vmatprep.mubr.msk.bf16.mxu1 %vm701_vm3, %v5003_v25  ;;  %v2147_v43 = vshll.u32 %v5188_v24, 16  ;;  %v2137_v44 = vrot.slane %v2136_v34, 4  ;;  %v355_v45 = vrot.slane %v353_v37, 4  ;;  %v2153_v26 = vshll.u32 %v6722_v33, 16  ;;  %v6752_v34 = vld [vmem:[%s6617_s11 + $0x44] sm:$0x1] }
  0x3c   : > { %v361_v47 = vrot.slane %v359_v36, 5  ;;  %v347_v48 = vrot.slane %v346_v39, 4  ;;  %v2146_v49 = vrot.slane %v2144_v42, 4  ;;  %v2157_v51 = vshrl.u32 %v6722_v33, 16  ;;  %v225_v42 = vld [vmem:[%s6617_s11 + $0x3c] sm:$0xf] }
  0x3d   : > { %v2149_v50 = vrot.slane %v2147_v43, 5  ;;  %v2142_v53 = vsel %vm6643_vm4, %v2137_v44, %v2141_v21  ;;  %v356_v55 = vor.u32 %v355_v45, %v351_v35  ;;  %v2155_v56 = vrot.slane %v2153_v26, 5  ;;  %v226_v26 = vld [vmem:[%s6617_s11 + $0x40] sm:$0xf] }
  0x3e   : > { %v2163_v57 = vshll.u32 %v6730_v40, 16  ;;  %v5230_v59 = vcombine.low %v2132_v38, %v2142_v53  ;;  %v352_v61 = vsel %vm6643_vm4, %v347_v48, %v351_v35  ;;  %v2159_v2 = vrot.slane %v2157_v51, 4 }
  0x3f   : > { %v2150_v0 = vor.u32 %v2149_v50, %v2146_v49  ;;  %v357_v5 = vrot.slane %v356_v55, 4  ;;  %v364_v7 = vshrl.u32 %v223_v52, 16  ;;  %v367_v8 = vshll.u32 %v223_v52, 16 }
  0x40   : > { %v2165_v6 = vrot.slane %v2163_v57, 5  ;;  %5838 = vmatprep.mubr.msk.bf16.mxu0 %vm701_vm3, %v5230_v59  ;;  %v2160_v17 = vor.u32 %v2159_v2, %v2155_v56  ;;  %v373_v10 = vshll.u32 %v224_v58, 16  ;;  %v377_v11 = vshrl.u32 %v224_v58, 16  ;;  %v5194_v2 = vld [vmem:[%s6617_s11 + $0x48] sm:$0xf] }
  0x41   : > { %v2151_v9 = vrot.slane %v2150_v0, 4  ;;  %v362_v13 = vsel %vm6643_vm4, %v357_v5, %v361_v47  ;;  %v366_v14 = vrot.slane %v364_v7, 4  ;;  %v369_v18 = vrot.slane %v367_v8, 5  ;;  %v6770_v8 = vld [vmem:[%s6617_s11 + $0x4c] sm:$0xf] }
  0x42   : > { %v383_v19 = vshll.u32 %v252_v4, 16  ;;  %v5004_v21 = vcombine.low %v352_v61, %v362_v13  ;;  %v2161_v24 = vrot.slane %v2160_v17, 4  ;;  %v375_v25 = vrot.slane %v373_v10, 5  ;;  %v253_v61 = vld [vmem:[%s6617_s11 + $0x44] sm:$0x1] }
  0x43   : > { %v2156_v23 = vsel %vm6643_vm4, %v2151_v9, %v2155_v56  ;;  %v370_v27 = vor.u32 %v369_v18, %v366_v14  ;;  %v379_v29 = vrot.slane %v377_v11, 4  ;;  %v2168_v35 = vshrl.u32 %v5191_v12, 16 }
  0x44   : > { %v385_v31 = vrot.slane %v383_v19, 5  ;;  %5703 = vmatmul.mubr.msk.bf16.gmra.mrb[4].mxu1 %vm701_vm3, %v5004_v21  ;;  %v2166_v37 = vsel %vm6643_vm4, %v2161_v24, %v2165_v6  ;;  %v2171_v36 = vshll.u32 %v5191_v12, 16  ;;  %v2177_v38 = vshll.u32 %v6747_v20, 16 }
  0x45   : > { %v2181_v39 = vshrl.u32 %v6747_v20, 16  ;;  %v5231_v43 = vcombine.low %v2156_v23, %v2166_v37  ;;  %v371_v44 = vrot.slane %v370_v27, 4  ;;  %v380_v45 = vor.u32 %v379_v29, %v375_v25  ;;  %v6778_v23 = vld [vmem:[%s6617_s11 + $0x50] sm:$0x1]  ;;  %v6782_v27 = vld [vmem:[%s6617_s11 + $0x48] sm:$0xf] }
  0x46   : > { %v2170_v47 = vrot.slane %v2168_v35, 4  ;;  %v2173_v48 = vrot.slane %v2171_v36, 5  ;;  %v2179_v49 = vrot.slane %v2177_v38, 5  ;;  %v2187_v51 = vshll.u32 %v6752_v34, 16  ;;  %v6785_v36 = vld [vmem:[%s6617_s11 + $0x4c] sm:$0xf] }
  0x47   : > { %v2183_v50 = vrot.slane %v2181_v39, 4  ;;  %5839 = vmatmul.mubr.msk.bf16.gmra.mrb[4].mxu0 %vm701_vm3, %v5231_v43  ;;  %v376_v52 = vsel %vm6643_vm4, %v371_v44, %v375_v25  ;;  %v381_v53 = vrot.slane %v380_v45, 4  ;;  %v388_v55 = vshrl.u32 %v225_v42, 16 }
  0x48   : > { %v391_v56 = vshll.u32 %v225_v42, 16  ;;  %v2174_v57 = vor.u32 %v2173_v48, %v2170_v47  ;;  %v2189_v59 = vrot.slane %v2187_v51, 5  ;;  %v397_v0 = vshll.u32 %v226_v26, 16 }
  0x49   : > { %v2184_v58 = vor.u32 %v2183_v50, %v2179_v49  ;;  %v386_v4 = vsel %vm6643_vm4, %v381_v53, %v385_v31  ;;  %v390_v5 = vrot.slane %v388_v55, 4  ;;  %v401_v7 = vshrl.u32 %v226_v26, 16  ;;  %v254_v26 = vld [vmem:[%s6617_s11 + $0x50] sm:$0x1]  ;;  %v5197_v53 = vld [vmem:[%s6617_s11 + $0x54] sm:$0xf] }
  0x4a   : > { %v393_v6 = vrot.slane %v391_v56, 5  ;;  %v5005_v9 = vcombine.low %v376_v52, %v386_v4  ;;  %v2175_v17 = vrot.slane %v2174_v57, 4  ;;  %v399_v11 = vrot.slane %v397_v0, 5  ;;  %v6801_v4 = vld [vmem:[%s6617_s11 + $0x58] sm:$0xf] }
  0x4b   : > { %v2185_v10 = vrot.slane %v2184_v58, 4  ;;  %v403_v13 = vrot.slane %v401_v7, 4  ;;  %v407_v14 = vshll.u32 %v253_v61, 16  ;;  %v2192_v18 = vshrl.u32 %v5194_v2, 16 }
  0x4c   : > { %v394_v12 = vor.u32 %v393_v6, %v390_v5  ;;  %5706 = vmatprep.mubr.msk.bf16.mxu1 %vm701_vm3, %v5005_v9  ;;  %v2180_v19 = vsel %vm6643_vm4, %v2175_v17, %v2179_v49  ;;  %v2195_v24 = vshll.u32 %v5194_v2, 16  ;;  %v2201_v25 = vshll.u32 %v6770_v8, 16 }
  0x4d   : > { %v2190_v21 = vsel %vm6643_vm4, %v2185_v10, %v2189_v59  ;;  %v404_v35 = vor.u32 %v403_v13, %v399_v11  ;;  %v409_v37 = vrot.slane %v407_v14, 5  ;;  %v2194_v38 = vrot.slane %v2192_v18, 4 }
  0x4e   : > { %v5232_v29 = vcombine.low %v2180_v19, %v2190_v21  ;;  %v395_v31 = vrot.slane %v394_v12, 4  ;;  %v2197_v39 = vrot.slane %v2195_v24, 5  ;;  %v2203_v42 = vrot.slane %v2201_v25, 5  ;;  %v6807_v12 = vld [vmem:[%s6617_s11 + $0x5c] sm:$0x1] }
  0x4f   : > { %v2205_v43 = vshrl.u32 %v6770_v8, 16  ;;  %v405_v45 = vrot.slane %v404_v35, 4  ;;  %v2211_v47 = vshll.u32 %v6778_v23, 16  ;;  %v412_v48 = vshrl.u32 %v6782_v27, 16  ;;  %v6811_v24 = vld [vmem:[%s6617_s11 + $0x54] sm:$0xf] }
  0x50   : > { %5842 = vmatprep.mubr.msk.bf16.mxu0 %vm701_vm3, %v5232_v29  ;;  %v400_v44 = vsel %vm6643_vm4, %v395_v31, %v399_v11  ;;  %v2198_v49 = vor.u32 %v2197_v39, %v2194_v38  ;;  %v415_v51 = vshll.u32 %v6782_v27, 16  ;;  %v421_v52 = vshll.u32 %v6785_v36, 16 }
  0x51   : > { %v2207_v50 = vrot.slane %v2205_v43, 4  ;;  %v410_v55 = vsel %vm6643_vm4, %v405_v45, %v409_v37  ;;  %v2213_v56 = vrot.slane %v2211_v47, 5  ;;  %v414_v57 = vrot.slane %v412_v48, 4  ;;  %v6817_v37 = vld [vmem:[%s6617_s11 + $0x58] sm:$0xf] }
  0x52   : > { %v425_v58 = vshrl.u32 %v6785_v36, 16  ;;  %v5006_v59 = vcombine.low %v400_v44, %v410_v55  ;;  %v2199_v61 = vrot.slane %v2198_v49, 4  ;;  %v417_v2 = vrot.slane %v415_v51, 5 }
  0x53   : > { %v2208_v0 = vor.u32 %v2207_v50, %v2203_v42  ;;  %v423_v5 = vrot.slane %v421_v52, 5  ;;  %v431_v7 = vshll.u32 %v254_v26, 16  ;;  %v2216_v9 = vshrl.u32 %v5197_v53, 16  ;;  %v255_v26 = vld [vmem:[%s6617_s11 + $0x5c] sm:$0x1] }
  0x54   : > { %v427_v6 = vrot.slane %v425_v58, 4  ;;  %5707 = vmatmul.mubr.msk.bf16.gmra.mrb[8].mxu1 %vm701_vm3, %v5006_v59  ;;  %v2204_v17 = vsel %vm6643_vm4, %v2199_v61, %v2203_v42  ;;  %v418_v11 = vor.u32 %v417_v2, %v414_v57  ;;  %v2219_v13 = vshll.u32 %v5197_v53, 16  ;;  %v5200_v53 = vld [vmem:[%s6617_s11 + $0x60] sm:$0xf]  ;;  %v6831_v59 = vld [vmem:[%s6617_s11 + $0x64] sm:$0xf] }
  0x55   : > { %v2209_v10 = vrot.slane %v2208_v0, 4  ;;  %v433_v18 = vrot.slane %v431_v7, 5  ;;  %v2218_v19 = vrot.slane %v2216_v9, 4  ;;  %v2225_v21 = vshll.u32 %v6801_v4, 16  ;;  %v6838_v9 = vld [vmem:[%s6617_s11 + $0x68] sm:$0x1] }
  0x56   : > { %v428_v14 = vor.u32 %v427_v6, %v423_v5  ;;  %v419_v29 = vrot.slane %v418_v11, 4  ;;  %v2221_v31 = vrot.slane %v2219_v13, 5  ;;  %v2229_v35 = vshrl.u32 %v6801_v4, 16 }
  0x57   : > { %v2214_v25 = vsel %vm6643_vm4, %v2209_v10, %v2213_v56  ;;  %v2227_v42 = vrot.slane %v2225_v21, 5  ;;  %v2235_v43 = vshll.u32 %v6807_v12, 16  ;;  %v436_v48 = vshrl.u32 %v6811_v24, 16 }
  0x58   : > { %v5233_v38 = vcombine.low %v2204_v17, %v2214_v25  ;;  %v429_v39 = vrot.slane %v428_v14, 4  ;;  %v424_v44 = vsel %vm6643_vm4, %v419_v29, %v423_v5  ;;  %v2222_v45 = vor.u32 %v2221_v31, %v2218_v19  ;;  %v6842_v19 = vld [vmem:[%s6617_s11 + $0x60] sm:$0xf] }
  0x59   : > { %v2231_v47 = vrot.slane %v2229_v35, 4  ;;  %v2237_v50 = vrot.slane %v2235_v43, 5  ;;  %v439_v51 = vshll.u32 %v6811_v24, 16  ;;  %v445_v52 = vshll.u32 %v6817_v37, 16  ;;  %v6848_v35 = vld [vmem:[%s6617_s11 + $0x64] sm:$0xf] }
  0x5a   : > { %5843 = vmatmul.mubr.msk.bf16.gmra.mrb[8].mxu0 %vm701_vm3, %v5233_v38  ;;  %v434_v49 = vsel %vm6643_vm4, %v429_v39, %v433_v18  ;;  %v2223_v56 = vrot.slane %v2222_v45, 4  ;;  %v438_v58 = vrot.slane %v436_v48, 4  ;;  %v449_v2 = vshrl.u32 %v6817_v37, 16 }
  0x5b   : > { %v5007_v55 = vcombine.low %v424_v44, %v434_v49  ;;  %v2232_v57 = vor.u32 %v2231_v47, %v2227_v42  ;;  %v441_v61 = vrot.slane %v439_v51, 5  ;;  %v447_v0 = vrot.slane %v445_v52, 5 }
  0x5c   : > { %v455_v5 = vshll.u32 %v255_v26, 16  ;;  %v2228_v6 = vsel %vm6643_vm4, %v2223_v56, %v2227_v42  ;;  %v2240_v17 = vshrl.u32 %v5200_v53, 16  ;;  %v2243_v10 = vshll.u32 %v5200_v53, 16 }
  0x5d   : > { %5710 = vmatprep.mubr.msk.bf16.mxu1 %vm701_vm3, %v5007_v55  ;;  %v2233_v7 = vrot.slane %v2232_v57, 4  ;;  %v442_v11 = vor.u32 %v441_v61, %v438_v58  ;;  %v451_v13 = vrot.slane %v449_v2, 4  ;;  %v2249_v18 = vshll.u32 %v6831_v59, 16  ;;  %v5260_v58 = vld [vmem:[%s6617_s11 + $0xc] sm:$0xe] }
  0x5e   : > { %v457_v14 = vrot.slane %v455_v5, 5  ;;  %v2242_v25 = vrot.slane %v2240_v17, 4  ;;  %v2245_v29 = vrot.slane %v2243_v10, 5  ;;  %v2253_v31 = vshrl.u32 %v6831_v59, 16 }
  0x5f   : > { %v2238_v21 = vsel %vm6643_vm4, %v2233_v7, %v2237_v50  ;;  %v443_v39 = vrot.slane %v442_v11, 4  ;;  %v452_v42 = vor.u32 %v451_v13, %v447_v0  ;;  %v2251_v43 = vrot.slane %v2249_v18, 5  ;;  %v256_v50 = vld [vmem:[%s6617_s11 + $0x68] sm:$0x1] }
  0x60   : > { %v5234_v38 = vcombine.low %v2228_v6, %v2238_v21  ;;  %v2246_v44 = vor.u32 %v2245_v29, %v2242_v25  ;;  %v2255_v45 = vrot.slane %v2253_v31, 4  ;;  %v2259_v47 = vshll.u32 %v6838_v9, 16  ;;  %v6876_v29 = vld [vmem:[%s6617_s11 + $0x70] sm:$0xf] }
  0x61   : > { %v460_v26 = vshrl.u32 %v6842_v19, 16  ;;  %v448_v48 = vsel %vm6643_vm4, %v443_v39, %v447_v0  ;;  %v453_v49 = vrot.slane %v452_v42, 4  ;;  %v463_v51 = vshll.u32 %v6842_v19, 16  ;;  %v6863_v0 = vld [vmem:[%s6617_s11 + $0x6c] sm:$0xf] }
  0x62   : > { %5846 = vmatprep.mubr.msk.bf16.mxu0 %vm701_vm3, %v5234_v38  ;;  %v469_v52 = vshll.u32 %v6848_v35, 16  ;;  %v2247_v53 = vrot.slane %v2246_v44, 4  ;;  %v2256_v55 = vor.u32 %v2255_v45, %v2251_v43  ;;  %v2261_v56 = vrot.slane %v2259_v47, 5 }
  0x63   : > { %v462_v57 = vrot.slane %v460_v26, 4  ;;  %v458_v61 = vsel %vm6643_vm4, %v453_v49, %v457_v14  ;;  %v465_v2 = vrot.slane %v463_v51, 5  ;;  %v473_v6 = vshrl.u32 %v6848_v35, 16  ;;  %v257_v26 = vld [vmem:[%s6617_s11 + $0x74] sm:$0x1] }
  0x64   : > { %v471_v5 = vrot.slane %v469_v52, 5  ;;  %v5008_v7 = vcombine.low %v448_v48, %v458_v61  ;;  %v2252_v17 = vsel %vm6643_vm4, %v2247_v53, %v2251_v43  ;;  %v2257_v10 = vrot.slane %v2256_v55, 4  ;;  %v5261_v48 = vld [vmem:[%s6617_s11 + $0x18] sm:$0xe] }
  0x65   : > { %v479_v11 = vshll.u32 %v256_v50, 16  ;;  %v466_v14 = vor.u32 %v465_v2, %v462_v57  ;;  %v475_v18 = vrot.slane %v473_v6, 4  ;;  %v5276_v21 = vrot.slane %v5260_v58, 9  ;;  %v6895_v53 = vld [vmem:[%s6617_s11 + $0x78] sm:$0xf] }
  0x66   : > { %v2817_v25 = vrot.slane %v2815_v62, 4  ;;  %5711 = vmatmul.mubr.msk.bf16.gmra.mrb[12].mxu1 %vm701_vm3, %v5008_v7  ;;  %v2262_v31 = vsel %vm6643_vm4, %v2257_v10, %v2261_v56  ;;  %v484_v39 = vshrl.u32 %v6863_v0, 16  ;;  %v487_v42 = vshll.u32 %v6863_v0, 16  ;;  %v258_v57 = vld [vmem:[%s6617_s11 + $0x80] sm:$0x1] }
  0x67   : > { %v481_v38 = vrot.slane %v479_v11, 5  ;;  %v5235_v43 = vcombine.low %v2252_v17, %v2262_v31  ;;  %v467_v44 = vrot.slane %v466_v14, 4  ;;  %v476_v45 = vor.u32 %v475_v18, %v471_v5  ;;  %v5262_v10 = vld [vmem:[%s6617_s11 + $0x24] sm:$0xe] }
  0x68   : > { %v2816_v47 = vsel %vm6869_vm7, %v5276_v21, %v2815_v62  ;;  %v2819_v49 = vsel %vm6869_vm7, %v2817_v25, %v2818_v63  ;;  %v486_v50 = vrot.slane %v484_v39, 4  ;;  %v489_v51 = vrot.slane %v487_v42, 5  ;;  %v6921_v39 = vld [vmem:[%s6617_s11 + $0x84] sm:$0xf] }
  0x69   : > { %v493_v52 = vshll.u32 %v6876_v29, 16  ;;  %5847 = vmatmul.mubr.msk.bf16.gmra.mrb[12].mxu0 %vm701_vm3, %v5235_v43  ;;  %v472_v15 = vsel %vm6643_vm4, %v467_v44, %v471_v5  ;;  %v477_v62 = vrot.slane %v476_v45, 4  ;;  %v5293_v55 = vcombine.low %v2816_v47, %v2819_v49  ;;  %v6929_v43 = vld [vmem:[%s6617_s11 + $0x88] sm:$0xf] }
  0x6a   : > { %v497_v56 = vshrl.u32 %v6876_v29, 16  ;;  %v490_v63 = vor.u32 %v489_v51, %v486_v50  ;;  %v503_v61 = vshll.u32 %v257_v26, 16  ;;  %v5277_v2 = vrot.slane %v5261_v48, 9 }
  0x6b   : > { %v495_v58 = vrot.slane %v493_v52, 5  ;;  %v482_v6 = vsel %vm6643_vm4, %v477_v62, %v481_v38  ;;  %5868 = vmatprep.mubr.msk.bf16.mxu0 %vm701_vm3, %v5293_v55  ;;  %v2826_v5 = vsel %vm6869_vm7, %v6686_v30, %v2825_v28  ;;  %v508_v17 = vshrl.u32 %v6895_v53, 16  ;;  %v259_v52 = vld [vmem:[%s6617_s11 + $0x8c] sm:$0x1] }
  0x6c   : > { %v499_v7 = vrot.slane %v497_v56, 4  ;;  %v5009_v11 = vcombine.low %v472_v15, %v482_v6  ;;  %v491_v14 = vrot.slane %v490_v63, 4  ;;  %v505_v18 = vrot.slane %v503_v61, 5 }
  0x6d   : > { %v2823_v21 = vsel %vm6869_vm7, %v5277_v2, %v2822_v22  ;;  %v510_v38 = vrot.slane %v508_v17, 4  ;;  %v511_v1 = vshll.u32 %v6895_v53, 16  ;;  %v517_v30 = vshll.u32 %v6902_v16, 16  ;;  %v6934_v22 = vld [vmem:[%s8437_s1 + $0xe] sm:$0x3] }
  0x6e   : > { %v500_v25 = vor.u32 %v499_v7, %v495_v58  ;;  %v5294_v31 = vcombine.low %v2823_v21, %v2826_v5  ;;  %5714 = vmatprep.mubr.msk.bf16.mxu1 %vm701_vm3, %v5009_v11  ;;  %v496_v28 = vsel %vm6643_vm4, %v491_v14, %v495_v58  ;;  %v521_v60 = vshrl.u32 %v6902_v16, 16  ;;  %v6953_v5 = vld [vmem:[%s6617_s11 + $0x90] sm:$0xf] }
  0x6f   : > { %v527_v42 = vshll.u32 %v258_v57, 16  ;;  %v513_v45 = vrot.slane %v511_v1, 5  ;;  %v5278_v47 = vrot.slane %v5262_v10, 9  ;;  %v2829_v26 = vrot.slane %v6693_v46, 5  ;;  %v5263_v57 = vld [vmem:[%s6617_s11 + $0x30] sm:$0xe] }
  0x70   : > { %v501_v44 = vrot.slane %v500_v25, 4  ;;  %v519_v48 = vrot.slane %v517_v30, 5  ;;  %v523_v49 = vrot.slane %v521_v60, 4  ;;  %v2832_v51 = vrot.slane %v6702_v54, 5  ;;  %v6965_v30 = vld [vmem:[%s6617_s11 + $0x94] sm:$0xf] }
  0x71   : > { %v529_v50 = vrot.slane %v527_v42, 5  ;;  %5869 = vmatmul.mubr.msk.bf16.vlgmr.msra.gmra.mrb[0].mxu0 %vm701_vm3, %v5294_v31  ;;  %v514_v62 = vor.u32 %v513_v45, %v510_v38  ;;  %v2830_v55 = vsel %vm6869_vm7, %v5278_v47, %v2829_v26  ;;  %v2831_v56 = vrot.slane %v2829_v26, 4  ;;  %v260_v60 = vld [vmem:[%s6617_s11 + $0x98] sm:$0x1]  ;;  %v5264_v26 = vld [vmem:[%s6617_s11 + $0x3c] sm:$0xe] }
  0x72   : > { %v506_v15 = vsel %vm6643_vm4, %v501_v44, %v505_v18  ;;  %5901 = vmatpush3.bf16.msra.mxu0 %v6653_v41  ;;  %v524_v46 = vor.u32 %v523_v49, %v519_v48  ;;  %v532_v58 = vshrl.u32 %v6921_v39, 16  ;;  %v535_v54 = vshll.u32 %v6921_v39, 16 }
  0x73   : > { %v5010_v63 = vcombine.low %v496_v28, %v506_v15  ;;  %v515_v61 = vrot.slane %v514_v62, 4  ;;  %v2833_v2 = vsel %vm6869_vm7, %v2831_v56, %v2832_v51  ;;  %v541_v6 = vshll.u32 %v6929_v43, 16  ;;  %6268 = vmatprep.subr.msk.bf16.mxu0 %vm750_vm0, %v6934_v22 }
  0x74   : > { %v545_v7 = vshrl.u32 %v6929_v43, 16  ;;  %v525_v41 = vrot.slane %v524_v46, 4  ;;  %v5295_v17 = vcombine.low %v2830_v55, %v2833_v2  ;;  %v534_v10 = vrot.slane %v532_v58, 4  ;;  %v6985_v46 = vld [vmem:[%s6617_s11 + $0xa0] sm:$0xf] }
  0x75   : > { %5715 = vmatmul.mubr.msk.bf16.gmra.mrb[16].mxu1 %vm701_vm3, %v5010_v63  ;;  %v537_v11 = vrot.slane %v535_v54, 5  ;;  %v520_v14 = vsel %vm6643_vm4, %v515_v61, %v519_v48  ;;  %v543_v18 = vrot.slane %v541_v6, 5  ;;  %v551_v25 = vshll.u32 %v259_v52, 16  ;;  %v6974_v52 = vld [vmem:[%s6617_s11 + $0x9c] sm:$0xf] }
  0x76   : > { %v547_v21 = vrot.slane %v545_v7, 4  ;;  %v530_v31 = vsel %vm6643_vm4, %v525_v41, %v529_v50  ;;  %5872 = vmatprep.mubr.msk.bf16.mxu0 %vm701_vm3, %v5295_v17  ;;  %v5279_v1 = vrot.slane %v5263_v57, 9  ;;  %v2836_v28 = vrot.slane %v6722_v33, 5 }
  0x77   : > { %v538_v38 = vor.u32 %v537_v11, %v534_v10  ;;  %v5011_v42 = vcombine.low %v520_v14, %v530_v31  ;;  %v553_v45 = vrot.slane %v551_v25, 5  ;;  %v2839_v47 = vrot.slane %v6730_v40, 5  ;;  %v261_v10 = vld [vmem:[%s6617_s11 + $0xa4] sm:$0x1]  ;;  %v5265_v11 = vld [vmem:[%s6617_s11 + $0x48] sm:$0xe] }
  0x78   : > { %v548_v44 = vor.u32 %v547_v21, %v543_v18  ;;  %v2837_v49 = vsel %vm6869_vm7, %v5279_v1, %v2836_v28  ;;  %v2838_v50 = vrot.slane %v2836_v28, 4  ;;  %v556_v51 = vshrl.u32 %v6953_v5, 16 }
  0x79   : > { %v539_v48 = vrot.slane %v538_v38, 4  ;;  %5718 = vmatprep.mubr.msk.bf16.mxu1 %vm701_vm3, %v5011_v42  ;;  %v559_v15 = vshll.u32 %v6953_v5, 16  ;;  %v565_v62 = vshll.u32 %v6965_v30, 16  ;;  %v569_v40 = vshrl.u32 %v6965_v30, 16 }
  0x7a   : > { %v549_v33 = vrot.slane %v548_v44, 4  ;;  %v2840_v56 = vsel %vm6869_vm7, %v2838_v50, %v2839_v47  ;;  %v558_v57 = vrot.slane %v556_v51, 4  ;;  %v575_v63 = vshll.u32 %v260_v60, 16 }
  0x7b   : > { %v544_v55 = vsel %vm6643_vm4, %v539_v48, %v543_v18  ;;  %v5296_v54 = vcombine.low %v2837_v49, %v2840_v56  ;;  %v561_v61 = vrot.slane %v559_v15, 5  ;;  %v567_v2 = vrot.slane %v565_v62, 5  ;;  %v7011_v56 = vld [vmem:[%s6617_s11 + $0xac] sm:$0xf] }
  0x7c   : > { %v554_v58 = vsel %vm6643_vm4, %v549_v33, %v553_v45  ;;  %v571_v7 = vrot.slane %v569_v40, 4  ;;  %v577_v41 = vrot.slane %v575_v63, 5  ;;  %v5280_v17 = vrot.slane %v5264_v26, 9  ;;  %v7006_v33 = vld [vmem:[%s6617_s11 + $0xa8] sm:$0xf] }
  0x7d   : > { %v5012_v6 = vcombine.low %v544_v55, %v554_v58  ;;  %5873 = vmatmul.mubr.msk.bf16.gmra.mrb[4].mxu0 %vm701_vm3, %v5296_v54  ;;  %v562_v14 = vor.u32 %v561_v61, %v558_v57  ;;  %v2843_v18 = vrot.slane %v6747_v20, 5  ;;  %v2846_v21 = vrot.slane %v6752_v34, 5  ;;  %v262_v61 = vld [vmem:[%s6617_s11 + $0xb0] sm:$0x1] }
  0x7e   : > { %v580_v25 = vshrl.u32 %v6974_v52, 16  ;;  %v572_v31 = vor.u32 %v571_v7, %v567_v2  ;;  %v583_v38 = vshll.u32 %v6974_v52, 16  ;;  %v589_v1 = vshll.u32 %v6985_v46, 16 }
  0x7f   : > { %5719 = vmatmul.mubr.msk.bf16.gmra.mrb[20].mxu1 %vm701_vm3, %v5012_v6  ;;  %v593_v28 = vshrl.u32 %v6985_v46, 16  ;;  %v563_v60 = vrot.slane %v562_v14, 4  ;;  %v2844_v42 = vsel %vm6869_vm7, %v5280_v17, %v2843_v18  ;;  %v2845_v20 = vrot.slane %v2843_v18, 4  ;;  %v7026_v14 = vld [vmem:[%s6617_s11 + $0xb4] sm:$0xf] }
  0x80   : > { %v582_v44 = vrot.slane %v580_v25, 4  ;;  %v573_v34 = vrot.slane %v572_v31, 4  ;;  %v585_v45 = vrot.slane %v583_v38, 5  ;;  %v591_v47 = vrot.slane %v589_v1, 5 }
  0x81   : > { %v595_v26 = vrot.slane %v593_v28, 4  ;;  %v568_v48 = vsel %vm6643_vm4, %v563_v60, %v567_v2  ;;  %v2847_v49 = vsel %vm6869_vm7, %v2845_v20, %v2846_v21  ;;  %v599_v50 = vshll.u32 %v261_v10, 16  ;;  %v5266_v2 = vld [vmem:[%s6617_s11 + $0x54] sm:$0xe] }
  0x82   : > { %v5281_v51 = vrot.slane %v5265_v11, 9  ;;  %v578_v15 = vsel %vm6643_vm4, %v573_v34, %v577_v41  ;;  %v5297_v62 = vcombine.low %v2844_v42, %v2847_v49  ;;  %v586_v40 = vor.u32 %v585_v45, %v582_v44  ;;  %v7035_v42 = vld [vmem:[%s6617_s11 + $0xb8] sm:$0xf]  ;;  %v263_v49 = vld [vmem:[%s6617_s11 + $0xbc] sm:$0x1] }
  0x83   : > { %v596_v55 = vor.u32 %v595_v26, %v591_v47  ;;  %v5013_v57 = vcombine.low %v568_v48, %v578_v15  ;;  %v601_v63 = vrot.slane %v599_v50, 5  ;;  %v2850_v58 = vrot.slane %v6770_v8, 5 }
  0x84   : > { %v2853_v54 = vrot.slane %v6778_v23, 5  ;;  %5876 = vmatprep.mubr.msk.bf16.mxu0 %vm701_vm3, %v5297_v62  ;;  %v587_v6 = vrot.slane %v586_v40, 4  ;;  %v604_v41 = vshrl.u32 %v7006_v33, 16  ;;  %v607_v17 = vshll.u32 %v7006_v33, 16 }
  0x85   : > { %v597_v7 = vrot.slane %v596_v55, 4  ;;  %5722 = vmatprep.mubr.msk.bf16.mxu1 %vm701_vm3, %v5013_v57  ;;  %v2851_v10 = vsel %vm6869_vm7, %v5281_v51, %v2850_v58  ;;  %v2852_v11 = vrot.slane %v2850_v58, 4  ;;  %v613_v8 = vshll.u32 %v7011_v56, 16  ;;  %v5267_v55 = vld [vmem:[%s6617_s11 + $0x60] sm:$0xe] }
  0x86   : > { %v617_v23 = vshrl.u32 %v7011_v56, 16  ;;  %v592_v18 = vsel %vm6643_vm4, %v587_v6, %v591_v47  ;;  %v606_v25 = vrot.slane %v604_v41, 4  ;;  %v609_v31 = vrot.slane %v607_v17, 5  ;;  %v5268_v6 = vld [vmem:[%s6617_s11 + $0x6c] sm:$0xe] }
  0x87   : > { %v602_v21 = vsel %vm6643_vm4, %v597_v7, %v601_v63  ;;  %v2854_v1 = vsel %vm6869_vm7, %v2852_v11, %v2853_v54  ;;  %v615_v28 = vrot.slane %v613_v8, 5  ;;  %v623_v34 = vshll.u32 %v262_v61, 16  ;;  %v5204_v11 = vld [vmem:[%s6617_s11 + $0x70] sm:$0xf]  ;;  %v5205_v8 = vld [vmem:[%s6617_s11 + $0x74] sm:$0x1] }
  0x88   : > { %v5014_v38 = vcombine.low %v592_v18, %v602_v21  ;;  %v619_v60 = vrot.slane %v617_v23, 4  ;;  %v5298_v20 = vcombine.low %v2851_v10, %v2854_v1  ;;  %v610_v44 = vor.u32 %v609_v31, %v606_v25 }
  0x89   : > { %v5282_v45 = vrot.slane %v5266_v2, 9  ;;  %v2857_v26 = vrot.slane %v6801_v4, 5  ;;  %v2860_v48 = vrot.slane %v6807_v12, 5  ;;  %v628_v50 = vshrl.u32 %v7026_v14, 16 }
  0x8a   : > { %5723 = vmatmul.mubr.msk.bf16.gmra.mrb[24].mxu1 %vm701_vm3, %v5014_v38  ;;  %v620_v47 = vor.u32 %v619_v60, %v615_v28  ;;  %5877 = vmatmul.mubr.msk.bf16.gmra.mrb[8].mxu0 %vm701_vm3, %v5298_v20  ;;  %v611_v51 = vrot.slane %v610_v44, 4  ;;  %v625_v15 = vrot.slane %v623_v34, 5  ;;  %v631_v62 = vshll.u32 %v7026_v14, 16 }
  0x8b   : > { %v637_v40 = vshll.u32 %v7035_v42, 16  ;;  %v2858_v4 = vsel %vm6869_vm7, %v5282_v45, %v2857_v26  ;;  %v2859_v12 = vrot.slane %v2857_v26, 4  ;;  %v630_v63 = vrot.slane %v628_v50, 4 }
  0x8c   : > { %v621_v57 = vrot.slane %v620_v47, 4  ;;  %v616_v58 = vsel %vm6643_vm4, %v611_v51, %v615_v28  ;;  %v633_v54 = vrot.slane %v631_v62, 5  ;;  %v641_v2 = vshrl.u32 %v7035_v42, 16  ;;  %v5269_v47 = vld [vmem:[%s6617_s11 + $0x78] sm:$0xe] }
  0x8d   : > { %v639_v61 = vrot.slane %v637_v40, 5  ;;  %v2861_v41 = vsel %vm6869_vm7, %v2859_v12, %v2860_v48  ;;  %v647_v17 = vshll.u32 %v263_v49, 16  ;;  %v5283_v10 = vrot.slane %v5267_v55, 9  ;;  %v6376_v51 = vld [vmem:[%s6617_s11] sm:$0xf] }
  0x8e   : > { %v626_v7 = vsel %vm6643_vm4, %v621_v57, %v625_v15  ;;  %v5299_v18 = vcombine.low %v2858_v4, %v2861_v41  ;;  %v634_v21 = vor.u32 %v633_v54, %v630_v63  ;;  %v643_v25 = vrot.slane %v641_v2, 4  ;;  %v7073_v15 = vld [vmem:[%s6617_s11 + $0x4] sm:$0xf]  ;;  %v7077_v40 = vld [vmem:[%s6617_s11 + $0x7c] sm:$0xf] }
  0x8f   : > { %v5015_v23 = vcombine.low %v616_v58, %v626_v7  ;;  %v649_v31 = vrot.slane %v647_v17, 5  ;;  %v2864_v38 = vrot.slane %v6831_v59, 5  ;;  %v2867_v1 = vrot.slane %v6838_v9, 5  ;;  %v7080_v55 = vld [vmem:[%s6617_s11 + $0x80] sm:$0x1] }
  0x90   : > { %v5284_v28 = vrot.slane %v5268_v6, 9  ;;  %5880 = vmatprep.mubr.msk.bf16.mxu0 %vm701_vm3, %v5299_v18  ;;  %v635_v60 = vrot.slane %v634_v21, 4  ;;  %v644_v20 = vor.u32 %v643_v25, %v639_v61  ;;  %v2871_v44 = vrot.slane %v5204_v11, 5  ;;  %v5210_v57 = vld [vmem:[%s6617_s11 + $0x88] sm:$0xf] }
  0x91   : > { %5726 = vmatprep.mubr.msk.bf16.mxu1 %vm701_vm3, %v5015_v23  ;;  %v2874_v34 = vrot.slane %v5205_v8, 5  ;;  %v2865_v45 = vsel %vm6869_vm7, %v5283_v10, %v2864_v38  ;;  %v2866_v59 = vrot.slane %v2864_v38, 4  ;;  %v5033_v62 = vcombine.low %v6376_v51, %v7073_v15  ;;  %v5211_v54 = vld [vmem:[%s6617_s11 + $0x8c] sm:$0x1]  ;;  %v5213_v17 = vld [vmem:[%s6617_s11 + $0x94] sm:$0xf] }
  0x92   : > { %v640_v9 = vsel %vm6643_vm4, %v635_v60, %v639_v61  ;;  %v645_v26 = vrot.slane %v644_v20, 4  ;;  %v2872_v48 = vsel %vm6869_vm7, %v5284_v28, %v2871_v44  ;;  %v2873_v49 = vrot.slane %v2871_v44, 4  ;;  %v5270_v61 = vld [vmem:[%s6617_s11 + $0x84] sm:$0xe]  ;;  %v5271_v23 = vld [vmem:[%s6617_s11 + $0x90] sm:$0xe] }
  0x93   : > { %v2868_v50 = vsel %vm6869_vm7, %v2866_v59, %v2867_v1  ;;  %v5285_v58 = vrot.slane %v5269_v47, 9  ;;  %v2878_v7 = vrot.slane %v7077_v40, 5  ;;  %v2881_v41 = vrot.slane %v7080_v55, 5  ;;  %v5214_v25 = vld [vmem:[%s6617_s11 + $0x98] sm:$0x1] }
  0x94   : > { %v650_v4 = vsel %vm6643_vm4, %v645_v26, %v649_v31  ;;  %v5300_v12 = vcombine.low %v2865_v45, %v2868_v50  ;;  %v2875_v63 = vsel %vm6869_vm7, %v2873_v49, %v2874_v34  ;;  %v5286_v10 = vrot.slane %v5270_v61, 9  ;;  %v5216_v31 = vld [vmem:[%s6617_s11 + $0xa0] sm:$0xf]  ;;  %v5217_v60 = vld [vmem:[%s6617_s11 + $0xa4] sm:$0x1] }
  0x95   : > { %v5016_v2 = vcombine.low %v640_v9, %v650_v4  ;;  %v5301_v6 = vcombine.low %v2872_v48, %v2875_v63  ;;  %v2885_v11 = vrot.slane %v5210_v57, 5  ;;  %v2888_v8 = vrot.slane %v5211_v54, 5  ;;  %v5272_v20 = vld [vmem:[%s6617_s11 + $0x9c] sm:$0xe]  ;;  %v6378_v44 = vld [vmem:[%s6617_s11 + $0xc] sm:$0xf] }
  0x96   : > { %5881 = vmatmul.mubr.msk.bf16.gmra.mrb[12].mxu0 %vm701_vm3, %v5300_v12  ;;  %v2879_v18 = vsel %vm6869_vm7, %v5285_v58, %v2878_v7  ;;  %v2880_v21 = vrot.slane %v2878_v7, 4  ;;  %v2892_v28 = vrot.slane %v5213_v17, 5  ;;  %v7107_v34 = vld [vmem:[%s6617_s11 + $0x10] sm:$0xf]  ;;  %v6380_v47 = vld [vmem:[%s6617_s11 + $0x18] sm:$0xf] }
  0x97   : > { %5727 = vmatmul.mubr.msk.bf16.gmra.mrb[28].mxu1 %vm701_vm3, %v5016_v2  ;;  %5884 = vmatprep.mubr.msk.bf16.mxu0 %vm701_vm3, %v5301_v6  ;;  %v2886_v38 = vsel %vm6869_vm7, %v5286_v10, %v2885_v11  ;;  %v2887_v1 = vrot.slane %v2885_v11, 4  ;;  %v5034_v45 = vcombine.low %v6378_v44, %v7107_v34  ;;  %v7114_v9 = vld [vmem:[%s6617_s11 + $0x1c] sm:$0xf]  ;;  %v5287_v48 = vrot.slane %v5271_v23, 9  ;;  %v5219_v57 = vld [vmem:[%s6617_s11 + $0xac] sm:$0xf] }
  0x98   : > { %5732 = vmatprep.mubr.msk.bf16.mxu1 %vm701_vm3, %v5033_v62  ;;  %v2882_v59 = vsel %vm6869_vm7, %v2880_v21, %v2881_v41  ;;  %v5035_v26 = vcombine.low %v6380_v47, %v7114_v9  ;;  %v2894_v51 = vrot.slane %v2892_v28, 4  ;;  %v2895_v62 = vrot.slane %v5214_v25, 5  ;;  %v6382_v54 = vld [vmem:[%s8437_s1 + $0x4] sm:$0x3]  ;;  %v5222_v2 = vld [vmem:[%s6617_s11 + $0xb8] sm:$0xf] }
  0x99   : > { %v5302_v49 = vcombine.low %v2879_v18, %v2882_v59  ;;  %v2889_v50 = vsel %vm6869_vm7, %v2887_v1, %v2888_v8  ;;  %v5288_v12 = vrot.slane %v5272_v20, 9  ;;  %v2899_v63 = vrot.slane %v5216_v31, 5  ;;  %v7129_v7 = vld [vmem:[%s8437_s1 + $0x6] sm:$0x3]  ;;  %v5220_v10 = vld [vmem:[%s6617_s11 + $0xb0] sm:$0x1] }
  0x9a   : > { %v5303_v4 = vcombine.low %v2886_v38, %v2889_v50  ;;  %v2902_v58 = vrot.slane %v5217_v60, 5  ;;  %v1469_v61 = vsel %vm750_vm0, %v6382_v54, 0  ;;  %v2893_v41 = vsel %vm6869_vm7, %v5287_v48, %v2892_v28  ;;  %v5273_v11 = vld [vmem:[%s6617_s11 + $0xa8] sm:$0xe]  ;;  %v5223_v25 = vld [vmem:[%s6617_s11 + $0xbc] sm:$0x1] }
  0x9b   : > { %v2901_v6 = vrot.slane %v2899_v63, 4  ;;  %v2896_v17 = vsel %vm6869_vm7, %v2894_v51, %v2895_v62  ;;  %v2906_v8 = vrot.slane %v5219_v57, 5  ;;  %v2900_v23 = vsel %vm6869_vm7, %v5288_v12, %v2899_v63  ;;  %v5274_v31 = vld [vmem:[%s6617_s11 + $0xb4] sm:$0xe]  ;;  %v6383_v38 = vld [vmem:[%s6617_s11 + $0x24] sm:$0xf] }
  0x9c   : > { %v2913_v21 = vrot.slane %v5222_v2, 5  ;;  %v7150_v1 = vld [vmem:[%s6617_s11 + $0x28] sm:$0xf]  ;;  %v5304_v60 = vcombine.low %v2893_v41, %v2896_v17  ;;  %v5289_v44 = vrot.slane %v5273_v11, 9  ;;  %v2909_v59 = vrot.slane %v5220_v10, 5 }
  0x9d   : > { %v2903_v18 = vsel %vm6869_vm7, %v2901_v6, %v2902_v58  ;;  %v5036_v28 = vcombine.low %v6383_v38, %v7150_v1  ;;  %v6385_v47 = vld [vmem:[%s6617_s11 + $0x30] sm:$0xf]  ;;  %v2916_v51 = vrot.slane %v5223_v25, 5  ;;  %v5225_v62 = vld [vmem:[%s6617_s11 + $0xc4] sm:$0xf]  ;;  %v2301_v25 = vshrl.u32 %v7077_v40, 16 }
  0x9e   : > { %5885 = vmatmul.mubr.msk.bf16.gmra.mrb[16].mxu0 %vm701_vm3, %v5302_v49  ;;  %v5305_v20 = vcombine.low %v2900_v23, %v2903_v18  ;;  %v5290_v49 = vrot.slane %v5274_v31, 9  ;;  %v2915_v50 = vrot.slane %v2913_v21, 4  ;;  %v2907_v57 = vsel %vm6869_vm7, %v5289_v44, %v2906_v8  ;;  %v5275_v12 = vld [vmem:[%s6617_s11 + $0xc0] sm:$0xe]  ;;  %v6387_v41 = vld [vmem:[%s6617_s11 + $0x3c] sm:$0xf] }
  0x9f   : > { %5733 = vmatmul.mubr.msk.bf16.vlgmr.msra.gmra.mrb[0].mxu1 %vm701_vm3, %v5034_v45  ;;  %5888 = vmatprep.mubr.msk.bf16.mxu0 %vm701_vm3, %v5303_v4  ;;  %v2908_v45 = vrot.slane %v2906_v8, 4  ;;  %v2920_v63 = vrot.slane %v5225_v62, 5  ;;  %v5291_v6 = vrot.slane %v5275_v12, 9  ;;  %v7175_v17 = vld [vmem:[%s6617_s11 + $0x40] sm:$0xf]  ;;  %v5039_v18 = vcombine.low %v6782_v27, %v6785_v36  ;;  %v6339_v62 = vld [vmem:[%s6617_s11 + $0x24] sm:$0xff]  }
  0xa0   : > { %5765 = vmatpush3.bf16.msra.mxu1 %v1469_v61  ;;  %5736 = vmatprep.mubr.msk.bf16.mxu1 %vm701_vm3, %v5035_v26  ;;  %v7155_v26 = vld [vmem:[%s6617_s11 + $0x34] sm:$0xf]  ;;  %v2914_v58 = vsel %vm6869_vm7, %v5290_v49, %v2913_v21  ;;  %v2917_v54 = vsel %vm6869_vm7, %v2915_v50, %v2916_v51  ;;  %v5226_v61 = vld [vmem:[%s6617_s11 + $0xc8] sm:$0x1]  ;;  %v5038_v10 = vcombine.low %v6387_v41, %v7175_v17  ;;  %v2297_v21 = vshll.u32 %v7077_v40, 16 }
  0xa1   : > { %6263 = vmatprep.subr.msk.bf16.mxu1 %vm750_vm0, %v7129_v7  ;;  %v5037_v48 = vcombine.low %v6385_v47, %v7155_v26  ;;  %v2910_v4 = vsel %vm6869_vm7, %v2908_v45, %v2909_v59  ;;  %v5307_v11 = vcombine.low %v2914_v58, %v2917_v54  ;;  %v2922_v8 = vrot.slane %v2920_v63, 4  ;;  %v1207_v45 = vld [vmem:[%s6617_s11] sm:$0xe]  ;;  %v1208_v59 = vld [vmem:[%s6617_s11 + $0xc] sm:$0xe] }
  0xa2   : > { %v5306_v2 = vcombine.low %v2907_v57, %v2910_v4  ;;  %v2923_v23 = vrot.slane %v5226_v61, 5  ;;  %v2921_v31 = vsel %vm6869_vm7, %v5291_v6, %v2920_v63  ;;  %v7190_v27 = vrot.slane %v2297_v21, 5  ;;  %v1211_v41 = vld [vmem:[%s6617_s11 + $0x30] sm:$0xe] }
  0xa3   : > { %v2303_v36 = vrot.slane %v2301_v25, 4  ;;  %v5041_v44 = vcombine.low %v6842_v19, %v6848_v35  ;;  %v2307_v47 = vshll.u32 %v7080_v55, 16  ;;  %v5065_v19 = vrot.slane %v1207_v45, 9 }
  0xa4   : > { %v2924_v38 = vsel %vm6869_vm7, %v2922_v8, %v2923_v23  ;;  %8460 = vst [vmem:[#allocation6_spill] sm:$0xff] %v7190_v27  ;;  %v5066_v35 = vrot.slane %v1208_v59, 9  ;;  %v1274_v4 = vrot.slane %v7114_v9, 5  ;;  %v1281_v12 = vrot.slane %v7150_v1, 5  ;;  %v1212_v8 = vld [vmem:[%s6617_s11 + $0x3c] sm:$0xe] }
  0xa5   : > { %v5308_v40 = vcombine.low %v2921_v31, %v2924_v38  ;;  %v2304_v49 = vor.u32 %v2303_v36, %v7190_v27  ;;  %v7210_v51 = vrot.slane %v2307_v47, 5  ;;  %v5042_v58 = vcombine.low %v6863_v0, %v6876_v29  ;;  %v1213_v31 = vld [vmem:[%s6617_s11 + $0x48] sm:$0xe]  ;;  %v6393_v59 = vld [vmem:[%s6617_s11 + $0x38] sm:$0x1] }
  0xa6   : > { %5889 = vmatmul.mubr.msk.bf16.gmra.mrb[20].mxu0 %vm701_vm3, %v5304_v60  ;;  %v5040_v60 = vcombine.low %v6811_v24, %v6817_v37  ;;  %v6390_v24 = vld [vmem:[%s6617_s11 + $0x14] sm:$0x1]  ;;  %v4109_v54 = vsel %vm750_vm0, %v6934_v22, 0  ;;  %v5043_v61 = vcombine.low %v6895_v53, %v6902_v16  ;;  %v5044_v6 = vcombine.low %v6921_v39, %v6929_v43  ;;  %v6391_v16 = vld [vmem:[%s6617_s11 + $0x20] sm:$0x1] }
  0xa7   : > { %5737 = vmatmul.mubr.msk.bf16.gmra.mrb[4].mxu1 %vm701_vm3, %v5036_v28  ;;  %5892 = vmatprep.mubr.msk.bf16.mxu0 %vm701_vm3, %v5305_v20  ;;  %v1267_v28 = vrot.slane %v7107_v34, 5  ;;  %v6337_v20 = vld [vmem:[%s6617_s11 + $0x18] sm:$0xff]   ;;  %v6389_v34 = vld [vmem:[%s6617_s11 + $0x8] sm:$0x1]  ;;  %v1270_v37 = vrot.slane %v6390_v24, 5  ;;  %8461 = vst [vmem:[#allocation7_spill] sm:$0xff] %v7210_v51  ;;  %v5045_v9 = vcombine.low %v6953_v5, %v6965_v30 }
  0xa8   : > { %5740 = vmatprep.mubr.msk.bf16.mxu1 %vm701_vm3, %v5037_v48  ;;  %v1260_v48 = vrot.slane %v7073_v15, 5  ;;  %v1263_v50 = vrot.slane %v6389_v34, 5  ;;  %v1209_v15 = vld [vmem:[%s6617_s11 + $0x18] sm:$0xe]  ;;  %v7215_v63 = vrot.slane %v2304_v49, 4  ;;  %v1277_v22 = vrot.slane %v6391_v16, 5 }
  0xa9   : > { %v1269_v55 = vrot.slane %v1267_v28, 4  ;;  %v5067_v1 = vrot.slane %v1209_v15, 9  ;;  %v7237_v29 = vsel %vm6869_vm7, %v5066_v35, %v1267_v28  ;;  %v1283_v25 = vrot.slane %v1281_v12, 4  ;;  %v5390_v24 = vld [vmem:[%s6617_s11 + $0x18] sm:$0xf] }
  0xaa   : > { %v1262_v57 = vrot.slane %v1260_v48, 4  ;;  %8462 = vst [vmem:[#allocation8_spill] sm:$0xff] %v7215_v63  ;;  %v7233_v0 = vsel %vm6869_vm7, %v5065_v19, %v1260_v48  ;;  %v1291_v47 = vrot.slane %v6393_v59, 5  ;;  %v7274_v49 = vsel %vm750_vm0, %v7129_v7, 0  ;;  %v5391_v7 = vld [vmem:[%s6617_s11 + $0x1c] sm:$0xf] }
  0xab   : > { %v7241_v53 = vsel %vm6869_vm7, %v1269_v55, %v1270_v37  ;;  %v7278_v34 = vsel %vm6869_vm7, %v5067_v1, %v1274_v4  ;;  %v6343_v37 = vld [vmem:[%s6617_s11 + $0x3c] sm:$0xff]   ;;  %v5070_v35 = vrot.slane %v1212_v8, 9  ;;  %v6394_v55 = vld [vmem:[%s6617_s11 + $0x44] sm:$0x1]  ;;  %v3630_v8 = vshll.u32 %v5390_v24, 16 }
  0xac   : > { %v7252_v23 = vsel %vm6869_vm7, %v1262_v57, %v1263_v50  ;;  %v1214_v50 = vld [vmem:[%s6617_s11 + $0x54] sm:$0xe]  ;;  %v1298_v15 = vrot.slane %v6394_v55, 5  ;;  %v5394_v39 = vld [vmem:[%s6617_s11 + $0x28] sm:$0xf] }
  0xad   : > { %v6401_v5 = vld [vmem:[%s6617_s11 + $0x70] sm:$0xf] }
  0xae   : > { %5893 = vmatmul.mubr.msk.bf16.gmra.mrb[24].mxu0 %vm701_vm3, %v5306_v2  ;;  %v1210_v2 = vld [vmem:[%s6617_s11 + $0x24] sm:$0xe]  ;;  %v1323_v30 = vrot.slane %v6401_v5, 5 }
  0xaf   : > { %5741 = vmatmul.mubr.msk.bf16.gmra.mrb[8].mxu1 %vm701_vm3, %v5038_v10  ;;  %5896 = vmatprep.mubr.msk.bf16.mxu0 %vm701_vm3, %v5307_v11  ;;  %v1288_v10 = vrot.slane %v7155_v26, 5  ;;  %v6341_v11 = vld [vmem:[%s6617_s11 + $0x30] sm:$0xff]   ;;  %v5068_v21 = vrot.slane %v1210_v2, 9 }
  0xb0   : > { %5744 = vmatprep.mubr.msk.bf16.mxu1 %vm701_vm3, %v5039_v18  ;;  %v7248_v26 = vld [vmem:[%s8437_s1 + $0x10] sm:$0x3]  ;;  %v1276_v18 = vrot.slane %v1274_v4, 4  ;;  %v1325_v48 = vrot.slane %v1323_v30, 4 }
  0xb1   : > { %v1290_v45 = vrot.slane %v1288_v10, 4  ;;  %v7285_v19 = vsel %vm6869_vm7, %v5068_v21, %v1281_v12  ;;  %v3640_v21 = vshrl.u32 %v5391_v7, 16 }
  0xb2   : > { %v7294_v4 = vsel %vm6869_vm7, %v1276_v18, %v1277_v22  ;;  %v3627_v22 = vshrl.u32 %v5390_v24, 16  ;;  %v3636_v18 = vshll.u32 %v5391_v7, 16  ;;  %v5393_v24 = vld [vmem:[%s6617_s11 + $0x24] sm:$0xf] }
  0xb3   : > { %v7307_v1 = vsel %vm6869_vm7, %v1290_v45, %v1291_v47 }
  0xb4   : > { %v3629_v43 = vrot.slane %v3627_v22, 4  ;;  %v7349_v7 = vrot.slane %v3636_v18, 5  ;;  %v3654_v22 = vshll.u32 %v5393_v24, 16  ;;  %v3664_v18 = vshrl.u32 %v5394_v39, 16 }
  0xb6   : > { %5897 = vmatmul.mubr.msk.bf16.gmra.mrb[28].mxu0 %vm701_vm3, %v5308_v40  ;;  %v6392_v40 = vld [vmem:[%s6617_s11 + $0x2c] sm:$0x1]  ;;  %v3656_v27 = vrot.slane %v3654_v22, 5 }
  0xb7   : > { %5745 = vmatmul.mubr.msk.bf16.gmra.mrb[12].mxu1 %vm701_vm3, %v5040_v60  ;;  %5902 = vmatprep.mubr.msk.bf16.mxu0 %vm701_vm3, %v6337_v20  ;;  %v1284_v28 = vrot.slane %v6392_v40, 5  ;;  %v1295_v60 = vrot.slane %v7175_v17, 5  ;;  %v6397_v40 = vld [vmem:[%s6617_s11 + $0x50] sm:$0x1]  ;;  %v6402_v17 = vld [vmem:[%s6617_s11 + $0x74] sm:$0x1] }
  0xb8   : > { %5748 = vmatprep.mubr.msk.bf16.mxu1 %vm701_vm3, %v5041_v44  ;;  %v5069_v44 = vrot.slane %v1211_v41, 9  ;;  %v5072_v41 = vrot.slane %v1214_v50, 9  ;;  %v1215_v50 = vld [vmem:[%s6617_s11 + $0x60] sm:$0xe]  ;;  %v5395_v20 = vld [vmem:[%s6617_s11 + $0x2c] sm:$0x1] }
  0xb9   : > { %v1297_v12 = vrot.slane %v1295_v60, 4  ;;  %v7320_v45 = vsel %vm6869_vm7, %v5070_v35, %v1295_v60  ;;  %v6398_v35 = vld [vmem:[%s6617_s11 + $0x5c] sm:$0x1] }
  0xba   : > { %v7303_v2 = vsel %vm6869_vm7, %v5069_v44, %v1288_v10  ;;  %v1312_v55 = vrot.slane %v6398_v35, 5  ;;  %v1216_v35 = vld [vmem:[%s6617_s11 + $0x6c] sm:$0xe] }
  0xbb   : > { %v7324_v59 = vsel %vm6869_vm7, %v1297_v12, %v1298_v15  ;;  %v6399_v15 = vld [vmem:[%s6617_s11 + $0x64] sm:$0xf]  ;;  %v3642_v12 = vrot.slane %v3640_v21, 4  ;;  %v5074_v5 = vrot.slane %v1216_v35, 9 }
  0xbc   : > { %v6349_v21 = vld [vmem:[%s6617_s11 + $0x60] sm:$0xff]  }
  0xbe   : > { %5903 = vmatmul.mubr.msk.bf16.vlgmr.msra.gmra.mrb[0].mxu0 %vm701_vm3, %v6339_v62  ;;  %v6395_v62 = vld [vmem:[%s6617_s11 + $0x4c] sm:$0xf] }
  0xbf   : > { %5749 = vmatmul.mubr.msk.bf16.gmra.mrb[16].mxu1 %vm701_vm3, %v5042_v58  ;;  %5935 = vmatpush3.bf16.msra.mxu0 %v4109_v54  ;;  %v1302_v57 = vrot.slane %v6395_v62, 5  ;;  %v7298_v58 = vsel %vm6869_vm7, %v1283_v25, %v1284_v28  ;;  %v5071_v54 = vrot.slane %v1213_v31, 9  ;;  %v1305_v28 = vrot.slane %v6397_v40, 5 }
  0xc0   : > { %5752 = vmatprep.mubr.msk.bf16.mxu1 %vm701_vm3, %v5043_v61  ;;  %5906 = vmatprep.mubr.msk.bf16.mxu0 %vm701_vm3, %v6341_v11  ;;  %v6345_v61 = vld [vmem:[%s6617_s11 + $0x48] sm:$0xff]   ;;  %v6396_v11 = vld [vmem:[%s6617_s11 + $0x58] sm:$0xf]  ;;  %v1316_v62 = vrot.slane %v6399_v15, 5  ;;  %v5397_v15 = vld [vmem:[%s6617_s11 + $0x34] sm:$0xf] }
  0xc1   : > { %6269 = vmatprep.subr.msk.bf16.mxu0 %vm750_vm0, %v7248_v26  ;;  %v1309_v16 = vrot.slane %v6396_v11, 5  ;;  %v1304_v31 = vrot.slane %v1302_v57, 4  ;;  %v7328_v47 = vsel %vm6869_vm7, %v5071_v54, %v1302_v57  ;;  %v5392_v57 = vld [vmem:[%s6617_s11 + $0x20] sm:$0x1]  ;;  %v5396_v54 = vld [vmem:[%s6617_s11 + $0x30] sm:$0xf] }
  0xc2   : > { %v5073_v11 = vrot.slane %v1215_v50, 9  ;;  %v3678_v50 = vshll.u32 %v5396_v54, 16  ;;  %v3646_v25 = vshll.u32 %v5392_v57, 16  ;;  %v3684_v36 = vshll.u32 %v5397_v15, 16 }
  0xc3   : > { %v7339_v60 = vsel %vm6869_vm7, %v5072_v41, %v1309_v16  ;;  %v7355_v41 = vsel %vm6869_vm7, %v1304_v31, %v1305_v28  ;;  %v1318_v31 = vrot.slane %v1316_v62, 4  ;;  %v3675_v28 = vshrl.u32 %v5396_v54, 16 }
  0xc4   : > { %v7397_v35 = vrot.slane %v3684_v36, 5 }
  0xc6   : > { %5907 = vmatmul.mubr.msk.bf16.gmra.mrb[4].mxu0 %vm701_vm3, %v6343_v37  ;;  %v1311_v37 = vrot.slane %v1309_v16, 4  ;;  %v6400_v16 = vld [vmem:[%s6617_s11 + $0x68] sm:$0x1] }
  0xc7   : > { %5753 = vmatmul.mubr.msk.bf16.gmra.mrb[20].mxu1 %vm701_vm3, %v5044_v6  ;;  %5910 = vmatprep.mubr.msk.bf16.mxu0 %vm701_vm3, %v6345_v61  ;;  %v3632_v6 = vrot.slane %v3630_v8, 5  ;;  %v6347_v61 = vld [vmem:[%s6617_s11 + $0x54] sm:$0xff]   ;;  %v1319_v40 = vrot.slane %v6400_v16, 5  ;;  %v3660_v8 = vshll.u32 %v5394_v39, 16  ;;  %v3643_v16 = vor.u32 %v3642_v12, %v7349_v7 }
  0xc8   : > { %5756 = vmatprep.mubr.msk.bf16.mxu1 %vm701_vm3, %v5045_v9  ;;  %v3651_v9 = vshrl.u32 %v5393_v24, 16  ;;  %v7364_v44 = vsel %vm6869_vm7, %v1311_v37, %v1312_v55  ;;  %v1326_v24 = vrot.slane %v6402_v17, 5  ;;  %v3688_v39 = vshrl.u32 %v5397_v15, 16 }
  0xc9   : > { %v3633_v10 = vor.u32 %v3632_v6, %v3629_v43  ;;  %v7370_v37 = vrot.slane %v3660_v8, 5  ;;  %v3666_v55 = vrot.slane %v3664_v18, 4  ;;  %v8463_v43 = vcombine.low %v6974_v52, %v6985_v46  ;;  %v6403_v8 = vld [vmem:[%s6617_s11 + $0x7c] sm:$0xf]  ;;  %v7406_v18 = vld [vmem:[%s6617_s11 + $0x38] sm:$0x1] }
  0xca   : > { %v3653_v38 = vrot.slane %v3651_v9, 4  ;;  %v7379_v17 = vsel %vm6869_vm7, %v5073_v11, %v1316_v62  ;;  %v7383_v57 = vsel %vm6869_vm7, %v1318_v31, %v1319_v40  ;;  %v3677_v6 = vrot.slane %v3675_v28, 4  ;;  %8465 = vst [vmem:[#allocation9_spill] sm:$0xff] %v7406_v18 }
  0xcb   : > { %v3680_v12 = vrot.slane %v3678_v50, 5  ;;  %v8464_v52 = vcombine.low %v7006_v33, %v7011_v56  ;;  %v3634_v46 = vrot.slane %v3633_v10, 4  ;;  %v3644_v54 = vrot.slane %v3643_v16, 4  ;;  %v6351_v33 = vld [vmem:[%s6617_s11 + $0x6c] sm:$0xff]   ;;  %v1218_v16 = vld [vmem:[%s6617_s11 + $0x84] sm:$0xe] }
  0xcc   : > { %v3670_v62 = vshll.u32 %v5395_v20, 16  ;;  %v7391_v11 = vsel %vm6869_vm7, %v5074_v5, %v1323_v30  ;;  %v7395_v40 = vsel %vm6869_vm7, %v1325_v48, %v1326_v24  ;;  %v3690_v9 = vrot.slane %v3688_v39, 4  ;;  %v6352_v48 = vld [vmem:[%s6617_s11 + $0x78] sm:$0xff]  }
  0xcd   : > { %v3657_v10 = vor.u32 %v3656_v27, %v3653_v38  ;;  %v3667_v20 = vor.u32 %v3666_v55, %v7370_v37  ;;  %v1330_v30 = vrot.slane %v6403_v8, 5  ;;  %v3681_v38 = vor.u32 %v3680_v12, %v3677_v6  ;;  %v5399_v5 = vld [vmem:[%s6617_s11 + $0x3c] sm:$0xf] }
  0xce   : > { %5911 = vmatmul.mubr.msk.bf16.gmra.mrb[8].mxu0 %vm701_vm3, %v6347_v61  ;;  %v3648_v61 = vrot.slane %v3646_v25, 5  ;;  %v1217_v25 = vld [vmem:[%s6617_s11 + $0x78] sm:$0xe]  ;;  %v7422_v50 = vrot.slane %v3670_v62, 5  ;;  %v3691_v39 = vor.u32 %v3690_v9, %v7397_v35  ;;  %v3694_v55 = vshll.u32 %v7406_v18, 16 }
  0xcf   : > { %5757 = vmatmul.mubr.msk.bf16.gmra.mrb[24].mxu1 %vm701_vm3, %v8463_v43  ;;  %5914 = vmatprep.mubr.msk.bf16.mxu0 %vm701_vm3, %v6349_v21  ;;  %v3639_v21 = vsel %vm6643_vm4, %v3634_v46, %v7349_v7  ;;  %v5075_v24 = vrot.slane %v1217_v25, 9  ;;  %v6404_v43 = vld [vmem:[%s6617_s11 + $0x88] sm:$0xf]  ;;  %v7430_v7 = vld [vmem:[%s6617_s11 + $0x40] sm:$0xf]  ;;  %v3658_v12 = vrot.slane %v3657_v10, 4  ;;  %v8467_v62 = vcombine.low %v7026_v14, %v7035_v42 }
  0xd0   : > { %5760 = vmatprep.mubr.msk.bf16.mxu1 %vm701_vm3, %v8464_v52  ;;  %v3649_v31 = vsel %vm6643_vm4, %v3644_v54, %v3648_v61  ;;  %v1337_v6 = vrot.slane %v6404_v43, 5  ;;  %8466 = vst [vmem:[#allocation10_spill] sm:$0xff] %v7430_v7  ;;  %v3668_v52 = vrot.slane %v3667_v20, 4  ;;  %v1332_v46 = vrot.slane %v1330_v30, 4  ;;  %v6405_v54 = vld [vmem:[%s6617_s11 + $0x80] sm:$0x1] }
  0xd1   : > { %v1333_v61 = vrot.slane %v6405_v54, 5  ;;  %v3682_v9 = vrot.slane %v3681_v38, 4  ;;  %v5076_v25 = vrot.slane %v1218_v16, 9  ;;  %v3699_v8 = vshrl.u32 %v5399_v5, 16  ;;  %v6353_v10 = vld [vmem:[%s6617_s11 + $0x84] sm:$0xff]  }
  0xd2   : > { %v3702_v43 = vshll.u32 %v5399_v5, 16  ;;  %v7444_v20 = vcombine.low %v3639_v21, %v3649_v31  ;;  %v7448_v14 = vsel %vm750_vm0, %v7248_v26, 0  ;;  %v3712_v38 = vshrl.u32 %v7430_v7, 16  ;;  %v6354_v21 = vld [vmem:[%s6617_s11 + $0x90] sm:$0xff]   ;;  %v6410_v18 = vld [vmem:[%s6617_s11 + $0xa0] sm:$0xf] }
  0xd3   : > { %v3692_v16 = vrot.slane %v3691_v39, 4  ;;  %v3696_v5 = vrot.slane %v3694_v55, 5  ;;  %v1339_v54 = vrot.slane %v1337_v6, 4  ;;  %v3663_v31 = vsel %vm6643_vm4, %v3658_v12, %v7370_v37 }
  0xd4   : > { %v3673_v26 = vsel %vm6643_vm4, %v3668_v52, %v7422_v50  ;;  %v7463_v39 = vsel %vm6869_vm7, %v5075_v24, %v1330_v30  ;;  %v7467_v55 = vsel %vm6869_vm7, %v1332_v46, %v1333_v61  ;;  %v3687_v37 = vsel %vm6643_vm4, %v3682_v9, %v7397_v35  ;;  %v5405_v30 = vld [vmem:[%s6617_s11 + $0x54] sm:$0xf]  ;;  %v7484_v24 = vld [vmem:[%s6617_s11 + $0x58] sm:$0xf]  ;;  %v7489_v61 = vld [vmem:[%s6617_s11 + $0x90] sm:$0xe] }
  0xd5   : > { %v7480_v12 = vsel %vm6869_vm7, %v5076_v25, %v1337_v6  ;;  %v3701_v50 = vrot.slane %v3699_v8, 4  ;;  %v3704_v52 = vrot.slane %v3702_v43, 5  ;;  %v3714_v46 = vrot.slane %v3712_v38, 4 }
  0xd6   : > { %5915 = vmatmul.mubr.msk.bf16.gmra.mrb[12].mxu0 %vm701_vm3, %v6351_v33  ;;  %v8468_v33 = vcombine.low %v7233_v0, %v7252_v23  ;;  %v6406_v0 = vld [vmem:[%s6617_s11 + $0x8c] sm:$0x1]  ;;  %v3697_v36 = vsel %vm6643_vm4, %v3692_v16, %v3696_v5  ;;  %v3747_v25 = vshrl.u32 %v5405_v30, 16  ;;  %v3750_v8 = vshll.u32 %v5405_v30, 16 }
  0xd7   : > { %5761 = vmatmul.mubr.msk.bf16.gmra.mrb[28].mxu1 %vm701_vm3, %v8467_v62  ;;  %5918 = vmatprep.mubr.msk.bf16.mxu0 %vm701_vm3, %v6352_v48  ;;  %v3708_v48 = vshll.u32 %v7430_v7, 16  ;;  %v1340_v23 = vrot.slane %v6406_v0, 5  ;;  %v5402_v62 = vld [vmem:[%s6617_s11 + $0x48] sm:$0xf]  ;;  %v7473_v0 = vld [vmem:[%s6617_s11 + $0x4c] sm:$0xf]  ;;  %v8470_v38 = vcombine.low %v7237_v29, %v7241_v53  ;;  %v7507_v16 = vcombine.low %v3663_v31, %v3673_v26 }
  0xd8   : > { %5766 = vmatprep.mubr.msk.bf16.mxu1 %vm701_vm3, %v8468_v33  ;;  %v7470_v33 = vld [vmem:[%s6617_s11 + $0x44] sm:$0x1]  ;;  %v3723_v27 = vshrl.u32 %v5402_v62, 16  ;;  %v3726_v15 = vshll.u32 %v5402_v62, 16  ;;  %v3732_v6 = vshll.u32 %v7473_v0, 16  ;;  %v3736_v9 = vshrl.u32 %v7473_v0, 16 }
  0xd9   : > { %8469 = vst [vmem:[#allocation11_spill] sm:$0xff] %v7470_v33  ;;  %v7486_v28 = vrot.slane %v3708_v48, 5  ;;  %v7495_v35 = vsel %vm6869_vm7, %v1339_v54, %v1340_v23  ;;  %v3756_v43 = vshll.u32 %v7484_v24, 16  ;;  %v3760_v48 = vshrl.u32 %v7484_v24, 16  ;;  %v5408_v31 = vld [vmem:[%s6617_s11 + $0x60] sm:$0xf] }
  0xda   : > { %v3718_v5 = vshll.u32 %v7470_v33, 16  ;;  %v5077_v54 = vrot.slane %v7489_v61, 9  ;;  %v8471_v23 = vcombine.low %v7278_v34, %v7294_v4  ;;  %v7518_v29 = vcombine.low %v3687_v37, %v3697_v36  ;;  %v6355_v26 = vld [vmem:[%s6617_s11 + $0x9c] sm:$0xff]   ;;  %v6356_v30 = vld [vmem:[%s6617_s11 + $0xa8] sm:$0xff]  }
  0xdb   : > { %v3705_v53 = vor.u32 %v3704_v52, %v3701_v50  ;;  %v3725_v62 = vrot.slane %v3723_v27, 4  ;;  %v7529_v34 = vrot.slane %v3732_v6, 5  ;;  %v3738_v4 = vrot.slane %v3736_v9, 4  ;;  %v6407_v36 = vld [vmem:[%s8437_s1 + $0x8] sm:$0x3] }
  0xdc   : > { %v3749_v27 = vrot.slane %v3747_v25, 4  ;;  %v3752_v37 = vrot.slane %v3750_v8, 5  ;;  %v7538_v50 = vrot.slane %v3756_v43, 5  ;;  %v3762_v52 = vrot.slane %v3760_v48, 4  ;;  %v6408_v6 = vld [vmem:[%s6617_s11 + $0x94] sm:$0xf] }
  0xdd   : > { %v7544_v9 = vld [vmem:[%s6617_s11 + $0x64] sm:$0xf]  ;;  %v3771_v61 = vshrl.u32 %v5408_v31, 16  ;;  %v7546_v22 = vrot.slane %v3705_v53, 4  ;;  %v1351_v25 = vrot.slane %v6410_v18, 5  ;;  %v3739_v43 = vor.u32 %v3738_v4, %v7529_v34 }
  0xde   : > { %5919 = vmatmul.mubr.msk.bf16.gmra.mrb[16].mxu0 %vm701_vm3, %v6353_v10  ;;  %8472 = vst [vmem:[#allocation12_spill] sm:$0xff] %v7544_v9  ;;  %v3774_v10 = vshll.u32 %v5408_v31, 16  ;;  %v3753_v31 = vor.u32 %v3752_v37, %v3749_v27  ;;  %v3763_v53 = vor.u32 %v3762_v52, %v7538_v50  ;;  %v8473_v18 = vcombine.low %v7285_v19, %v7298_v58  ;;  %v6357_v37 = vld [vmem:[%s6617_s11 + $0xb4] sm:$0xff]  }
  0xdf   : > { %5767 = vmatmul.mubr.msk.bf16.vlgmr.msra.gmra.mrb[0].mxu1 %vm701_vm3, %v8470_v38  ;;  %5922 = vmatprep.mubr.msk.bf16.mxu0 %vm701_vm3, %v6354_v21  ;;  %v3728_v21 = vrot.slane %v3726_v15, 5  ;;  %v7527_v38 = vld [vmem:[%s6617_s11 + $0x50] sm:$0x1]  ;;  %v7536_v15 = vld [vmem:[%s6617_s11 + $0x5c] sm:$0x1]  ;;  %v8474_v27 = vcombine.low %v7303_v2, %v7307_v1  ;;  %v1353_v52 = vrot.slane %v1351_v25, 4 }
  0xe0   : > { %5799 = vmatpush3.bf16.msra.mxu1 %v7274_v49  ;;  %5770 = vmatprep.mubr.msk.bf16.mxu1 %vm701_vm3, %v8471_v23  ;;  %v3715_v49 = vor.u32 %v3714_v46, %v7486_v28  ;;  %v7540_v46 = vrot.slane %v3718_v5, 5  ;;  %v1344_v23 = vrot.slane %v6408_v6, 5  ;;  %v3742_v48 = vshll.u32 %v7527_v38, 16  ;;  %v1220_v5 = vld [vmem:[%s6617_s11 + $0x9c] sm:$0xe] }
  0xe1   : > { %6265 = vmatprep.subr.msk.bf16.mxu1 %vm750_vm0, %v6407_v36  ;;  %v6409_v36 = vld [vmem:[%s6617_s11 + $0x98] sm:$0x1]  ;;  %v3729_v7 = vor.u32 %v3728_v21, %v3725_v62  ;;  %v3766_v6 = vshll.u32 %v7536_v15, 16  ;;  %v3784_v62 = vshrl.u32 %v7544_v9, 16  ;;  %v3776_v4 = vrot.slane %v3774_v10, 5 }
  0xe2   : > { %v1347_v33 = vrot.slane %v6409_v36, 5  ;;  %v3716_v8 = vrot.slane %v3715_v49, 4  ;;  %v3780_v36 = vshll.u32 %v7544_v9, 16  ;;  %v7565_v21 = vsel %vm6869_vm7, %v5077_v54, %v1344_v23  ;;  %v7576_v2 = vld [vmem:[%s6617_s11 + $0x68] sm:$0x1] }
  0xe3   : > { %v3773_v49 = vrot.slane %v3771_v61, 4  ;;  %v3730_v19 = vrot.slane %v3729_v7, 4  ;;  %v5078_v58 = vrot.slane %v1220_v5, 9  ;;  %v3740_v3 = vrot.slane %v3739_v43, 4  ;;  %8475 = vst [vmem:[#allocation13_spill] sm:$0xff] %v7576_v2  ;;  %v6358_v5 = vld [vmem:[%s6617_s11 + $0xc0] sm:$0xff]  }
  0xe4   : > { %v3744_v54 = vrot.slane %v3742_v48, 5  ;;  %v3768_v63 = vrot.slane %v3766_v6, 5  ;;  %v1358_v61 = vrot.slane %v7011_v56, 5  ;;  %v3754_v10 = vrot.slane %v3753_v31, 4  ;;  %v1222_v31 = vld [vmem:[%s6617_s11 + $0xb4] sm:$0xe] }
  0xe5   : > { %v3764_v51 = vrot.slane %v3763_v53, 4  ;;  %v7578_v1 = vrot.slane %v3780_v36, 5  ;;  %v3786_v7 = vrot.slane %v3784_v62, 4  ;;  %v3711_v43 = vsel %vm6643_vm4, %v7546_v22, %v7486_v28  ;;  %v6412_v62 = vld [vmem:[%s6617_s11 + $0xb0] sm:$0x1] }
  0xe6   : > { %5923 = vmatmul.mubr.msk.bf16.gmra.mrb[20].mxu0 %vm701_vm3, %v6355_v26  ;;  %v1346_v26 = vrot.slane %v1344_v23, 4  ;;  %v1221_v23 = vld [vmem:[%s6617_s11 + $0xa8] sm:$0xe]  ;;  %v3721_v48 = vsel %vm6643_vm4, %v3716_v8, %v7540_v46  ;;  %v3777_v6 = vor.u32 %v3776_v4, %v3773_v49  ;;  %v3735_v53 = vsel %vm6643_vm4, %v3730_v19, %v7529_v34  ;;  %v5411_v46 = vld [vmem:[%s6617_s11 + $0x6c] sm:$0xf] }
  0xe7   : > { %5771 = vmatmul.mubr.msk.bf16.gmra.mrb[4].mxu1 %vm701_vm3, %v8473_v18  ;;  %5926 = vmatprep.mubr.msk.bf16.mxu0 %vm701_vm3, %v6356_v30  ;;  %v6411_v18 = vld [vmem:[%s6617_s11 + $0xa4] sm:$0x1]  ;;  %v7598_v36 = vsel %vm6869_vm7, %v5078_v58, %v1351_v25  ;;  %v5079_v28 = vrot.slane %v1221_v23, 9  ;;  %v1360_v8 = vrot.slane %v1358_v61, 4  ;;  %v3790_v49 = vshll.u32 %v7576_v2, 16 }
  0xe8   : > { %5774 = vmatprep.mubr.msk.bf16.mxu1 %vm701_vm3, %v8474_v27  ;;  %v1354_v30 = vrot.slane %v6411_v18, 5  ;;  %v7590_v56 = vsel %vm6869_vm7, %v1346_v26, %v1347_v33  ;;  %v3745_v33 = vsel %vm6643_vm4, %v3740_v3, %v3744_v54  ;;  %v1361_v26 = vrot.slane %v6412_v62, 5  ;;  %v5414_v18 = vld [vmem:[%s6617_s11 + $0x78] sm:$0xf]  ;;  %v7653_v54 = vld [vmem:[%s6617_s11 + $0xbc] sm:$0x1] }
  0xe9   : > { %v3759_v34 = vsel %vm6643_vm4, %v3754_v10, %v7538_v50  ;;  %v3769_v25 = vsel %vm6643_vm4, %v3764_v51, %v3768_v63  ;;  %v3787_v4 = vor.u32 %v3786_v7, %v7578_v1  ;;  %v5080_v27 = vrot.slane %v1222_v31, 9  ;;  %v7627_v51 = vld [vmem:[%s6617_s11 + $0x70] sm:$0xf]  ;;  %v7657_v10 = vld [vmem:[%s6617_s11 + $0x7c] sm:$0xf] }
  0xea   : > { %v7602_v22 = vsel %vm6869_vm7, %v1353_v52, %v1354_v30  ;;  %v8477_v3 = vcombine.low %v7320_v45, %v7324_v59  ;;  %v7623_v19 = vrot.slane %v3777_v6, 4  ;;  %v1365_v50 = vrot.slane %v7035_v42, 5  ;;  %8478 = vst [vmem:[#allocation15_spill] sm:$0xff] %v7627_v51  ;;  %8480 = vst [vmem:[#allocation16_spill] sm:$0xff] %v7657_v10  ;;  %v5417_v7 = vld [vmem:[%s6617_s11 + $0x84] sm:$0xf] }
  0xeb   : > { %8476 = vst [vmem:[#allocation14_spill] sm:$0xff] %v7602_v22  ;;  %v3795_v63 = vshrl.u32 %v5411_v46, 16  ;;  %v8479_v45 = vcombine.low %v7328_v47, %v7355_v41  ;;  %v7635_v58 = vcombine.low %v3735_v53, %v3745_v33  ;;  %v7641_v42 = vsel %vm6869_vm7, %v5079_v28, %v1358_v61  ;;  %v6359_v61 = vld [vmem:[%s6617_s11 + $0xcc] sm:$0xff]   ;;  %v7669_v31 = vld [vmem:[%s6617_s11 + $0x88] sm:$0xf] }
  0xec   : > { %v7644_v30 = vcombine.low %v3759_v34, %v3769_v25  ;;  %v7648_v47 = vsel %vm6869_vm7, %v1360_v8, %v1361_v26  ;;  %v7650_v41 = vrot.slane %v3790_v49, 5  ;;  %v3804_v6 = vshll.u32 %v7627_v51, 16  ;;  %8481 = vst [vmem:[#allocation17_spill] sm:$0xff] %v7669_v31  ;;  %v5420_v62 = vld [vmem:[%s6617_s11 + $0x90] sm:$0xf] }
  0xed   : > { %v7675_v28 = vrot.slane %v1365_v50, 4  ;;  %v7677_v33 = vrot.slane %v3795_v63, 4  ;;  %v3808_v8 = vshrl.u32 %v7627_v51, 16  ;;  %v3819_v26 = vshrl.u32 %v5414_v18, 16  ;;  %v7684_v25 = vld [vmem:[%s6617_s11 + $0x94] sm:$0xf] }
  0xee   : > { %5927 = vmatmul.mubr.msk.bf16.gmra.mrb[24].mxu0 %vm701_vm3, %v6357_v37  ;;  %v7621_v37 = vcombine.low %v3711_v43, %v3721_v48  ;;  %v7665_v43 = vsel %vm6869_vm7, %v5080_v27, %v1365_v50  ;;  %v3798_v48 = vshll.u32 %v5411_v46, 16  ;;  %v3822_v49 = vshll.u32 %v5414_v18, 16  ;;  %8482 = vst [vmem:[#allocation18_spill] sm:$0xff] %v7684_v25  ;;  %v7722_v2 = vld [vmem:[%s6617_s11 + $0x8c] sm:$0x1] }
  0xef   : > { %5775 = vmatmul.mubr.msk.bf16.gmra.mrb[8].mxu1 %vm701_vm3, %v8477_v3  ;;  %5930 = vmatprep.mubr.msk.bf16.mxu0 %vm701_vm3, %v6358_v5  ;;  %v7661_v5 = vrot.slane %v3787_v4, 4  ;;  %v3828_v46 = vshll.u32 %v7657_v10, 16  ;;  %v3832_v34 = vshrl.u32 %v7657_v10, 16  ;;  %v3843_v4 = vshrl.u32 %v5417_v7, 16 }
  0xf0   : > { %5778 = vmatprep.mubr.msk.bf16.mxu1 %vm701_vm3, %v8479_v45  ;;  %v3846_v27 = vshll.u32 %v5417_v7, 16  ;;  %v3852_v3 = vshll.u32 %v7669_v31, 16  ;;  %v3856_v50 = vshrl.u32 %v7669_v31, 16  ;;  %v7694_v45 = vld [vmem:[%s6617_s11 + $0x74] sm:$0x1]  ;;  %v3800_v18 = vrot.slane %v3798_v48, 5 }
  0xf1   : > { %v3867_v52 = vshrl.u32 %v5420_v62, 16  ;;  %v3870_v53 = vshll.u32 %v5420_v62, 16  ;;  %v8483_v7 = vcombine.low %v7339_v60, %v7364_v44  ;;  %v3810_v59 = vrot.slane %v3808_v8, 4  ;;  %v5423_v48 = vld [vmem:[%s6617_s11 + $0x9c] sm:$0xf] }
  0xf2   : > { %v3876_v63 = vshll.u32 %v7684_v25, 16  ;;  %v3880_v23 = vshrl.u32 %v7684_v25, 16  ;;  %v8484_v62 = vcombine.low %v7379_v17, %v7383_v57  ;;  %v7712_v44 = vld [vmem:[%s6617_s11 + $0x80] sm:$0x1]  ;;  %v3821_v60 = vrot.slane %v3819_v26, 4 }
  0xf3   : > { %8485 = vst [vmem:[#allocation19_spill] sm:$0xff] %v7712_v44  ;;  %v3845_v31 = vrot.slane %v3843_v4, 4  ;;  %v3848_v8 = vrot.slane %v3846_v27, 5  ;;  %v7716_v10 = vrot.slane %v3852_v3, 5  ;;  %v3858_v51 = vrot.slane %v3856_v50, 4 }
  0xf4   : > { %v7719_v25 = vld [vmem:[%s6617_s11 + $0xa0] sm:$0xf]  ;;  %v3869_v17 = vrot.slane %v3867_v52, 4  ;;  %v3872_v57 = vrot.slane %v3870_v53, 5  ;;  %v3894_v9 = vshll.u32 %v5423_v48, 16  ;;  %v3801_v26 = vor.u32 %v3800_v18, %v7677_v33 }
  0xf5   : > { %v3838_v27 = vshll.u32 %v7712_v44, 16  ;;  %v7731_v3 = vld [vmem:[%s6617_s11 + $0x98] sm:$0x1]  ;;  %v3900_v50 = vshll.u32 %v7719_v25, 16  ;;  %v3904_v52 = vshrl.u32 %v7719_v25, 16  ;;  %v3849_v22 = vor.u32 %v3848_v8, %v3845_v31 }
  0xf6   : > { %5931 = vmatmul.mubr.msk.bf16.gmra.mrb[28].mxu0 %vm701_vm3, %v6359_v61  ;;  %v7702_v61 = vrot.slane %v3804_v6, 5  ;;  %v3834_v6 = vrot.slane %v3832_v34, 4  ;;  %v3882_v34 = vrot.slane %v3880_v23, 4  ;;  %v3862_v33 = vshll.u32 %v7722_v2, 16 }
  0xf7   : > { %5779 = vmatmul.mubr.msk.bf16.gmra.mrb[12].mxu1 %vm701_vm3, %v8483_v7  ;;  %5936 = vmatprep.mubr.msk.bf16.mxu0 %vm701_vm3, %v7444_v20  ;;  %v3824_v7 = vrot.slane %v3822_v49, 5  ;;  %v7714_v20 = vrot.slane %v3828_v46, 5  ;;  %v3814_v49 = vshll.u32 %v7694_v45, 16  ;;  %v7726_v46 = vrot.slane %v3876_v63, 5 }
  0xf8   : > { %5782 = vmatprep.mubr.msk.bf16.mxu1 %vm701_vm3, %v8484_v62  ;;  %v3891_v62 = vshrl.u32 %v5423_v48, 16  ;;  %v3811_v4 = vor.u32 %v3810_v59, %v7702_v61  ;;  %v3859_v23 = vor.u32 %v3858_v51, %v7716_v10  ;;  %v3873_v59 = vor.u32 %v3872_v57, %v3869_v17  ;;  %v7764_v57 = vld [vmem:[%s6617_s11 + $0xa4] sm:$0x1] }
  0xf9   : > { %v3825_v53 = vor.u32 %v3824_v7, %v3821_v60  ;;  %v3835_v48 = vor.u32 %v3834_v6, %v7714_v20  ;;  %v3896_v18 = vrot.slane %v3894_v9, 5  ;;  %v8486_v44 = vcombine.low %v7391_v11, %v7395_v40 }
  0xfa   : > { %v3893_v63 = vrot.slane %v3891_v62, 4  ;;  %v8487_v31 = vrot.slane %v7653_v54, 5  ;;  %v3816_v51 = vrot.slane %v3814_v49, 5  ;;  %v3883_v60 = vor.u32 %v3882_v34, %v7726_v46  ;;  %v7767_v34 = vld [vmem:[%s6617_s11 + $0xac] sm:$0xf] }
  0xfb   : > { %v3886_v9 = vshll.u32 %v7731_v3, 16  ;;  %v8488_v11 = vcombine.low %v7463_v39, %v7467_v55  ;;  %v3802_v40 = vrot.slane %v3801_v26, 4  ;;  %v7760_v54 = vrot.slane %v3900_v50, 5 }
  0xfc   : > { %v3826_v7 = vrot.slane %v3825_v53, 4  ;;  %v3836_v6 = vrot.slane %v3835_v48, 4  ;;  %v3840_v8 = vrot.slane %v3838_v27, 5  ;;  %v3864_v17 = vrot.slane %v3862_v33, 5  ;;  %v7777_v48 = vld [vmem:[%s6617_s11 + $0xb0] sm:$0x1] }
  0xfd   : > { %v3850_v39 = vrot.slane %v3849_v22, 4  ;;  %v3860_v55 = vrot.slane %v3859_v23, 4  ;;  %v3874_v62 = vrot.slane %v3873_v59, 4  ;;  %v3897_v49 = vor.u32 %v3896_v18, %v3893_v63 }
  0xfe   : > { %5937 = vmatmul.mubr.msk.bf16.vlgmr.msra.gmra.mrb[0].mxu0 %vm701_vm3, %v7507_v16  ;;  %v7750_v16 = vsel %vm6869_vm7, %v7675_v28, %v8487_v31  ;;  %v3906_v28 = vrot.slane %v3904_v52, 4  ;;  %v3888_v26 = vrot.slane %v3886_v9, 5  ;;  %v3807_v52 = vsel %vm6643_vm4, %v3802_v40, %v7702_v61 }
  0xff   : > { %5783 = vmatmul.mubr.msk.bf16.gmra.mrb[16].mxu1 %vm701_vm3, %v8486_v44  ;;  %5969 = vmatpush3.bf16.msra.mxu0 %v7448_v14  ;;  %v3812_v14 = vrot.slane %v3811_v4, 4  ;;  %v5426_v44 = vld [vmem:[%s6617_s11 + $0xa8] sm:$0xf]  ;;  %v3910_v22 = vshll.u32 %v7764_v57, 16  ;;  %v3831_v33 = vsel %vm6643_vm4, %v3826_v7, %v7714_v20  ;;  %v3841_v23 = vsel %vm6643_vm4, %v3836_v6, %v3840_v8 }
 0x100   : > { %5786 = vmatprep.mubr.msk.bf16.mxu1 %vm701_vm3, %v8488_v11  ;;  %5940 = vmatprep.mubr.msk.bf16.mxu0 %vm701_vm3, %v7518_v29  ;;  %v3884_v29 = vrot.slane %v3883_v60, 4  ;;  %v3915_v4 = vshrl.u32 %v5426_v44, 16  ;;  %v3918_v50 = vshll.u32 %v5426_v44, 16  ;;  %v3907_v53 = vor.u32 %v3906_v28, %v7760_v54  ;;  %v5475_v11 = vld [vmem:[%s6617_s11 + $0x48] sm:$0xe] }
 0x101   : > { %v3817_v27 = vsel %vm6643_vm4, %v3812_v14, %v3816_v51  ;;  %v3924_v59 = vshll.u32 %v7767_v34, 16  ;;  %v3928_v61 = vshrl.u32 %v7767_v34, 16  ;;  %v3855_v63 = vsel %vm6643_vm4, %v3850_v39, %v7716_v10  ;;  %v7842_v39 = vld [vmem:[%s6617_s11 + $0xb8] sm:$0xf] }
 0x102   : > { %v3865_v18 = vsel %vm6643_vm4, %v3860_v55, %v3864_v17  ;;  %v3879_v20 = vsel %vm6643_vm4, %v3874_v62, %v7726_v46  ;;  %v3898_v31 = vrot.slane %v3897_v49, 4  ;;  %v8489_v51 = vcombine.low %v7480_v12, %v7495_v35 }
 0x103   : > { %v3917_v10 = vrot.slane %v3915_v4, 4  ;;  %v3920_v60 = vrot.slane %v3918_v50, 5  ;;  %v3934_v9 = vshll.u32 %v7777_v48, 16  ;;  %v8490_v46 = vcombine.low %v7565_v21, %v7590_v56  ;;  %v5429_v21 = vld [vmem:[%s6617_s11 + $0xb4] sm:$0xf] }
 0x104   : > { %v5096_v12 = vcombine.low %v7641_v42, %v7648_v47  ;;  %v8491_v35 = vsel %vm6643_vm4, %v7661_v5, %v7650_v41  ;;  %v3908_v14 = vrot.slane %v3907_v53, 4  ;;  %v3912_v28 = vrot.slane %v3910_v22, 5  ;;  %v5477_v4 = vld [vmem:[%s6617_s11 + $0x60] sm:$0xe]  ;;  %v5478_v53 = vld [vmem:[%s6617_s11 + $0x6c] sm:$0xe] }
 0x105   : > { %v5097_v56 = vcombine.low %v7665_v43, %v7750_v16  ;;  %v7825_v44 = vcombine.low %v3807_v52, %v3817_v27  ;;  %v7827_v42 = vrot.slane %v3924_v59, 5  ;;  %v3930_v47 = vrot.slane %v3928_v61, 4  ;;  %v8500_v16 = vld [vmem:[#allocation7_spill] sm:$0xff] }
 0x106   : > { %5941 = vmatmul.mubr.msk.bf16.gmra.mrb[4].mxu0 %vm701_vm3, %v7621_v37  ;;  %v3889_v37 = vsel %vm6643_vm4, %v3884_v29, %v3888_v26  ;;  %v7829_v41 = vcombine.low %v3831_v33, %v3841_v23  ;;  %v7831_v5 = vcombine.low %v3855_v63, %v3865_v18  ;;  %v3903_v6 = vsel %vm6643_vm4, %v3898_v31, %v7760_v54  ;;  %v8493_v23 = vld [vmem:[#allocation14_spill] sm:$0xff]  ;;  %v5432_v63 = vld [vmem:[%s6617_s11 + $0xc0] sm:$0xf]  ;;  %v8495_v18 = vld [vmem:[#allocation12_spill] sm:$0xff] }
 0x107   : > { %5787 = vmatmul.mubr.msk.bf16.gmra.mrb[20].mxu1 %vm701_vm3, %v8489_v51  ;;  %5944 = vmatprep.mubr.msk.bf16.mxu0 %vm701_vm3, %v7635_v58  ;;  %v8492_v58 = vsel %vm6643_vm4, %v7623_v19, %v7578_v1  ;;  %v7833_v7 = vcombine.low %v3879_v20, %v3889_v37  ;;  %v5491_v1 = vrot.slane %v5475_v11, 9  ;;  %v5476_v19 = vld [vmem:[%s6617_s11 + $0x54] sm:$0xe]  ;;  %v3921_v8 = vor.u32 %v3920_v60, %v3917_v10  ;;  %v8496_v31 = vld [vmem:[#allocation13_spill] sm:$0xff] }
 0x108   : > { %5790 = vmatprep.mubr.msk.bf16.mxu1 %vm701_vm3, %v8490_v46  ;;  %v5445_v40 = vcombine.low %v8492_v58, %v8491_v35  ;;  %v7839_v17 = vrot.slane %v3934_v9, 5  ;;  %v3939_v55 = vshrl.u32 %v5429_v21, 16  ;;  %v3913_v62 = vsel %vm6643_vm4, %v3908_v14, %v3912_v28  ;;  %v8497_v9 = vld [vmem:[#allocation15_spill] sm:$0xff]  ;;  %v7891_v35 = vld [vmem:[%s6617_s11 + $0xbc] sm:$0x1] }
 0x109   : > { %v3942_v49 = vshll.u32 %v5429_v21, 16  ;;  %v4398_v29 = vrot.slane %v7473_v0, 5  ;;  %v4401_v26 = vrot.slane %v7527_v38, 5  ;;  %v3931_v50 = vor.u32 %v3930_v47, %v7827_v42  ;;  %v7894_v58 = vld [vmem:[%s6617_s11 + $0xc4] sm:$0xf] }
 0x10a   : > { %v5492_v52 = vrot.slane %v5476_v19, 9  ;;  %v4405_v54 = vrot.slane %v7484_v24, 5  ;;  %v4408_v27 = vrot.slane %v7536_v15, 5  ;;  %v3948_v22 = vshll.u32 %v7842_v39, 16  ;;  %v5479_v19 = vld [vmem:[%s6617_s11 + $0x78] sm:$0xe] }
 0x10b   : > { %v3952_v33 = vshrl.u32 %v7842_v39, 16  ;;  %v7859_v0 = vsel %vm6869_vm7, %v5491_v1, %v4398_v29  ;;  %v4400_v38 = vrot.slane %v4398_v29, 4  ;;  %v8494_v59 = vcombine.low %v7598_v36, %v8493_v23  ;;  %v8498_v23 = vld [vmem:[#allocation16_spill] sm:$0xff] }
 0x10c   : > { %v7866_v24 = vcombine.low %v3903_v6, %v3913_v62  ;;  %v7870_v15 = vsel %vm6869_vm7, %v5492_v52, %v4405_v54  ;;  %v5493_v61 = vrot.slane %v5477_v4, 9  ;;  %v4412_v20 = vrot.slane %v8495_v18, 5  ;;  %v6360_v6 = vld [vmem:[%s6617_s11 + $0xc] sm:$0xff]  }
 0x10d   : > { %v7876_v36 = vsel %vm6869_vm7, %v4400_v38, %v4401_v26  ;;  %v4415_v51 = vrot.slane %v8496_v31, 5  ;;  %v5494_v37 = vrot.slane %v5478_v53, 9  ;;  %v4419_v11 = vrot.slane %v8497_v9, 5 }
 0x10e   : > { %5945 = vmatmul.mubr.msk.bf16.gmra.mrb[8].mxu0 %vm701_vm3, %v7644_v30  ;;  %v4407_v30 = vrot.slane %v4405_v54, 4  ;;  %v5508_v10 = vcombine.low %v7859_v0, %v7876_v36  ;;  %v4422_v46 = vrot.slane %v7694_v45, 5  ;;  %v7900_v14 = vsel %vm6869_vm7, %v5493_v61, %v4412_v20 }
 0x10f   : > { %5791 = vmatmul.mubr.msk.bf16.gmra.mrb[24].mxu1 %vm701_vm3, %v8494_v59  ;;  %5948 = vmatprep.mubr.msk.bf16.mxu0 %vm701_vm3, %v5445_v40  ;;  %v4414_v28 = vrot.slane %v4412_v20, 4  ;;  %v7902_v21 = vrot.slane %v3939_v55, 4  ;;  %v3963_v47 = vshrl.u32 %v5432_v63, 16  ;;  %v7906_v45 = vsel %vm6869_vm7, %v5494_v37, %v4419_v11  ;;  %v5206_v55 = vld [vmem:[%s6617_s11 + $0x78] sm:$0xf]  ;;  %v8499_v59 = vld [vmem:[#allocation19_spill] sm:$0xff] }
 0x110   : > { %5794 = vmatprep.mubr.msk.bf16.mxu1 %vm701_vm3, %v5096_v12  ;;  %v7884_v60 = vsel %vm6869_vm7, %v4407_v30, %v4408_v27  ;;  %v7888_v12 = vrot.slane %v3921_v8, 4  ;;  %v4421_v1 = vrot.slane %v4419_v11, 4  ;;  %v7910_v8 = vrot.slane %v3931_v50, 4 }
 0x111   : > { %v5509_v40 = vcombine.low %v7870_v15, %v7884_v60  ;;  %v7912_v62 = vrot.slane %v3942_v49, 5  ;;  %v3966_v29 = vshll.u32 %v5432_v63, 16  ;;  %v7916_v26 = vsel %vm6869_vm7, %v4414_v28, %v4415_v51  ;;  %v8502_v28 = vld [vmem:[#allocation17_spill] sm:$0xff] }
 0x112   : > { %v7919_v4 = vrot.slane %v3948_v22, 5  ;;  %v7921_v52 = vrot.slane %v3952_v33, 4  ;;  %v5510_v54 = vcombine.low %v7900_v14, %v7916_v26  ;;  %v7927_v27 = vsel %vm6869_vm7, %v4421_v1, %v4422_v46  ;;  %v5480_v33 = vld [vmem:[%s6617_s11 + $0x84] sm:$0xe]  ;;  %v6361_v1 = vld [vmem:[%s6617_s11 + $0x18] sm:$0xff]  }
 0x113   : > { %v3958_v49 = vshll.u32 %v7891_v35, 16  ;;  %v3972_v50 = vshll.u32 %v7894_v58, 16  ;;  %v5511_v53 = vcombine.low %v7906_v45, %v7927_v27  ;;  %v5495_v22 = vrot.slane %v5479_v19, 9  ;;  %v6423_v60 = vld [vmem:[%s6617_s11 + $0xa0] sm:$0xf] }
 0x114   : > { %v3965_v38 = vrot.slane %v3963_v47, 4  ;;  %v4429_v30 = vrot.slane %v8499_v59, 5  ;;  %v2288_v61 = vshrl.u32 %v5206_v55, 16  ;;  %v3968_v63 = vrot.slane %v3966_v29, 5  ;;  %v5435_v29 = vld [vmem:[%s6617_s11 + $0xcc] sm:$0xf] }
 0x115   : > { %v3976_v18 = vshrl.u32 %v7894_v58, 16  ;;  %v2291_v43 = vshll.u32 %v5206_v55, 16  ;;  %v5496_v37 = vrot.slane %v5480_v33, 9  ;;  %v3927_v9 = vsel %vm6643_vm4, %v7888_v12, %v7827_v42  ;;  %v7970_v55 = vld [vmem:[%s6617_s11 + $0xd0] sm:$0xf] }
 0x116   : > { %5949 = vmatmul.mubr.msk.bf16.gmra.mrb[12].mxu0 %vm701_vm3, %v7825_v44  ;;  %v4426_v44 = vrot.slane %v8498_v23, 5  ;;  %v2290_v51 = vrot.slane %v2288_v61, 4  ;;  %v3945_v11 = vor.u32 %v7912_v62, %v7902_v21  ;;  %v4433_v47 = vrot.slane %v8502_v28, 5  ;;  %v6362_v21 = vld [vmem:[%s6617_s11 + $0x24] sm:$0xff]   ;;  %v6427_v27 = vld [vmem:[%s6617_s11 + $0xac] sm:$0xf] }
 0x117   : > { %5795 = vmatmul.mubr.msk.bf16.gmra.mrb[28].mxu1 %vm701_vm3, %v5097_v56  ;;  %5952 = vmatprep.mubr.msk.bf16.mxu0 %vm701_vm3, %v7829_v41  ;;  %v8501_v56 = vld [vmem:[#allocation8_spill] sm:$0xff]  ;;  %v2293_v46 = vrot.slane %v2291_v43, 5  ;;  %v3937_v19 = vsel %vm6643_vm4, %v7910_v8, %v7839_v17  ;;  %v4436_v12 = vrot.slane %v7722_v2, 5  ;;  %v7978_v62 = vrot.slane %v3972_v50, 5  ;;  %v5481_v8 = vld [vmem:[%s6617_s11 + $0x90] sm:$0xe] }
 0x118   : > { %5800 = vmatprep.mubr.msk.bf16.mxu1 %vm701_vm3, %v6360_v6  ;;  %v2310_v41 = vsel %vm6643_vm4, %v8501_v56, %v8500_v16  ;;  %v7952_v20 = vsel %vm6869_vm7, %v5495_v22, %v4426_v44  ;;  %v4428_v31 = vrot.slane %v4426_v44, 4  ;;  %v3955_v6 = vor.u32 %v7921_v52, %v7919_v4  ;;  %v7984_v52 = vld [vmem:[%s6617_s11 + $0xc8] sm:$0x1]  ;;  %v8504_v16 = vld [vmem:[#allocation5_spill] sm:$0xff] }
 0x119   : > { %v3978_v22 = vrot.slane %v3976_v18, 4  ;;  %v2294_v17 = vor.u32 %v2293_v46, %v2290_v51  ;;  %v3960_v23 = vrot.slane %v3958_v49, 5  ;;  %v3969_v44 = vor.u32 %v3968_v63, %v3965_v38  ;;  %v8505_v51 = vld [vmem:[#allocation6_spill] sm:$0xff] }
 0x11a   : > { %v7974_v42 = vsel %vm6869_vm7, %v4428_v31, %v4429_v30  ;;  %v7988_v59 = vsel %vm6869_vm7, %v5496_v37, %v4433_v47  ;;  %v4435_v30 = vrot.slane %v4433_v47, 4  ;;  %v3987_v2 = vshrl.u32 %v5435_v29, 16 }
 0x11b   : > { %v5512_v33 = vcombine.low %v7952_v20, %v7974_v42  ;;  %v3990_v50 = vshll.u32 %v5435_v29, 16  ;;  %v3996_v61 = vshll.u32 %v7970_v55, 16  ;;  %v2295_v18 = vrot.slane %v2294_v17, 4  ;;  %v6363_v29 = vld [vmem:[%s6617_s11 + $0x30] sm:$0xff]  }
 0x11c   : > { %v4000_v49 = vshrl.u32 %v7970_v55, 16  ;;  %v7999_v38 = vsel %vm6869_vm7, %v4435_v30, %v4436_v12  ;;  %v5497_v63 = vrot.slane %v5481_v8, 9  ;;  %v3979_v56 = vor.u32 %v3978_v22, %v7978_v62 }
 0x11d   : > { %v3982_v31 = vshll.u32 %v7984_v52, 16  ;;  %v5513_v37 = vcombine.low %v7988_v59, %v7999_v38  ;;  %v5451_v46 = vcombine.low %v3927_v9, %v3937_v19  ;;  %v3946_v28 = vrot.slane %v3945_v11, 4  ;;  %v5482_v11 = vld [vmem:[%s6617_s11 + $0x9c] sm:$0xe] }
 0x11e   : > { %5953 = vmatmul.mubr.msk.bf16.gmra.mrb[16].mxu0 %vm701_vm3, %v7831_v5  ;;  %v8503_v5 = vld [vmem:[#allocation18_spill] sm:$0xff]  ;;  %v3956_v47 = vrot.slane %v3955_v6, 4  ;;  %v3970_v12 = vrot.slane %v3969_v44, 4  ;;  %v4443_v8 = vrot.slane %v7731_v3, 5  ;;  %v3989_v30 = vrot.slane %v3987_v2, 4  ;;  %v6364_v19 = vld [vmem:[%s6617_s11 + $0x3c] sm:$0xff]  }
 0x11f   : > { %5801 = vmatmul.mubr.msk.bf16.vlgmr.msra.gmra.mrb[0].mxu1 %vm701_vm3, %v6361_v1  ;;  %5956 = vmatprep.mubr.msk.bf16.mxu0 %vm701_vm3, %v7833_v7  ;;  %v4440_v43 = vrot.slane %v8503_v5, 5  ;;  %v2300_v7 = vsel %vm6643_vm4, %v2295_v18, %v8505_v51  ;;  %v3992_v18 = vrot.slane %v3990_v50, 5  ;;  %v8022_v5 = vrot.slane %v3996_v61, 5 }
 0x120   : > { %6003 = vmatpush3.bf16.msra.mxu1 %v8504_v16  ;;  %5804 = vmatprep.mubr.msk.bf16.mxu1 %vm701_vm3, %v6362_v21  ;;  %v8011_v1 = vcombine.low %v2300_v7, %v2310_v41  ;;  %v8015_v21 = vld [vmem:[%s6617_s11 + $0xd4] sm:$0x1]  ;;  %v4002_v9 = vrot.slane %v4000_v49, 4  ;;  %v3980_v41 = vrot.slane %v3979_v56, 4  ;;  %v3984_v6 = vrot.slane %v3982_v31, 5 }
 0x121   : > { %v8019_v22 = vsel %vm6869_vm7, %v5497_v63, %v4440_v43  ;;  %v4442_v17 = vrot.slane %v4440_v43, 4  ;;  %v3951_v63 = vsel %vm6643_vm4, %v3946_v28, %v7919_v4  ;;  %v3961_v2 = vsel %vm6643_vm4, %v3956_v47, %v3960_v23  ;;  %v6414_v16 = vld [vmem:[%s6617_s11 + $0x1c] sm:$0xf]  ;;  %v5483_v28 = vld [vmem:[%s6617_s11 + $0xa8] sm:$0xe] }
 0x122   : > { %v4006_v50 = vshll.u32 %v8015_v21, 16  ;;  %v5498_v61 = vrot.slane %v5482_v11, 9  ;;  %v4447_v49 = vrot.slane %v7719_v25, 5  ;;  %v3975_v4 = vsel %vm6643_vm4, %v3970_v12, %v7978_v62  ;;  %v5471_v62 = vld [vmem:[%s6617_s11 + $0x18] sm:$0xe]  ;;  %v6365_v47 = vld [vmem:[%s6617_s11 + $0x48] sm:$0xff]  }
 0x123   : > { %v8028_v44 = vsel %vm6869_vm7, %v4442_v17, %v4443_v8  ;;  %v4003_v43 = vor.u32 %v4002_v9, %v8022_v5  ;;  %v4450_v23 = vrot.slane %v7764_v57, 5  ;;  %v3985_v25 = vsel %vm6643_vm4, %v3980_v41, %v3984_v6  ;;  %v6415_v11 = vld [vmem:[%s6617_s11 + $0x20] sm:$0x1] }
 0x124   : > { %v5514_v3 = vcombine.low %v8019_v22, %v8028_v44  ;;  %v4370_v56 = vrot.slane %v6414_v16, 5  ;;  %v8054_v31 = vsel %vm6869_vm7, %v5498_v61, %v4447_v49  ;;  %v4449_v51 = vrot.slane %v4447_v49, 4  ;;  %v5484_v49 = vld [vmem:[%s6617_s11 + $0xb4] sm:$0xe] }
 0x125   : > { %v5452_v7 = vcombine.low %v3951_v63, %v3961_v2  ;;  %v4004_v17 = vrot.slane %v4003_v43, 4  ;;  %v5499_v41 = vrot.slane %v5483_v28, 9  ;;  %v4454_v6 = vrot.slane %v7767_v34, 5  ;;  %v5472_v2 = vld [vmem:[%s6617_s11 + $0x24] sm:$0xe] }
 0x126   : > { %5957 = vmatmul.mubr.msk.bf16.gmra.mrb[20].mxu0 %vm701_vm3, %v7866_v24  ;;  %v3993_v24 = vor.u32 %v3992_v18, %v3989_v30  ;;  %v8059_v57 = vsel %vm6869_vm7, %v4449_v51, %v4450_v23  ;;  %v6366_v30 = vld [vmem:[%s6617_s11 + $0x54] sm:$0xff]   ;;  %v5487_v18 = vrot.slane %v5471_v62, 9  ;;  %v4372_v9 = vrot.slane %v4370_v56, 4  ;;  %v6418_v28 = vld [vmem:[%s6617_s11 + $0x2c] sm:$0x1] }
 0x127   : > { %5805 = vmatmul.mubr.msk.bf16.gmra.mrb[4].mxu1 %vm701_vm3, %v6363_v29  ;;  %5960 = vmatprep.mubr.msk.bf16.mxu0 %vm701_vm3, %v5451_v46  ;;  %v4008_v46 = vrot.slane %v4006_v50, 5  ;;  %v5453_v29 = vcombine.low %v3975_v4, %v3985_v25  ;;  %v5515_v8 = vcombine.low %v8054_v31, %v8059_v57  ;;  %v4457_v63 = vrot.slane %v7777_v48, 5  ;;  %v6416_v50 = vld [vmem:[%s6617_s11 + $0x28] sm:$0xf]  ;;  %v5473_v25 = vld [vmem:[%s6617_s11 + $0x30] sm:$0xe] }
 0x128   : > { %5808 = vmatprep.mubr.msk.bf16.mxu1 %vm701_vm3, %v6364_v19  ;;  %v3994_v12 = vrot.slane %v3993_v24, 4  ;;  %v4373_v19 = vrot.slane %v6415_v11, 5  ;;  %v4377_v61 = vrot.slane %v6416_v50, 5  ;;  %v8082_v48 = vsel %vm6869_vm7, %v5499_v41, %v4454_v6  ;;  %v6368_v11 = vld [vmem:[%s6617_s11 + $0x6c] sm:$0xff]   ;;  %v8506_v41 = vld [vmem:[#allocation9_spill] sm:$0xff] }
 0x129   : > { %v4009_v34 = vsel %vm6643_vm4, %v4004_v17, %v4008_v46  ;;  %v4456_v24 = vrot.slane %v4454_v6, 4  ;;  %v4371_v43 = vsel %vm6869_vm7, %v5487_v18, %v4370_v56  ;;  %v5488_v51 = vrot.slane %v5472_v2, 9  ;;  %v5485_v50 = vld [vmem:[%s6617_s11 + $0xc0] sm:$0xe]  ;;  %v6432_v31 = vld [vmem:[%s6617_s11 + $0xc8] sm:$0x1] }
 0x12a   : > { %v3999_v4 = vsel %vm6643_vm4, %v3994_v12, %v8022_v5  ;;  %v4374_v23 = vsel %vm6869_vm7, %v4372_v9, %v4373_v19  ;;  %v6417_v5 = vld [vmem:[%s6617_s11 + $0x34] sm:$0xf]  ;;  %v6367_v12 = vld [vmem:[%s6617_s11 + $0x60] sm:$0xff]   ;;  %v5489_v18 = vrot.slane %v5473_v25, 9  ;;  %v4464_v9 = vrot.slane %v7891_v35, 5 }
 0x12b   : > { %v4384_v16 = vrot.slane %v6417_v5, 5  ;;  %v8093_v62 = vsel %vm6869_vm7, %v4456_v24, %v4457_v63  ;;  %v5454_v46 = vcombine.low %v3999_v4, %v4009_v34  ;;  %v5504_v17 = vcombine.low %v4371_v43, %v4374_v23  ;;  %v5474_v24 = vld [vmem:[%s6617_s11 + $0x3c] sm:$0xe] }
 0x12c   : > { %v5516_v56 = vcombine.low %v8082_v48, %v8093_v62  ;;  %v4387_v6 = vrot.slane %v8506_v41, 5  ;;  %v4378_v35 = vsel %vm6869_vm7, %v5488_v51, %v4377_v61  ;;  %v5501_v5 = vrot.slane %v5485_v50, 9 }
 0x12d   : > { %v4386_v19 = vrot.slane %v4384_v16, 4  ;;  %v4385_v23 = vsel %vm6869_vm7, %v5489_v18, %v4384_v16  ;;  %v4471_v51 = vrot.slane %v7984_v52, 5  ;;  %v2451_v57 = vshll.u32 %v6432_v31, 16 }
 0x12e   : > { %5961 = vmatmul.mubr.msk.bf16.gmra.mrb[24].mxu0 %vm701_vm3, %v5452_v7  ;;  %v5500_v7 = vrot.slane %v5484_v49, 9 }
 0x12f   : > { %5809 = vmatmul.mubr.msk.bf16.gmra.mrb[8].mxu1 %vm701_vm3, %v6365_v47  ;;  %5964 = vmatprep.mubr.msk.bf16.mxu0 %vm701_vm3, %v5453_v29  ;;  %v4380_v47 = vrot.slane %v6418_v28, 5  ;;  %v4461_v29 = vrot.slane %v7842_v39, 5  ;;  %v8507_v39 = vld [vmem:[#allocation10_spill] sm:$0xff]  ;;  %v4388_v25 = vsel %vm6869_vm7, %v4386_v19, %v4387_v6  ;;  %v5490_v28 = vrot.slane %v5474_v24, 9 }
 0x130   : > { %5812 = vmatprep.mubr.msk.bf16.mxu1 %vm701_vm3, %v6366_v30  ;;  %v4379_v30 = vrot.slane %v4377_v61, 4  ;;  %v4391_v49 = vrot.slane %v8507_v39, 5  ;;  %v4468_v61 = vrot.slane %v7894_v58, 5  ;;  %v6419_v39 = vld [vmem:[%s6617_s11 + $0x70] sm:$0xf]  ;;  %v4475_v24 = vrot.slane %v7970_v55, 5 }
 0x131   : > { %v8105_v63 = vsel %vm6869_vm7, %v5500_v7, %v4461_v29  ;;  %v4463_v2 = vrot.slane %v4461_v29, 4  ;;  %v5203_v7 = vld [vmem:[%s6617_s11 + $0x6c] sm:$0xf]  ;;  %v8508_v29 = vld [vmem:[#allocation11_spill] sm:$0xff] }
 0x132   : > { %v4381_v34 = vsel %vm6869_vm7, %v4379_v30, %v4380_v47  ;;  %v4393_v47 = vrot.slane %v4391_v49, 4  ;;  %v6369_v30 = vld [vmem:[%s6617_s11 + $0x78] sm:$0xff]   ;;  %v8136_v16 = vsel %vm6869_vm7, %v5501_v5, %v4468_v61  ;;  %v4470_v18 = vrot.slane %v4468_v61, 4 }
 0x133   : > { %v8112_v4 = vsel %vm6869_vm7, %v4463_v2, %v4464_v9  ;;  %v5506_v9 = vcombine.low %v4385_v23, %v4388_v25  ;;  %v2264_v19 = vshrl.u32 %v5203_v7, 16  ;;  %v2267_v41 = vshll.u32 %v5203_v7, 16 }
 0x134   : > { %v5517_v43 = vcombine.low %v8105_v63, %v8112_v4  ;;  %v8141_v58 = vsel %vm6869_vm7, %v4470_v18, %v4471_v51  ;;  %v4392_v6 = vsel %vm6869_vm7, %v5490_v28, %v4391_v49  ;;  %v4478_v49 = vrot.slane %v8015_v21, 5  ;;  %v6371_v51 = vld [vmem:[%s6617_s11 + $0x90] sm:$0xff]   ;;  %v6372_v21 = vld [vmem:[%s6617_s11 + $0x9c] sm:$0xff]  }
 0x135   : > { %v5518_v50 = vcombine.low %v8136_v16, %v8141_v58  ;;  %v2266_v23 = vrot.slane %v2264_v19, 4  ;;  %v2269_v25 = vrot.slane %v2267_v41, 5  ;;  %v4477_v7 = vrot.slane %v4475_v24, 4 }
 0x136   : > { %5965 = vmatmul.mubr.msk.bf16.gmra.mrb[28].mxu0 %vm701_vm3, %v5454_v46  ;;  %v5505_v46 = vcombine.low %v4378_v35, %v4381_v34  ;;  %v2273_v35 = vshll.u32 %v6419_v39, 16  ;;  %v2277_v34 = vshrl.u32 %v6419_v39, 16 }
 0x137   : > { %5813 = vmatmul.mubr.msk.bf16.gmra.mrb[12].mxu1 %vm701_vm3, %v6367_v12  ;;  %5970 = vmatprep.mubr.msk.bf16.mxu0 %vm701_vm3, %v5504_v17  ;;  %v4394_v12 = vrot.slane %v8508_v29, 5  ;;  %v5486_v17 = vld [vmem:[%s6617_s11 + $0xcc] sm:$0xe]  ;;  %v8163_v55 = vsel %vm6869_vm7, %v4477_v7, %v4478_v49 }
 0x138   : > { %5816 = vmatprep.mubr.msk.bf16.mxu1 %vm701_vm3, %v6368_v11  ;;  %v6370_v11 = vld [vmem:[%s6617_s11 + $0x84] sm:$0xff]   ;;  %v5502_v52 = vrot.slane %v5486_v17, 9  ;;  %v2279_v28 = vrot.slane %v2277_v34, 4  ;;  %v6420_v17 = vld [vmem:[%s6617_s11 + $0x74] sm:$0x1] }
 0x139   : > { %v4395_v2 = vsel %vm6869_vm7, %v4393_v47, %v4394_v12  ;;  %v5209_v47 = vld [vmem:[%s6617_s11 + $0x84] sm:$0xf]  ;;  %v2270_v12 = vor.u32 %v2269_v25, %v2266_v23  ;;  %v6374_v34 = vld [vmem:[%s6617_s11 + $0xb4] sm:$0xff]  }
 0x13a   : > { %v8158_v5 = vsel %vm6869_vm7, %v5502_v52, %v4475_v24  ;;  %v5507_v61 = vcombine.low %v4392_v6, %v4395_v2  ;;  %v2315_v18 = vshll.u32 %v5209_v47, 16  ;;  %v5212_v6 = vld [vmem:[%s6617_s11 + $0x90] sm:$0xf]  ;;  %v6373_v2 = vld [vmem:[%s6617_s11 + $0xa8] sm:$0xff]  }
 0x13b   : > { %v5519_v29 = vcombine.low %v8158_v5, %v8163_v55  ;;  %v2271_v52 = vrot.slane %v2270_v12, 4  ;;  %v2336_v23 = vshrl.u32 %v5212_v6, 16  ;;  %v2339_v25 = vshll.u32 %v5212_v6, 16 }
 0x13c   : > { %v2369_v12 = vshll.u32 %v6423_v60, 16 }
 0x13d   : > { %v2341_v14 = vrot.slane %v2339_v25, 5  ;;  %v6426_v25 = vld [vmem:[%s6617_s11 + $0xa4] sm:$0x1] }
 0x13e   : > { %5971 = vmatmul.mubr.msk.bf16.vlgmr.msra.gmra.mrb[0].mxu0 %vm701_vm3, %v5505_v46  ;;  %v2275_v46 = vrot.slane %v2273_v35, 5  ;;  %v5215_v35 = vld [vmem:[%s6617_s11 + $0x9c] sm:$0xf]  ;;  %v8205_v6 = vrot.slane %v2369_v12, 5 }
 0x13f   : > { %5817 = vmatmul.mubr.msk.bf16.gmra.mrb[16].mxu1 %vm701_vm3, %v6369_v30  ;;  %5974 = vmatprep.mubr.msk.bf16.mxu0 %vm701_vm3, %v5506_v9  ;;  %v2283_v30 = vshll.u32 %v6420_v17, 16  ;;  %v2312_v9 = vshrl.u32 %v5209_v47, 16  ;;  %v2363_v47 = vshll.u32 %v5215_v35, 16  ;;  %v6424_v17 = vld [vmem:[%s6617_s11 + $0x8c] sm:$0x1] }
 0x140   : > { %5820 = vmatprep.mubr.msk.bf16.mxu1 %vm701_vm3, %v6370_v11  ;;  %v2280_v13 = vor.u32 %v2279_v28, %v2275_v46  ;;  %v6421_v11 = vld [vmem:[%s6617_s11 + $0x88] sm:$0xf]  ;;  %v2276_v7 = vsel %vm6643_vm4, %v2271_v52, %v2275_v46 }
 0x141   : > { %v2321_v19 = vshll.u32 %v6421_v11, 16  ;;  %v2325_v41 = vshrl.u32 %v6421_v11, 16  ;;  %v2285_v0 = vrot.slane %v2283_v30, 5  ;;  %v2314_v36 = vrot.slane %v2312_v9, 4 }
 0x142   : > { %v2281_v39 = vrot.slane %v2280_v13, 4  ;;  %v2331_v30 = vshll.u32 %v6424_v17, 16  ;;  %v2338_v9 = vrot.slane %v2336_v23, 4  ;;  %v2365_v11 = vrot.slane %v2363_v47, 5 }
 0x143   : > { %v8182_v24 = vrot.slane %v2321_v19, 5  ;;  %v2327_v49 = vrot.slane %v2325_v41, 4  ;;  %v6375_v19 = vld [vmem:[%s6617_s11 + $0xc0] sm:$0xff]  }
 0x144   : > { %v2286_v46 = vsel %vm6643_vm4, %v2281_v39, %v2285_v0  ;;  %v5218_v39 = vld [vmem:[%s6617_s11 + $0xa8] sm:$0xf] }
 0x145   : > { %v2328_v13 = vor.u32 %v2327_v49, %v8182_v24  ;;  %v5236_v41 = vcombine.low %v2276_v7, %v2286_v46  ;;  %v2379_v7 = vshll.u32 %v6426_v25, 16  ;;  %v2387_v45 = vshll.u32 %v5218_v39, 16 }
 0x146   : > { %5975 = vmatmul.mubr.msk.bf16.gmra.mrb[4].mxu0 %vm701_vm3, %v5507_v61  ;;  %v6422_v61 = vld [vmem:[%s6617_s11 + $0x94] sm:$0xf] }
 0x147   : > { %5821 = vmatmul.mubr.msk.bf16.gmra.mrb[20].mxu1 %vm701_vm3, %v6371_v51  ;;  %5978 = vmatprep.mubr.msk.bf16.mxu0 %vm701_vm3, %v5508_v10  ;;  %v2317_v10 = vrot.slane %v2315_v18, 5  ;;  %v2345_v51 = vshll.u32 %v6422_v61, 16  ;;  %v2349_v28 = vshrl.u32 %v6422_v61, 16  ;;  %v2329_v0 = vrot.slane %v2328_v13, 4 }
 0x148   : > { %5824 = vmatprep.mubr.msk.bf16.mxu1 %vm701_vm3, %v6372_v21  ;;  %v2360_v21 = vshrl.u32 %v5215_v35, 16  ;;  %v6425_v35 = vld [vmem:[%s6617_s11 + $0x98] sm:$0x1]  ;;  %v2384_v61 = vshrl.u32 %v5218_v39, 16  ;;  %v5224_v39 = vld [vmem:[%s6617_s11 + $0xc0] sm:$0xf] }
 0x149   : > { %v2318_v15 = vor.u32 %v2317_v10, %v2314_v36  ;;  %v8202_v26 = vrot.slane %v2345_v51, 5  ;;  %v2333_v36 = vrot.slane %v2331_v30, 5  ;;  %v2342_v10 = vor.u32 %v2341_v14, %v2338_v9  ;;  %v5221_v51 = vld [vmem:[%s6617_s11 + $0xb4] sm:$0xf] }
 0x14a   : > { %v2362_v18 = vrot.slane %v2360_v21, 4  ;;  %v2397_v21 = vshrl.u32 %v6427_v27, 16  ;;  %v2408_v20 = vshrl.u32 %v5221_v51, 16  ;;  %v2411_v42 = vshll.u32 %v5221_v51, 16 }
 0x14b   : > { %v2319_v52 = vrot.slane %v2318_v15, 4  ;;  %v2334_v46 = vsel %vm6643_vm4, %v2329_v0, %v2333_v36  ;;  %v2343_v15 = vrot.slane %v2342_v10, 4  ;;  %v2381_v30 = vrot.slane %v2379_v7, 5 }
 0x14c   : > { %v2366_v23 = vor.u32 %v2365_v11, %v2362_v18  ;;  %v2386_v9 = vrot.slane %v2384_v61, 4  ;;  %v2399_v11 = vrot.slane %v2397_v21, 4  ;;  %v6431_v61 = vld [vmem:[%s6617_s11 + $0xbc] sm:$0x1] }
 0x14d   : > { %v2324_v47 = vsel %vm6643_vm4, %v2319_v52, %v8182_v24  ;;  %v2348_v0 = vsel %vm6643_vm4, %v2343_v15, %v8202_v26  ;;  %v2427_v22 = vshll.u32 %v6431_v61, 16 }
 0x14e   : > { %5979 = vmatmul.mubr.msk.bf16.gmra.mrb[8].mxu0 %vm701_vm3, %v5509_v40  ;;  %v2373_v40 = vshrl.u32 %v6423_v60, 16  ;;  %v2367_v17 = vrot.slane %v2366_v23, 4  ;;  %v5238_v24 = vcombine.low %v2324_v47, %v2334_v46 }
 0x14f   : > { %5825 = vmatmul.mubr.msk.bf16.gmra.mrb[24].mxu1 %vm701_vm3, %v6373_v2  ;;  %5982 = vmatprep.mubr.msk.bf16.mxu0 %vm701_vm3, %v5510_v54  ;;  %v2351_v54 = vrot.slane %v2349_v28, 4 }
 0x150   : > { %5828 = vmatprep.mubr.msk.bf16.mxu1 %vm701_vm3, %v6374_v34  ;;  %v2375_v2 = vrot.slane %v2373_v40, 4  ;;  %v2355_v34 = vshll.u32 %v6425_v35, 16  ;;  %v2372_v10 = vsel %vm6643_vm4, %v2367_v17, %v8205_v6  ;;  %v2453_v17 = vrot.slane %v2451_v57, 5 }
 0x151   : > { %v2352_v49 = vor.u32 %v2351_v54, %v8202_v26  ;;  %v2389_v54 = vrot.slane %v2387_v45, 5  ;;  %v6429_v26 = vld [vmem:[%s6617_s11 + $0xb0] sm:$0x1] }
 0x152   : > { %v2376_v28 = vor.u32 %v2375_v2, %v8205_v6  ;;  %v2357_v60 = vrot.slane %v2355_v34, 5  ;;  %v2403_v35 = vshll.u32 %v6429_v26, 16  ;;  %v2432_v34 = vshrl.u32 %v5224_v39, 16 }
 0x153   : > { %v2353_v13 = vrot.slane %v2352_v49, 4  ;;  %v2390_v38 = vor.u32 %v2389_v54, %v2386_v9  ;;  %v2435_v6 = vshll.u32 %v5224_v39, 16  ;;  %v6430_v49 = vld [vmem:[%s6617_s11 + $0xc4] sm:$0xf] }
 0x154   : > { %v2377_v14 = vrot.slane %v2376_v28, 4  ;;  %v2441_v23 = vshll.u32 %v6430_v49, 16  ;;  %v2445_v25 = vshrl.u32 %v6430_v49, 16  ;;  %v2405_v45 = vrot.slane %v2403_v35, 5 }
 0x155   : > { %v2358_v36 = vsel %vm6643_vm4, %v2353_v13, %v2357_v60  ;;  %v2391_v51 = vrot.slane %v2390_v38, 4  ;;  %v2429_v60 = vrot.slane %v2427_v22, 5 }
 0x156   : > { %5983 = vmatmul.mubr.msk.bf16.gmra.mrb[12].mxu0 %vm701_vm3, %v5511_v53  ;;  %v2393_v53 = vshll.u32 %v6427_v27, 16  ;;  %v2382_v59 = vsel %vm6643_vm4, %v2377_v14, %v2381_v30  ;;  %v5239_v44 = vcombine.low %v2348_v0, %v2358_v36  ;;  %v2434_v27 = vrot.slane %v2432_v34, 4 }
 0x157   : > { %5829 = vmatmul.mubr.msk.bf16.gmra.mrb[28].mxu1 %vm701_vm3, %v6375_v19  ;;  %5986 = vmatprep.mubr.msk.bf16.mxu0 %vm701_vm3, %v5512_v33  ;;  %v6428_v33 = vld [vmem:[%s6617_s11 + $0xb8] sm:$0xf]  ;;  %v2410_v19 = vrot.slane %v2408_v20, 4  ;;  %v2443_v21 = vrot.slane %v2441_v23, 5  ;;  %v2447_v47 = vrot.slane %v2445_v25, 4 }
 0x158   : > { %5850 = vmatprep.mubr.msk.bf16.mxu1 %vm701_vm3, %v5236_v41  ;;  %v2417_v12 = vshll.u32 %v6428_v33, 16  ;;  %v2421_v40 = vshrl.u32 %v6428_v33, 16  ;;  %v2395_v18 = vrot.slane %v2393_v53, 5  ;;  %v2413_v41 = vrot.slane %v2411_v42, 5 }
 0x159   : > { %v2437_v53 = vrot.slane %v2435_v6, 5 }
 0x15a   : > { %v2419_v52 = vrot.slane %v2417_v12, 5  ;;  %v2423_v2 = vrot.slane %v2421_v40, 4  ;;  %v2396_v20 = vsel %vm6643_vm4, %v2391_v51, %v2395_v18  ;;  %v2448_v12 = vor.u32 %v2447_v47, %v2443_v21 }
 0x15b   : > { %v2438_v33 = vor.u32 %v2437_v53, %v2434_v27 }
 0x15c   : > { %v2424_v7 = vor.u32 %v2423_v2, %v2419_v52  ;;  %v2449_v13 = vrot.slane %v2448_v12, 4  ;;  %v8305_v2 = vld [vmem:[%s8438_s2] ss:$0 sm:$0xff] }
 0x15d   : > { %v2439_v40 = vrot.slane %v2438_v33, 4 }
 0x15e   : > { %5987 = vmatmul.mubr.msk.bf16.gmra.mrb[16].mxu0 %vm701_vm3, %v5513_v37  ;;  %v2400_v37 = vor.u32 %v2399_v11, %v2395_v18  ;;  %v2425_v15 = vrot.slane %v2424_v7, 4  ;;  %v2454_v9 = vsel %vm6643_vm4, %v2449_v13, %v2453_v17 }
 0x15f   : > { %5851 = vmatmul.mubr.msk.bf16.vlgmr.msra.gmra.mrb[16].mxu1 %vm701_vm3, %v8011_v1  ;;  %5990 = vmatprep.mubr.msk.bf16.mxu0 %vm701_vm3, %v5514_v3  ;;  %v2414_v1 = vor.u32 %v2413_v41, %v2410_v19  ;;  %v5240_v3 = vcombine.low %v2372_v10, %v2382_v59  ;;  %v2444_v30 = vsel %vm6643_vm4, %v2439_v40, %v2443_v21 }
 0x160   : > { %5854 = vmatprep.mubr.msk.bf16.mxu1 %vm701_vm3, %v5238_v24  ;;  %v2401_v28 = vrot.slane %v2400_v37, 4  ;;  %v2430_v48 = vsel %vm6643_vm4, %v2425_v15, %v2429_v60  ;;  %v5243_v14 = vcombine.low %v2444_v30, %v2454_v9 }
 0x161   : > { %v2415_v46 = vrot.slane %v2414_v1, 4 }
 0x162   : > { %v2406_v42 = vsel %vm6643_vm4, %v2401_v28, %v2405_v45 }
 0x163   : > { %v5241_v62 = vcombine.low %v2396_v20, %v2406_v42 }
 0x166   : > { %5991 = vmatmul.mubr.msk.bf16.gmra.mrb[20].mxu0 %vm701_vm3, %v5515_v8  ;;  %v2420_v8 = vsel %vm6643_vm4, %v2415_v46, %v2419_v52 }
 0x167   : > { %5855 = vmatmul.mubr.msk.bf16.gmra.mrb[20].mxu1 %vm701_vm3, %v5239_v44  ;;  %5994 = vmatprep.mubr.msk.bf16.mxu0 %vm701_vm3, %v5516_v56  ;;  %v5242_v56 = vcombine.low %v2420_v8, %v2430_v48 }
 0x168   : > { %5858 = vmatprep.mubr.msk.bf16.mxu1 %vm701_vm3, %v5240_v3 }
 0x16e   : > { %5995 = vmatmul.mubr.msk.bf16.gmra.mrb[24].mxu0 %vm701_vm3, %v5517_v43 }
 0x16f   : > { %5859 = vmatmul.mubr.msk.bf16.gmra.mrb[24].mxu1 %vm701_vm3, %v5241_v62  ;;  %5998 = vmatprep.mubr.msk.bf16.mxu0 %vm701_vm3, %v5518_v50 }
 0x170   : > { %5862 = vmatprep.mubr.msk.bf16.mxu1 %vm701_vm3, %v5242_v56 }
 0x176   : > { %5999 = vmatmul.mubr.msk.bf16.gmra.mrb[28].mxu0 %vm701_vm3, %v5519_v29 }
 0x177   : > { %5863 = vmatmul.mubr.msk.bf16.gmra.mrb[28].mxu1 %vm701_vm3, %v5243_v14 }
 0x1f2   : > { %v5802_v63 = vpop.f32.mrb[0].mxu1 }
 0x1f3   : > { %v1864_v4 = vpop.f32.mrb[1].mxu1 }
 0x1f4   : > { %v5803_v43 = vpop.f32.mrb[2].mxu1 }
 0x1f5   : > { %v1867_v16 = vpop.f32.mrb[3].mxu1 }
 0x1fa   : > { %v5806_v58 = vpop.f32.mrb[4].mxu1 }
 0x1fb   : > { %v1880_v50 = vpop.f32.mrb[5].mxu1 }
 0x1fc   : > { %v5807_v54 = vpop.f32.mrb[6].mxu1 }
 0x1fd   : > { %v1883_v18 = vpop.f32.mrb[7].mxu1 }
 0x202   : > { %v5810_v32 = vpop.f32.mrb[8].mxu1 }
 0x203   : > { %v1896_v11 = vpop.f32.mrb[9].mxu1 }
 0x204   : > { %v5811_v24 = vpop.f32.mrb[10].mxu1 }
 0x205   : > { %v1899_v19 = vpop.f32.mrb[11].mxu1 }
 0x20a   : > { %v8293_v41 = vpop.f32.mrb[12].mxu1 }
 0x20b   : > { %v8295_v5 = vpop.f32.mrb[13].mxu1 }
 0x20c   : > { %v8297_v55 = vpop.f32.mrb[14].mxu1 }
 0x20d   : > { %v8299_v29 = vpop.f32.mrb[15].mxu1 }
 0x211   : > { %v5972_v52 = vpop.f32.mrb[0].mxu0 }
 0x212   : > { %v6004_v39 = vadd.f32 %v5972_v52, %v5802_v63  ;;  %v4615_v0 = vpop.f32.mrb[1].mxu0 }
 0x213   : > { %v6005_v36 = vadd.f32 %v4615_v0, %v1864_v4  ;;  %v5973_v10 = vpop.f32.mrb[2].mxu0 }
 0x214   : > { %v4783_v59 = vadd.f32 %v6004_v39, %v8305_v2  ;;  %v6006_v38 = vadd.f32 %v5973_v10, %v5803_v43  ;;  %v4618_v37 = vpop.f32.mrb[3].mxu0 }
 0x215   : > { %v4781_v26 = vadd.f32 %v6005_v36, %v8305_v2  ;;  %v6007_v35 = vadd.f32 %v4618_v37, %v1867_v16 }
 0x216   : > { %v4815_v34 = vmax.f32 %v4783_v59, 0.0  ;;  %v4784_v6 = vadd.f32 %v6006_v38, %v8305_v2 }
 0x217   : > { %v4813_v49 = vmax.f32 %v4781_v26, 0.0  ;;  %v4782_v23 = vadd.f32 %v6007_v35, %v8305_v2 }
 0x218   : > { %4847 = vst [vmem:[%s8313_s19 + $0x10] sm:$0xff] %v4815_v34  ;;  %v4816_v25 = vmax.f32 %v4784_v6, 0.0 }
 0x219   : > { %4845 = vst [vmem:[%s8313_s19] sm:$0xff] %v4813_v49  ;;  %v4814_v1 = vmax.f32 %v4782_v23, 0.0  ;;  %v5976_v7 = vpop.f32.mrb[4].mxu0 }
 0x21a   : > { %4848 = vst [vmem:[%s8313_s19 + $0x18] sm:$0xff] %v4816_v25  ;;  %v6008_v61 = vadd.f32 %v5976_v7, %v5806_v58  ;;  %v4631_v22 = vpop.f32.mrb[5].mxu0 }
 0x21b   : > { %4846 = vst [vmem:[%s8313_s19 + $0x8] sm:$0xff] %v4814_v1  ;;  %v6009_v44 = vadd.f32 %v4631_v22, %v1880_v50  ;;  %v5977_v3 = vpop.f32.mrb[6].mxu0 }
 0x21c   : > { %v4787_v51 = vadd.f32 %v6008_v61, %v8305_v2  ;;  %v6010_v28 = vadd.f32 %v5977_v3, %v5807_v54  ;;  %v4634_v45 = vpop.f32.mrb[7].mxu0 }
 0x21d   : > { %v4785_v27 = vadd.f32 %v6009_v44, %v8305_v2  ;;  %v6011_v53 = vadd.f32 %v4634_v45, %v1883_v18 }
 0x21e   : > { %v4819_v21 = vmax.f32 %v4787_v51, 0.0  ;;  %v4788_v47 = vadd.f32 %v6010_v28, %v8305_v2 }
 0x21f   : > { %v4817_v46 = vmax.f32 %v4785_v27, 0.0  ;;  %v4786_v15 = vadd.f32 %v6011_v53, %v8305_v2 }
 0x220   : > { %4851 = vst [vmem:[%s8313_s19 + $0x30] sm:$0xff] %v4819_v21  ;;  %v4820_v60 = vmax.f32 %v4788_v47, 0.0 }
 0x221   : > { %4849 = vst [vmem:[%s8313_s19 + $0x20] sm:$0xff] %v4817_v46  ;;  %v4818_v20 = vmax.f32 %v4786_v15, 0.0  ;;  %v5980_v42 = vpop.f32.mrb[8].mxu0 }
 0x222   : > { %4852 = vst [vmem:[%s8313_s19 + $0x38] sm:$0xff] %v4820_v60  ;;  %v6012_v33 = vadd.f32 %v5980_v42, %v5810_v32  ;;  %v4647_v12 = vpop.f32.mrb[9].mxu0 }
 0x223   : > { %4850 = vst [vmem:[%s8313_s19 + $0x28] sm:$0xff] %v4818_v20  ;;  %v6013_v31 = vadd.f32 %v4647_v12, %v1896_v11  ;;  %v5981_v57 = vpop.f32.mrb[10].mxu0 }
 0x224   : > { %v4791_v8 = vadd.f32 %v6012_v33, %v8305_v2  ;;  %v6014_v48 = vadd.f32 %v5981_v57, %v5811_v24  ;;  %v4650_v62 = vpop.f32.mrb[11].mxu0 }
 0x225   : > { %v4789_v56 = vadd.f32 %v6013_v31, %v8305_v2  ;;  %v6015_v40 = vadd.f32 %v4650_v62, %v1899_v19 }
 0x226   : > { %v4823_v13 = vmax.f32 %v4791_v8, 0.0  ;;  %v4792_v17 = vadd.f32 %v6014_v48, %v8305_v2 }
 0x227   : > { %v4821_v30 = vmax.f32 %v4789_v56, 0.0  ;;  %v4790_v9 = vadd.f32 %v6015_v40, %v8305_v2 }
 0x228   : > { %4855 = vst [vmem:[%s8313_s19 + $0x50] sm:$0xff] %v4823_v13  ;;  %v4824_v14 = vmax.f32 %v4792_v17, 0.0 }
 0x229   : > { %4853 = vst [vmem:[%s8313_s19 + $0x40] sm:$0xff] %v4821_v30  ;;  %v4822_v63 = vmax.f32 %v4790_v9, 0.0  ;;  %v5984_v4 = vpop.f32.mrb[12].mxu0 }
 0x22a   : > { %4856 = vst [vmem:[%s8313_s19 + $0x58] sm:$0xff] %v4824_v14  ;;  %v6016_v43 = vadd.f32 %v5984_v4, %v8293_v41  ;;  %v4663_v16 = vpop.f32.mrb[13].mxu0 }
 0x22b   : > { %4854 = vst [vmem:[%s8313_s19 + $0x48] sm:$0xff] %v4822_v63  ;;  %v6017_v58 = vadd.f32 %v4663_v16, %v8295_v5  ;;  %v5985_v50 = vpop.f32.mrb[14].mxu0 }
 0x22c   : > { %v4795_v54 = vadd.f32 %v6016_v43, %v8305_v2  ;;  %v6018_v18 = vadd.f32 %v5985_v50, %v8297_v55  ;;  %v4666_v32 = vpop.f32.mrb[15].mxu0 }
 0x22d   : > { %v4793_v11 = vadd.f32 %v6017_v58, %v8305_v2  ;;  %v6019_v24 = vadd.f32 %v4666_v32, %v8299_v29 }
 0x22e   : > { %v4827_v19 = vmax.f32 %v4795_v54, 0.0  ;;  %v4796_v41 = vadd.f32 %v6018_v18, %v8305_v2 }
 0x22f   : > { %v4825_v52 = vmax.f32 %v4793_v11, 0.0  ;;  %v4794_v39 = vadd.f32 %v6019_v24, %v8305_v2 }
 0x230   : > { %4859 = vst [vmem:[%s8313_s19 + $0x70] sm:$0xff] %v4827_v19  ;;  %v4828_v5 = vmax.f32 %v4796_v41, 0.0 }
 0x231   : > { %4857 = vst [vmem:[%s8313_s19 + $0x60] sm:$0xff] %v4825_v52  ;;  %v4826_v0 = vmax.f32 %v4794_v39, 0.0  ;;  %v5988_v36 = vpop.f32.mrb[16].mxu0 }
 0x232   : > { %4860 = vst [vmem:[%s8313_s19 + $0x78] sm:$0xff] %v4828_v5  ;;  %v5852_v10 = vpop.f32.mrb[16].mxu1  ;;  %v4679_v55 = vpop.f32.mrb[17].mxu0 }
 0x233   : > { %4858 = vst [vmem:[%s8313_s19 + $0x68] sm:$0xff] %v4826_v0  ;;  %v6020_v59 = vadd.f32 %v5988_v36, %v5852_v10  ;;  %v2654_v38 = vpop.f32.mrb[17].mxu1  ;;  %v5989_v37 = vpop.f32.mrb[18].mxu0 }
 0x234   : > { %v6021_v29 = vadd.f32 %v4679_v55, %v2654_v38  ;;  %v5853_v26 = vpop.f32.mrb[18].mxu1  ;;  %v4682_v35 = vpop.f32.mrb[19].mxu0 }
 0x235   : > { %v4799_v34 = vadd.f32 %v6020_v59, %v8305_v2  ;;  %v6022_v6 = vadd.f32 %v5989_v37, %v5853_v26  ;;  %v2657_v49 = vpop.f32.mrb[19].mxu1 }
 0x236   : > { %v4797_v23 = vadd.f32 %v6021_v29, %v8305_v2  ;;  %v6023_v25 = vadd.f32 %v4682_v35, %v2657_v49 }
 0x237   : > { %v4831_v1 = vmax.f32 %v4799_v34, 0.0  ;;  %v4800_v7 = vadd.f32 %v6022_v6, %v8305_v2 }
 0x238   : > { %v4829_v61 = vmax.f32 %v4797_v23, 0.0  ;;  %v4798_v22 = vadd.f32 %v6023_v25, %v8305_v2 }
 0x239   : > { %4863 = vst [vmem:[%s8313_s19 + $0x90] sm:$0xff] %v4831_v1  ;;  %v4832_v44 = vmax.f32 %v4800_v7, 0.0  ;;  %v5992_v3 = vpop.f32.mrb[20].mxu0 }
 0x23a   : > { %4861 = vst [vmem:[%s8313_s19 + $0x80] sm:$0xff] %v4829_v61  ;;  %v4830_v51 = vmax.f32 %v4798_v22, 0.0  ;;  %v5856_v28 = vpop.f32.mrb[20].mxu1  ;;  %v4695_v45 = vpop.f32.mrb[21].mxu0 }
 0x23b   : > { %4864 = vst [vmem:[%s8313_s19 + $0x98] sm:$0xff] %v4832_v44  ;;  %v6024_v27 = vadd.f32 %v5992_v3, %v5856_v28  ;;  %v2670_v53 = vpop.f32.mrb[21].mxu1  ;;  %v5993_v21 = vpop.f32.mrb[22].mxu0 }
 0x23c   : > { %4862 = vst [vmem:[%s8313_s19 + $0x88] sm:$0xff] %v4830_v51  ;;  %v6025_v47 = vadd.f32 %v4695_v45, %v2670_v53  ;;  %v5857_v46 = vpop.f32.mrb[22].mxu1  ;;  %v4698_v15 = vpop.f32.mrb[23].mxu0 }
 0x23d   : > { %v4803_v60 = vadd.f32 %v6024_v27, %v8305_v2  ;;  %v6026_v20 = vadd.f32 %v5993_v21, %v5857_v46  ;;  %v2673_v42 = vpop.f32.mrb[23].mxu1 }
 0x23e   : > { %v4801_v33 = vadd.f32 %v6025_v47, %v8305_v2  ;;  %v6027_v12 = vadd.f32 %v4698_v15, %v2673_v42 }
 0x23f   : > { %v4835_v31 = vmax.f32 %v4803_v60, 0.0  ;;  %v4804_v57 = vadd.f32 %v6026_v20, %v8305_v2 }
 0x240   : > { %v4833_v8 = vmax.f32 %v4801_v33, 0.0  ;;  %v4802_v48 = vadd.f32 %v6027_v12, %v8305_v2 }
 0x241   : > { %4867 = vst [vmem:[%s8313_s19 + $0xb0] sm:$0xff] %v4835_v31  ;;  %v4836_v62 = vmax.f32 %v4804_v57, 0.0  ;;  %v5996_v56 = vpop.f32.mrb[24].mxu0 }
 0x242   : > { %4865 = vst [vmem:[%s8313_s19 + $0xa0] sm:$0xff] %v4833_v8  ;;  %v4834_v40 = vmax.f32 %v4802_v48, 0.0  ;;  %v5860_v13 = vpop.f32.mrb[24].mxu1  ;;  %v4711_v17 = vpop.f32.mrb[25].mxu0 }
 0x243   : > { %4868 = vst [vmem:[%s8313_s19 + $0xb8] sm:$0xff] %v4836_v62  ;;  %v6028_v30 = vadd.f32 %v5996_v56, %v5860_v13  ;;  %v2686_v9 = vpop.f32.mrb[25].mxu1  ;;  %v5997_v14 = vpop.f32.mrb[26].mxu0 }
 0x244   : > { %4866 = vst [vmem:[%s8313_s19 + $0xa8] sm:$0xff] %v4834_v40  ;;  %v6029_v63 = vadd.f32 %v4711_v17, %v2686_v9  ;;  %v5861_v4 = vpop.f32.mrb[26].mxu1  ;;  %v4714_v43 = vpop.f32.mrb[27].mxu0 }
 0x245   : > { %v4807_v16 = vadd.f32 %v6028_v30, %v8305_v2  ;;  %v6030_v58 = vadd.f32 %v5997_v14, %v5861_v4  ;;  %v2689_v50 = vpop.f32.mrb[27].mxu1 }
 0x246   : > { %v4805_v54 = vadd.f32 %v6029_v63, %v8305_v2  ;;  %v6031_v18 = vadd.f32 %v4714_v43, %v2689_v50 }
 0x247   : > { %v4839_v32 = vmax.f32 %v4807_v16, 0.0  ;;  %v4808_v11 = vadd.f32 %v6030_v58, %v8305_v2 }
 0x248   : > { %v4837_v24 = vmax.f32 %v4805_v54, 0.0  ;;  %v4806_v19 = vadd.f32 %v6031_v18, %v8305_v2 }
 0x249   : > { %4871 = vst [vmem:[%s8313_s19 + $0xd0] sm:$0xff] %v4839_v32  ;;  %v4840_v41 = vmax.f32 %v4808_v11, 0.0  ;;  %v6000_v52 = vpop.f32.mrb[28].mxu0 }
 0x24a   : > { %4869 = vst [vmem:[%s8313_s19 + $0xc0] sm:$0xff] %v4837_v24  ;;  %v4838_v39 = vmax.f32 %v4806_v19, 0.0  ;;  %v5864_v5 = vpop.f32.mrb[28].mxu1  ;;  %v4727_v0 = vpop.f32.mrb[29].mxu0 }
 0x24b   : > { %4872 = vst [vmem:[%s8313_s19 + $0xd8] sm:$0xff] %v4840_v41  ;;  %v6032_v36 = vadd.f32 %v6000_v52, %v5864_v5  ;;  %v2702_v10 = vpop.f32.mrb[29].mxu1  ;;  %v6001_v55 = vpop.f32.mrb[30].mxu0 }
 0x24c   : > { %4870 = vst [vmem:[%s8313_s19 + $0xc8] sm:$0xff] %v4838_v39  ;;  %v6033_v59 = vadd.f32 %v4727_v0, %v2702_v10  ;;  %v5865_v38 = vpop.f32.mrb[30].mxu1  ;;  %v4730_v37 = vpop.f32.mrb[31].mxu0 }
 0x24d   : > { %v4811_v29 = vadd.f32 %v6032_v36, %v8305_v2  ;;  %v6034_v26 = vadd.f32 %v6001_v55, %v5865_v38  ;;  %v2705_v35 = vpop.f32.mrb[31].mxu1 }
 0x24e   : > { %v4809_v34 = vadd.f32 %v6033_v59, %v8305_v2  ;;  %v6035_v6 = vadd.f32 %v4730_v37, %v2705_v35 }
 0x24f   : > { %v4843_v49 = vmax.f32 %v4811_v29, 0.0  ;;  %v4812_v23 = vadd.f32 %v6034_v26, %v8305_v2 }
 0x250   : > { %v4841_v25 = vmax.f32 %v4809_v34, 0.0  ;;  %v4810_v1 = vadd.f32 %v6035_v6, %v8305_v2 }
 0x251   : > { %4875 = vst [vmem:[%s8313_s19 + $0xf0] sm:$0xff] %v4843_v49  ;;  %v4844_v7 = vmax.f32 %v4812_v23, 0.0 }
 0x252   : > { %4873 = vst [vmem:[%s8313_s19 + $0xe0] sm:$0xff] %v4841_v25  ;;  %v4842_v61 = vmax.f32 %v4810_v1, 0.0 }
 0x253   : > { %4876 = vst [vmem:[%s8313_s19 + $0xf8] sm:$0xff] %v4844_v7 }
 0x254   : > { %4874 = vst [vmem:[%s8313_s19 + $0xe8] sm:$0xff] %v4842_v61 }
 0x255   : > { %6446 = shalt.err (!%p6443_p5)
}
 0x256   : > { %s6447_s6 = scalar_lea.hbm %s8381_s28, 4096  ;;  %s6451_s9 = scalar_lea.hbm %s8439_s3, 8192 }
 0x257   : > { %p6448_p6 = scmp.ne.s32.totalorder %s8381_s28, %s6447_s6  ;;  %p6452_p10 = scmp.lt.u32.totalorder %s8381_s28, %s8439_s3 }
 0x258   : > { %p6453_p11 = scmp.lt.u32.totalorder %s6451_s9, %s6447_s6  ;;  %p6455_p13 = scmp.lt.u32.totalorder %s6447_s6, %s8381_s28 }
 0x259   : > { %p6449_p7 = pnand %p6448_p6, %p6576_p4 }
 0x25a   : > { %p6454_p12 = por %p6453_p11, %p6452_p10 }
 0x25b   : > { %p6450_p9 = pneg %p6449_p7 }
 0x25c   : > { %p6456_p0 = por %p6455_p13, %p6454_p12 }
 0x25e   : > { %p6457_p1 = pnand %p6456_p0, %p6450_p9 }
 0x260   : > { %6460 = shalt.err (!%p6457_p1)
}
 0x261   : > { %s6514_s18 = smov 128   ;;  %s6515_s19 = smov 8  }
 0x262   : > { %6271 = dma.vmem_to_hbm [thread:$0]  (%p6576_p4), %s8383_s23, 4096, %s8381_s28, %s8390_s15, %s6514_s18, %s6514_s18, %s6515_s19  }
 0x263 PF: > { %p6277_p2 = scmp.ge.s32.totalorder %s6511_s17, 2  ;;  %s4907_s21 = sand.u32 1, %s6491_s12  }
 0x264   : > { %s4908_s26 = scalar_lea.sflag [#allocation3], %s4907_s21 }
 0x265   : > { %p6274_p3 = pnand %p6277_p2, %p6583_p8 }
 0x267   : > { %6486 = dma.done.wait (!%p6274_p3), %s4908_s26, 4096  }
 0x268   : > { %6488 = vsyncadd (!%p6274_p3), %s4908_s26, 4294963200  ;;  %s16_s17 = sadd.s32 1, %s6511_s17   ;;  %s8509_s12 = smov %s6495_s13 }
 0x269   : > { %p13_p5 = scmp.ge.s32.totalorder %s16_s17, 4   ;;  %s8510_s13 = smov %s6499_s14 }
 0x26a   : > { %s8511_s14 = smov %s6589_s25  ;;  %s8512_s15 = smov %s6507_s16 }
 0x26b   : > { %s8513_s16 = smov %s8515_s20  ;;  %15 = sbr.rel (!%p13_p5) target bundleno = 4 (0x4), region = 83 }
 0x272   :  { %4913 = vsyncpa [#allocation3], 1 }
 0x273   :  { %4915 = vsyncpa [#allocation3 + $0x1], 1 }

</bundles_post_ra>
